<compile_context>
chip_gen: v6e
topology: v6e:2x2x1
jax: 0.10.0
libtpu: 0.0.40
codegen_flags: <defaults>
</compile_context>

<pallas_src>
import numpy as np
import jax
import jax.numpy as jnp
from jax.experimental import pallas as pl
from jax.experimental.pallas import tpu as pltpu


def mini_pointnet_kernel(x_ref,
                         w1_ref, b1_ref,
                         w2_ref, b2_ref,
                         w3f_ref, w3g_ref, b3_ref,
                         w4_ref, b4_ref,
                         out_ref):
    tg, n, cin = x_ref.shape
    x = x_ref[...].reshape(tg * n, cin)                                   # bf16 (TG*N, 8)

    # first_conv: Conv1d(3,128,1) [+ folded BN] -> ReLU
    h = jnp.dot(x, w1_ref[...], preferred_element_type=jnp.float32) + b1_ref[...]
    h = jnp.maximum(h, 0.0)                                               # (TG*N, 128)

    # first_conv tail: Conv1d(128,256,1)
    f = jnp.dot(h.astype(jnp.bfloat16), w2_ref[...],
                preferred_element_type=jnp.float32) + b2_ref[...]         # (TG*N, 256)

    # per-group global max-pool over points
    fg = jnp.max(f.reshape(tg, n, -1), axis=1)                            # (TG, 256)

    # second_conv: Conv1d(512,512,1) [+ folded BN] -> ReLU
    # concat([broadcast(fg), f]) @ w3  ==  fg @ w3_g  +  f @ w3_f   (w3 split in wrapper)
    pooled = jnp.dot(fg.astype(jnp.bfloat16), w3g_ref[...],
                     preferred_element_type=jnp.float32) + b3_ref[...]    # (TG, 512)
    perpt = jnp.dot(f.astype(jnp.bfloat16), w3f_ref[...],
                    preferred_element_type=jnp.float32)                   # (TG*N, 512)
    h2 = jnp.maximum(perpt.reshape(tg, n, -1) + pooled[:, None, :], 0.0)  # (TG, N, 512)

    # second_conv tail: Conv1d(512, C, 1)   (C zero-padded to lane width)
    o = jnp.dot(h2.reshape(tg * n, -1).astype(jnp.bfloat16), w4_ref[...],
                preferred_element_type=jnp.float32) + b4_ref[...]         # (TG*N, Cp)

    # final per-group max-pool -> lane-dense (TG, Cp) output block
    out_ref[...] = jnp.max(o.reshape(tg, n, -1), axis=1)


def mini_pointnet_forward(point_groups, params, encoder_channel, *, tg=8):
    """point_groups: (B, G, N, 3) -> (B, G, encoder_channel)"""
    assert tg % 8 == 0, "group tile must keep the output block sublane-aligned"
    bs, g, n, _ = point_groups.shape
    bg = bs * g
    bg_pad = ((bg + tg - 1) // tg) * tg
    c_mid = params["w2"].shape[1]                       # 256
    c_pad = ((encoder_channel + 127) // 128) * 128      # lane-dense output width

    # Pad the group axis to a multiple of TG and the 3 input channels to 8
    # (zero rows/cols contribute exactly nothing), then ship as bf16.
    x = point_groups.reshape(bg, n, 3).astype(jnp.float32)
    x = jnp.pad(x, ((0, bg_pad - bg), (0, 0), (0, 8 - 3))).astype(jnp.bfloat16)

    # Fold eval-mode BatchNorms into the adjacent convs; split w3 to remove the
    # broadcast+concat; pad w4/b4 to the lane-dense output width.
    w1 = jnp.pad(params["w1"], ((0, 8 - 3), (0, 0))) * params["s1"]
    b1 = params["b1"] * params["s1"] + params["t1"]
    w3 = params["w3"] * params["s2"]
    b3 = params["b3"] * params["s2"] + params["t2"]
    w3g, w3f = w3[:c_mid], w3[c_mid:]
    w4 = jnp.pad(params["w4"], ((0, 0), (0, c_pad - encoder_channel)))
    b4 = jnp.pad(params["b4"], ((0, 0), (0, c_pad - encoder_channel)))

    weights = [
        w1.astype(jnp.bfloat16), b1,
        params["w2"].astype(jnp.bfloat16), params["b2"],
        w3f.astype(jnp.bfloat16), w3g.astype(jnp.bfloat16), b3,
        w4.astype(jnp.bfloat16), b4,
    ]

    # Weights are block-resident (constant index_map); ~0.7 MiB bf16 total, so
    # the default double buffer is harmless and vmem_limit_bytes is not needed
    # at these sizes (re-check if TG or encoder_channel grows, esp. on v7x).
    def full_spec(a):
        nd = a.ndim
        return pl.BlockSpec(a.shape, lambda i, _nd=nd: (0,) * _nd)

    out = pl.pallas_call(
        mini_pointnet_kernel,
        out_shape=jax.ShapeDtypeStruct((bg_pad, c_pad), jnp.float32),
        grid_spec=pltpu.PrefetchScalarGridSpec(
            num_scalar_prefetch=0,
            grid=(bg_pad // tg,),
            in_specs=[pl.BlockSpec((tg, n, 8), lambda i: (i, 0, 0))]
                     + [full_spec(w) for w in weights],
            out_specs=pl.BlockSpec((tg, c_pad), lambda i: (i, 0)),
        ),
        compiler_params=pltpu.CompilerParams(
            dimension_semantics=("parallel",)),
    )(x, *weights)

    return out[:bg, :encoder_channel].reshape(bs, g, encoder_channel)


def init_params(key, encoder_channel):
    """Deterministic synthetic parameters matching MiniPointNet's shapes."""
    eps = 1e-5
    ks = jax.random.split(key, 12)

    def conv_w(k, cin, cout):
        # PyTorch Conv1d weight is (cout, cin, 1); stored transposed as (cin, cout).
        bound = 1.0 / np.sqrt(cin)
        return jax.random.uniform(k, (cin, cout), jnp.float32, -bound, bound)

    def conv_b(k, cin, cout):
        bound = 1.0 / np.sqrt(cin)
        return jax.random.uniform(k, (1, cout), jnp.float32, -bound, bound)

    def bn(k, c):
        # TODO(synk): BatchNorm implemented in eval mode (folded running stats);
        # training-mode batch statistics are not reproduced.
        kg, kb, km, kv = jax.random.split(k, 4)
        gamma = 1.0 + 0.1 * jax.random.normal(kg, (1, c), jnp.float32)
        beta = 0.1 * jax.random.normal(kb, (1, c), jnp.float32)
        mean = 0.1 * jax.random.normal(km, (1, c), jnp.float32)
        var = jnp.abs(jax.random.normal(kv, (1, c), jnp.float32)) + 0.5
        s = gamma * jax.lax.rsqrt(var + eps)
        t = beta - mean * s
        return s, t

    s1, t1 = bn(ks[10], 128)
    s2, t2 = bn(ks[11], 512)
    return dict(
        w1=conv_w(ks[0], 3, 128),                 b1=conv_b(ks[4], 3, 128),
        w2=conv_w(ks[1], 128, 256),               b2=conv_b(ks[5], 128, 256),
        w3=conv_w(ks[2], 512, 512),               b3=conv_b(ks[6], 512, 512),
        w4=conv_w(ks[3], 512, encoder_channel),   b4=conv_b(ks[7], 512, encoder_channel),
        s1=s1, t1=t1, s2=s2, t2=t2,
    )


def ref_forward_f32(point_groups, p, encoder_channel):
    """Pure-JAX, module-faithful eval-mode forward in f32 (semantics check)."""
    bs, g, n, _ = point_groups.shape
    x = point_groups.reshape(bs * g, n, 3).astype(jnp.float32)
    h = jnp.maximum((x @ p["w1"] + p["b1"]) * p["s1"] + p["t1"], 0.0)
    f = h @ p["w2"] + p["b2"]
    fg = jnp.max(f, axis=1, keepdims=True)
    cat = jnp.concatenate([jnp.broadcast_to(fg, f.shape), f], axis=-1)
    h2 = jnp.maximum((cat @ p["w3"] + p["b3"]) * p["s2"] + p["t2"], 0.0)
    o = h2 @ p["w4"] + p["b4"]
    return jnp.max(o, axis=1).reshape(bs, g, encoder_channel)


def ref_forward_mirror(point_groups, p, encoder_channel):
    """Pure-JAX reference mirroring the kernel's bf16/folded computation."""
    bs, g, n, _ = point_groups.shape
    bf = jnp.bfloat16
    x = point_groups.reshape(bs * g, n, 3).astype(jnp.float32).astype(bf)
    c_mid = p["w2"].shape[1]
    w1 = (p["w1"] * p["s1"]).astype(bf)
    b1 = p["b1"] * p["s1"] + p["t1"]
    w3 = p["w3"] * p["s2"]
    b3 = p["b3"] * p["s2"] + p["t2"]
    w3g, w3f = w3[:c_mid].astype(bf), w3[c_mid:].astype(bf)

    h = jnp.maximum(jnp.dot(x, w1, preferred_element_type=jnp.float32) + b1, 0.0)
    f = jnp.dot(h.astype(bf), p["w2"].astype(bf),
                preferred_element_type=jnp.float32) + p["b2"]
    fg = jnp.max(f, axis=1)
    pooled = jnp.dot(fg.astype(bf), w3g, preferred_element_type=jnp.float32) + b3
    perpt = jnp.dot(f.astype(bf), w3f, preferred_element_type=jnp.float32)
    h2 = jnp.maximum(perpt + pooled[:, None, :], 0.0)
    o = jnp.dot(h2.astype(bf), p["w4"].astype(bf),
                preferred_element_type=jnp.float32) + p["b4"]
    return jnp.max(o, axis=1).reshape(bs, g, encoder_channel)


if __name__ == "__main__":
    # batch, groups, points-per-group, encoder_channel (bg=20 -> padded to 24, 3 grid steps)
    B, G, N, C = 2, 10, 32, 64
    key = jax.random.PRNGKey(0)
    k_pts, k_par = jax.random.split(key)

    point_groups = jax.random.normal(k_pts, (B, G, N, 3), jnp.float32)
    params = init_params(k_par, C)

    out = mini_pointnet_forward(point_groups, params, C)
    out = jax.block_until_ready(out)
    assert out.shape == (B, G, C), out.shape

    # Tight check against a pure-JAX mirror of the kernel's bf16 computation.
    ref_m = ref_forward_mirror(point_groups, params, C)
    np.testing.assert_allclose(np.asarray(out), np.asarray(ref_m), rtol=1e-2, atol=1e-2)

    # Looser check against the module-faithful f32 reference (bf16 MXU rounding).
    ref_f = ref_forward_f32(point_groups, params, C)
    np.testing.assert_allclose(np.asarray(out), np.asarray(ref_f), rtol=6e-2, atol=6e-2)

    print("KERNEL_OK")
</pallas_src>

<mosaic_0001>
module attributes {stable_mosaic.version = 11 : i64} {
  func.func @mini_pointnet_kernel(%arg0: i32, %arg1: memref<8x32x8xbf16, #tpu.memory_space<vmem>>, %arg2: memref<8x128xbf16, #tpu.memory_space<vmem>>, %arg3: memref<1x128xf32, #tpu.memory_space<vmem>>, %arg4: memref<128x256xbf16, #tpu.memory_space<vmem>>, %arg5: memref<1x256xf32, #tpu.memory_space<vmem>>, %arg6: memref<256x512xbf16, #tpu.memory_space<vmem>>, %arg7: memref<256x512xbf16, #tpu.memory_space<vmem>>, %arg8: memref<1x512xf32, #tpu.memory_space<vmem>>, %arg9: memref<512x128xbf16, #tpu.memory_space<vmem>>, %arg10: memref<1x128xf32, #tpu.memory_space<vmem>>, %arg11: memref<8x128xf32, #tpu.memory_space<vmem>>) attributes {dimension_semantics = [#tpu.dimension_semantics<parallel>], iteration_bounds = array<i64: 3>, scalar_prefetch = 0 : i64, scratch_operands = 0 : i64, tpu.core_type = #tpu.core_type<tc>, window_params = [{transform_indices = @transform_0, window_bounds = array<i64: 8, 32, 8>}, {pipeline_mode = #tpu.pipeline_mode<synchronous>, transform_indices = @transform_1, window_bounds = array<i64: 8, 128>}, {pipeline_mode = #tpu.pipeline_mode<synchronous>, transform_indices = @transform_2, window_bounds = array<i64: 1, 128>}, {pipeline_mode = #tpu.pipeline_mode<synchronous>, transform_indices = @transform_3, window_bounds = array<i64: 128, 256>}, {pipeline_mode = #tpu.pipeline_mode<synchronous>, transform_indices = @transform_4, window_bounds = array<i64: 1, 256>}, {pipeline_mode = #tpu.pipeline_mode<synchronous>, transform_indices = @transform_5, window_bounds = array<i64: 256, 512>}, {pipeline_mode = #tpu.pipeline_mode<synchronous>, transform_indices = @transform_6, window_bounds = array<i64: 256, 512>}, {pipeline_mode = #tpu.pipeline_mode<synchronous>, transform_indices = @transform_7, window_bounds = array<i64: 1, 512>}, {pipeline_mode = #tpu.pipeline_mode<synchronous>, transform_indices = @transform_8, window_bounds = array<i64: 512, 128>}, {pipeline_mode = #tpu.pipeline_mode<synchronous>, transform_indices = @transform_9, window_bounds = array<i64: 1, 128>}, {transform_indices = @transform_10, window_bounds = array<i64: 8, 128>}]} {
    %c0 = arith.constant 0 : index
    %c0_0 = arith.constant 0 : index
    %c0_1 = arith.constant 0 : index
    %0 = vector.load %arg1[%c0, %c0_0, %c0_1] : memref<8x32x8xbf16, #tpu.memory_space<vmem>>, vector<8x32x8xbf16>
    %1 = vector.shape_cast %0 : vector<8x32x8xbf16> to vector<256x8xbf16>
    %c0_2 = arith.constant 0 : index
    %c0_3 = arith.constant 0 : index
    %2 = vector.load %arg2[%c0_2, %c0_3] : memref<8x128xbf16, #tpu.memory_space<vmem>>, vector<8x128xbf16>
    %cst = arith.constant dense<0.000000e+00> : vector<256x128xf32>
    %3 = tpu.matmul %1, %2, %cst {dimension_numbers = #tpu.dot_dimension_numbers<[1], [0], [0], [1], [0, 0, 1, 1], [], []>} : vector<256x8xbf16>, vector<8x128xbf16>, vector<256x128xf32> -> vector<256x128xf32>
    %c0_4 = arith.constant 0 : index
    %c0_5 = arith.constant 0 : index
    %4 = vector.load %arg3[%c0_4, %c0_5] : memref<1x128xf32, #tpu.memory_space<vmem>>, vector<1x128xf32>
    %5 = vector.broadcast %4 : vector<1x128xf32> to vector<256x128xf32>
    %6 = arith.addf %3, %5 : vector<256x128xf32>
    %cst_6 = arith.constant 0.000000e+00 : f32
    %7 = vector.broadcast %cst_6 : f32 to vector<256x128xf32>
    %8 = arith.maximumf %6, %7 : vector<256x128xf32>
    %9 = arith.truncf %8 : vector<256x128xf32> to vector<256x128xbf16>
    %c0_7 = arith.constant 0 : index
    %c0_8 = arith.constant 0 : index
    %10 = vector.load %arg4[%c0_7, %c0_8] : memref<128x256xbf16, #tpu.memory_space<vmem>>, vector<128x256xbf16>
    %cst_9 = arith.constant dense<0.000000e+00> : vector<256x256xf32>
    %11 = tpu.matmul %9, %10, %cst_9 {dimension_numbers = #tpu.dot_dimension_numbers<[1], [0], [0], [1], [0, 0, 1, 1], [], []>} : vector<256x128xbf16>, vector<128x256xbf16>, vector<256x256xf32> -> vector<256x256xf32>
    %c0_10 = arith.constant 0 : index
    %c0_11 = arith.constant 0 : index
    %12 = vector.load %arg5[%c0_10, %c0_11] : memref<1x256xf32, #tpu.memory_space<vmem>>, vector<1x256xf32>
    %13 = vector.broadcast %12 : vector<1x256xf32> to vector<256x256xf32>
    %14 = arith.addf %11, %13 : vector<256x256xf32>
    %15 = vector.shape_cast %14 : vector<256x256xf32> to vector<8x32x256xf32>
    %cst_12 = arith.constant dense<0xFF800000> : vector<8x256xf32>
    %16 = vector.multi_reduction <maximumf>, %15, %cst_12 [1] : vector<8x32x256xf32> to vector<8x256xf32>
    %17 = arith.truncf %16 : vector<8x256xf32> to vector<8x256xbf16>
    %c0_13 = arith.constant 0 : index
    %c0_14 = arith.constant 0 : index
    %18 = vector.load %arg7[%c0_13, %c0_14] : memref<256x512xbf16, #tpu.memory_space<vmem>>, vector<256x512xbf16>
    %cst_15 = arith.constant dense<0.000000e+00> : vector<8x512xf32>
    %19 = tpu.matmul %17, %18, %cst_15 {dimension_numbers = #tpu.dot_dimension_numbers<[1], [0], [0], [1], [0, 0, 1, 1], [], []>} : vector<8x256xbf16>, vector<256x512xbf16>, vector<8x512xf32> -> vector<8x512xf32>
    %c0_16 = arith.constant 0 : index
    %c0_17 = arith.constant 0 : index
    %20 = vector.load %arg8[%c0_16, %c0_17] : memref<1x512xf32, #tpu.memory_space<vmem>>, vector<1x512xf32>
    %21 = vector.broadcast %20 : vector<1x512xf32> to vector<8x512xf32>
    %22 = arith.addf %19, %21 : vector<8x512xf32>
    %23 = arith.truncf %14 : vector<256x256xf32> to vector<256x256xbf16>
    %c0_18 = arith.constant 0 : index
    %c0_19 = arith.constant 0 : index
    %24 = vector.load %arg6[%c0_18, %c0_19] : memref<256x512xbf16, #tpu.memory_space<vmem>>, vector<256x512xbf16>
    %cst_20 = arith.constant dense<0.000000e+00> : vector<256x512xf32>
    %25 = tpu.matmul %23, %24, %cst_20 {dimension_numbers = #tpu.dot_dimension_numbers<[1], [0], [0], [1], [0, 0, 1, 1], [], []>} : vector<256x256xbf16>, vector<256x512xbf16>, vector<256x512xf32> -> vector<256x512xf32>
    %26 = vector.shape_cast %25 : vector<256x512xf32> to vector<8x32x512xf32>
    %27 = vector.shape_cast %22 : vector<8x512xf32> to vector<8x1x512xf32>
    %28 = vector.broadcast %27 : vector<8x1x512xf32> to vector<8x32x512xf32>
    %29 = arith.addf %26, %28 : vector<8x32x512xf32>
    %cst_21 = arith.constant 0.000000e+00 : f32
    %30 = vector.broadcast %cst_21 : f32 to vector<8x32x512xf32>
    %31 = arith.maximumf %29, %30 : vector<8x32x512xf32>
    %32 = vector.shape_cast %31 : vector<8x32x512xf32> to vector<256x512xf32>
    %33 = arith.truncf %32 : vector<256x512xf32> to vector<256x512xbf16>
    %c0_22 = arith.constant 0 : index
    %c0_23 = arith.constant 0 : index
    %34 = vector.load %arg9[%c0_22, %c0_23] : memref<512x128xbf16, #tpu.memory_space<vmem>>, vector<512x128xbf16>
    %cst_24 = arith.constant dense<0.000000e+00> : vector<256x128xf32>
    %35 = tpu.matmul %33, %34, %cst_24 {dimension_numbers = #tpu.dot_dimension_numbers<[1], [0], [0], [1], [0, 0, 1, 1], [], []>} : vector<256x512xbf16>, vector<512x128xbf16>, vector<256x128xf32> -> vector<256x128xf32>
    %c0_25 = arith.constant 0 : index
    %c0_26 = arith.constant 0 : index
    %36 = vector.load %arg10[%c0_25, %c0_26] : memref<1x128xf32, #tpu.memory_space<vmem>>, vector<1x128xf32>
    %37 = vector.broadcast %36 : vector<1x128xf32> to vector<256x128xf32>
    %38 = arith.addf %35, %37 : vector<256x128xf32>
    %39 = vector.shape_cast %38 : vector<256x128xf32> to vector<8x32x128xf32>
    %cst_27 = arith.constant dense<0xFF800000> : vector<8x128xf32>
    %40 = vector.multi_reduction <maximumf>, %39, %cst_27 [1] : vector<8x32x128xf32> to vector<8x128xf32>
    %c0_28 = arith.constant 0 : index
    %c0_29 = arith.constant 0 : index
    %41 = vector.load %arg11[%c0_28, %c0_29] : memref<8x128xf32, #tpu.memory_space<vmem>>, vector<8x128xf32>
    tpu.vector_store %arg11[%c0_28, %c0_29], %40 {strides = array<i32>} : memref<8x128xf32, #tpu.memory_space<vmem>>, vector<8x128xf32>,
    return
  }
  func.func @transform_0(%arg0: i32) -> (i32, i32, i32) {
    %c0_i32 = arith.constant 0 : i32
    %c0_i32_0 = arith.constant 0 : i32
    %c0_i32_1 = arith.constant 0 : i32
    return %arg0, %c0_i32, %c0_i32_0 : i32, i32, i32
  }
  func.func @transform_1(%arg0: i32) -> (i32, i32) {
    %c0_i32 = arith.constant 0 : i32
    %c0_i32_0 = arith.constant 0 : i32
    %c0_i32_1 = arith.constant 0 : i32
    return %c0_i32, %c0_i32_0 : i32, i32
  }
  func.func @transform_2(%arg0: i32) -> (i32, i32) {
    %c0_i32 = arith.constant 0 : i32
    %c0_i32_0 = arith.constant 0 : i32
    %c0_i32_1 = arith.constant 0 : i32
    return %c0_i32, %c0_i32_0 : i32, i32
  }
  func.func @transform_3(%arg0: i32) -> (i32, i32) {
    %c0_i32 = arith.constant 0 : i32
    %c0_i32_0 = arith.constant 0 : i32
    %c0_i32_1 = arith.constant 0 : i32
    return %c0_i32, %c0_i32_0 : i32, i32
  }
  func.func @transform_4(%arg0: i32) -> (i32, i32) {
    %c0_i32 = arith.constant 0 : i32
    %c0_i32_0 = arith.constant 0 : i32
    %c0_i32_1 = arith.constant 0 : i32
    return %c0_i32, %c0_i32_0 : i32, i32
  }
  func.func @transform_5(%arg0: i32) -> (i32, i32) {
    %c0_i32 = arith.constant 0 : i32
    %c0_i32_0 = arith.constant 0 : i32
    %c0_i32_1 = arith.constant 0 : i32
    return %c0_i32, %c0_i32_0 : i32, i32
  }
  func.func @transform_6(%arg0: i32) -> (i32, i32) {
    %c0_i32 = arith.constant 0 : i32
    %c0_i32_0 = arith.constant 0 : i32
    %c0_i32_1 = arith.constant 0 : i32
    return %c0_i32, %c0_i32_0 : i32, i32
  }
  func.func @transform_7(%arg0: i32) -> (i32, i32) {
    %c0_i32 = arith.constant 0 : i32
    %c0_i32_0 = arith.constant 0 : i32
    %c0_i32_1 = arith.constant 0 : i32
    return %c0_i32, %c0_i32_0 : i32, i32
  }
  func.func @transform_8(%arg0: i32) -> (i32, i32) {
    %c0_i32 = arith.constant 0 : i32
    %c0_i32_0 = arith.constant 0 : i32
    %c0_i32_1 = arith.constant 0 : i32
    return %c0_i32, %c0_i32_0 : i32, i32
  }
  func.func @transform_9(%arg0: i32) -> (i32, i32) {
    %c0_i32 = arith.constant 0 : i32
    %c0_i32_0 = arith.constant 0 : i32
    %c0_i32_1 = arith.constant 0 : i32
    return %c0_i32, %c0_i32_0 : i32, i32
  }
  func.func @transform_10(%arg0: i32) -> (i32, i32) {
    %c0_i32 = arith.constant 0 : i32
    %c0_i32_0 = arith.constant 0 : i32
    return %arg0, %c0_i32 : i32, i32
  }
}

</mosaic_0001>

<bundles_post_ra>
// kernel: tpu_custom_call.1
= control target key start
LH: loop header
LB: loop body
LE: loop exit
PB: predicated region body
PF: predicated region fallthrough
CT: control target
= control target key end

     0   :  { %15 = vsyncpa [#allocation3], 0  ;;  %s6076_s0 = inlined_call_operand.vmem [shape: bf16[24,32,8], index: 0, kind: input, shape index: {}]   ;;  %s6077_s1 = inlined_call_operand.vmem [shape: bf16[8,128], index: 1, kind: input, shape index: {}]   ;;  %s6078_s2 = inlined_call_operand.vmem [shape: f32[1,128], index: 2, kind: input, shape index: {}]   ;;  %s6079_s3 = inlined_call_operand.vmem [shape: bf16[128,256], index: 3, kind: input, shape index: {}]   ;;  %s6080_s4 = inlined_call_operand.vmem [shape: f32[1,256], index: 4, kind: input, shape index: {}]   ;;  %s6081_s5 = inlined_call_operand.hbm [shape: bf16[256,512], index: 5, kind: input, shape index: {}]   ;;  %s6082_s6 = inlined_call_operand.hbm [shape: bf16[256,512], index: 6, kind: input, shape index: {}]   ;;  %s6083_s7 = inlined_call_operand.vmem [shape: f32[1,512], index: 7, kind: input, shape index: {}]   ;;  %s6084_s8 = inlined_call_operand.vmem [shape: bf16[512,128], index: 8, kind: input, shape index: {}]   ;;  %s6085_s9 = inlined_call_operand.vmem [shape: f32[1,128], index: 9, kind: input, shape index: {}]   ;;  %s6086_s10 = inlined_call_operand.hbm [shape: f32[24,128], index: 10, kind: output, shape index: {}]  }
   0x1   :  { %16 = vsyncpa [#allocation6], 0 }
   0x2   :  { %17 = vsyncpa [#allocation4], 0 }
   0x3   :  { %19 = vsyncpa [#allocation4 + $0x1], 0  ;;  %s4936_s13 = smov 0   ;;  %s4938_s14 = smov 0  }
   0x4   :  { %s4940_s15 = smov 0   ;;  %s4942_s16 = smov 0  }
   0x5 LB: > { %s4957_s17 = sadd.s32 4294967295, %s4872_s16   ;;  %s3905_s18 = sadd.s32 4294967294, %s4872_s16   ;;  %s4872_s16 = sphi %s4942_s16, %s6156_s16   ;;  %s4868_s15 = sphi %s4940_s15, %s6155_s15   ;;  %s4864_s14 = sphi %s4938_s14, %s6154_s14   ;;  %s4860_s13 = sphi %s4936_s13, %s6153_s13  }
   0x6   : > { %s4961_s19 = sadd.s32 1, %s4872_s16   ;;  %s247_s20 = sadd.s32 1, %s4868_s15 }
   0x7   : > { %s244_s21 = ssub.s32 %s4872_s16, %s4961_s19  ;;  %p257_p0 = scmp.ne.s32.totalorder %s4868_s15, %s4864_s14 }
   0x8   : > { %p245_p1 = scmp.eq.s32.totalorder %s244_s21, 0  ;;  %p258_p2 = scmp.eq.s32.totalorder %s4957_s17, 2 }
   0x9   : > { %p263_p3 = scmp.ne.s32.totalorder %s4864_s14, %s4860_s13  ;;  %p264_p4 = scmp.eq.s32.totalorder %s3905_s18, 2 }
   0xa   : > { %s4972_s22 = scalar_select %p245_p1, %s4868_s15, %s247_s20  }
   0xb   : > { %p4974_p5 = por %p258_p2, %p257_p0  ;;  %p4978_p6 = por %p264_p4, %p263_p3 }
   0xc   : > { %p3906_p7 = scmp.ge.s32.totalorder %s4872_s16, 1  ;;  %p271_p8 = scmp.lt.s32.totalorder %s4872_s16, 4 }
   0xd   : > { %s6102_s24 = scalar_select %p4978_p6, 1, 0 }
   0xe   : > { %p6087_p9 = scmp.eq.s32.totalorder %s4957_s17, 0  ;;  %p4985_p10 = pnand %p3906_p7, %p271_p8 }
   0xf   : > { %s4874_s26 = smov [#allocation2]   ;;  %s4875_s29 = smov [#allocation5]  }
  0x10   : > { %s295_s27 = sshll.u32 %s4874_s26, 4  ;;  %p4434_p11 = pneg %p4985_p10  ;;  %s296_s27 = int_to_ptr.vmem [resolvable:$true] %s295_s27 }
  0x11   : > { %s308_s30 = sshll.u32 %s4875_s29, 4  ;;  %s4763_s11 = scalar_lea.vmem %s296_s27, 8192  ;;  %s309_s30 = int_to_ptr.vmem [resolvable:$true] %s308_s30 }
  0x12   : > { %p4993_p12 = pnand %p6087_p9, %p4434_p11  ;;  %p4764_p0 = scmp.ne.s32.totalorder %s296_s27, %s4763_s11 }
  0x13   : > { %p4771_p3 = scmp.lt.s32.totalorder %s296_s27, %s296_s27  ;;  %p4772_p4 = scmp.lt.s32.totalorder %s4763_s11, %s4763_s11 }
  0x14   : > { %p4754_p13 = pneg %p4993_p12 }
  0x15   : > { %p4773_p7 = por %p4772_p4, %p4771_p3 }
  0x16   : > { %p4766_p1 = pnand %p4764_p0, %p4754_p13 }
  0x18   : > { %p4767_p2 = pneg %p4766_p1 }
  0x1a   : > { %p4774_p8 = pnand %p4773_p7, %p4767_p2 }
  0x1c   : > { %4777 = shalt.err (!%p4774_p8)
}
  0x1d   : > { %s4876_s12 = smov 256   ;;  %s4877_s18 = smov 16  }
  0x1e   : > { %4437 = dma.hbm_to_vmem [thread:$0]  (!%p4993_p12), %s6081_s5, 8192, %s296_s27, [#allocation3], %s4876_s12, %s4876_s12, %s4877_s18  }
  0x1f   : > { %s4789_s26 = scalar_lea.vmem %s309_s30, 8192  ;;  %p4797_p9 = scmp.lt.s32.totalorder %s309_s30, %s309_s30 }
  0x20   : > { %p4790_p11 = scmp.ne.s32.totalorder %s309_s30, %s4789_s26  ;;  %p4798_p6 = scmp.lt.s32.totalorder %s4789_s26, %s4789_s26 }
  0x22   : > { %p4792_p0 = pnand %p4790_p11, %p4754_p13  ;;  %p4799_p3 = por %p4798_p6, %p4797_p9 }
  0x24   : > { %p4793_p1 = pneg %p4792_p0 }
  0x26   : > { %p4800_p2 = pnand %p4799_p3, %p4793_p1 }
  0x28   : > { %4803 = shalt.err (!%p4800_p2)
}
  0x29   : > { %4440 = dma.hbm_to_vmem [thread:$0]  (!%p4993_p12), %s6082_s6, 8192, %s309_s30, [#allocation6], %s4876_s12, %s4876_s12, %s4877_s18  }
  0x2a   : > { %343 = sbr.rel (%p4985_p10) target bundleno = 1294 (0x50e), region = 60 }
  0x2f   : > { %p6105_p4 = scmp.eq.s32.totalorder %s4957_s17, 0 }
  0x31   : > { %4847 = dma.done.wait (%p6105_p4), [#allocation3], 8192   ;;  %p6106_p13 = pmov %p6105_p4 }
  0x32   : > { %p6107_p7 = pmov %p6105_p4 }
  0x33   : > { %4849 = vsyncadd (%p6106_p13), [#allocation3], 4294959104 }
  0x34   : > { %4851 = dma.done.wait (%p6107_p7), [#allocation6], 8192   ;;  %p6108_p6 = pmov %p6105_p4 }
  0x35   : > { %s3914_s27 = sshll.u32 %s4957_s17, 3  ;;  %vm563_vm0 = vcmask 1043456   ;;  %vm514_vm1 = vcmask 64512   ;;  %v426_v0 = vld [vmem:[%s6077_s1] sm:$0xf]  ;;  %v4878_v34 = vmov 0  }
  0x36   : > { %4853 = vsyncadd (%p6108_p6), [#allocation6], 4294959104  ;;  %p387_p9 = scmp.lt.s32.totalorder %s3914_s27, 23  ;;  %4423 = vmatprep.subr.msk.bf16.mxu0 %vm563_vm0, %v426_v0  ;;  %v565_v1 = vsel %vm563_vm0, %v426_v0, 0  ;;  %v4504_v8 = vld [vmem:[%s6079_s3 + $0x74] ss:$8 sps:$4 sm:$0xff]   ;;  %916 = vmatprep.mubr.bf16.mxu1 %v4878_v34 }
  0x37   : > { %4374 = vmatpush3.bf16.msra.mxu0 %v565_v1  ;;  %v4506_v9 = vld [vmem:[%s6079_s3 + $0x70] ss:$8 sps:$4 sm:$0xff]   ;;  %v4507_v11 = vld [vmem:[%s6079_s3 + $0x64] ss:$8 sps:$4 sm:$0xff]   ;;  %884 = vmatprep.subr.bf16.mxu1 %v4504_v8  ;;  %v4509_v12 = vld [vmem:[%s6079_s3 + $0x60] ss:$8 sps:$4 sm:$0xff]  }
  0x38   : > { %s6158_s27 = smov (!%p387_p9, %s3914_s27), 23  ;;  %885 = vmatpush1.bf16.msra.mxu1 %v4506_v9  ;;  %v4510_v13 = vld [vmem:[%s6079_s3 + $0x54] ss:$8 sps:$4 sm:$0xff]   ;;  %v4512_v14 = vld [vmem:[%s6079_s3 + $0x50] ss:$8 sps:$4 sm:$0xff]   ;;  %vm1355_vm2 = vcmask 1041409  }
  0x39   : > { %s4131_s28 = sshll.u32 %s6158_s27, 4  ;;  %886 = vmatprep.subr.bf16.mxu1 %v4507_v11  ;;  %v4513_v16 = vld [vmem:[%s6079_s3 + $0x44] ss:$8 sps:$4 sm:$0xff]   ;;  %v4515_v18 = vld [vmem:[%s6079_s3 + $0x40] ss:$8 sps:$4 sm:$0xff]   ;;  %vm1357_vm3 = vcmask 1042434  }
  0x3a   : > { %s5029_s12 = scalar_lea.vmem %s6076_s0, %s4131_s28  ;;  %v4516_v19 = vld [vmem:[%s6079_s3 + $0x34] ss:$8 sps:$4 sm:$0xff]   ;;  %v4518_v20 = vld [vmem:[%s6079_s3 + $0x30] ss:$8 sps:$4 sm:$0xff]   ;;  %v4519_v28 = vld [vmem:[%s6079_s3 + $0x24] ss:$8 sps:$4 sm:$0xff]  }
  0x3b   : > { %v4488_v2 = vld [vmem:[%s5029_s12] sm:$0xff]   ;;  %v4489_v3 = vld [vmem:[%s5029_s12 + $0x8] sm:$0xff]   ;;  %v4490_v4 = vld [vmem:[%s5029_s12 + $0x10] sm:$0xff]   ;;  %vm1359_vm4 = vcmask 1043459   ;;  %vm1361_vm5 = vcmask 1044484   ;;  %vm1363_vm6 = vcmask 1045509  }
  0x3c   : > { %4375 = vmatprep.mubr.msk.bf16.mxu0 %vm514_vm1, %v4488_v2  ;;  %v4491_v5 = vld [vmem:[%s5029_s12 + $0x18] sm:$0xff]   ;;  %v4492_v6 = vld [vmem:[%s5029_s12 + $0x20] sm:$0xff]   ;;  %v4493_v7 = vld [vmem:[%s5029_s12 + $0x28] sm:$0xff]   ;;  %887 = vmatpush1.bf16.msra.mxu1 %v4509_v12  ;;  %vm1365_vm7 = vcmask 1046534   ;;  %vm1367_vm8 = vcmask 1047559   ;;  %s383_s30 = sand.u32 1, %s4864_s14  }
  0x3d   : > { %4376 = vmatmul.mubr.msk.bf16.vlgmr.msra.gmra.mxu0 %vm514_vm1, %v4489_v3  ;;  %v4494_v10 = vld [vmem:[%s5029_s12 + $0x30] sm:$0xff]   ;;  %v4495_v15 = vld [vmem:[%s5029_s12 + $0x38] sm:$0xff]   ;;  %v4496_v17 = vld [vmem:[%s5029_s12 + $0x40] sm:$0xff]   ;;  %888 = vmatprep.subr.bf16.mxu1 %v4510_v13  ;;  %s4128_s18 = sshll.u32 %s4957_s17, 7  ;;  %s3811_s27 = scalar_lea.sflag [#allocation4], %s383_s30 }
  0x3e   : > { %4379 = vmatprep.mubr.msk.bf16.mxu0 %vm514_vm1, %v4490_v4  ;;  %v4497_v21 = vld [vmem:[%s5029_s12 + $0x48] sm:$0xff]   ;;  %v4498_v22 = vld [vmem:[%s5029_s12 + $0x50] sm:$0xff]   ;;  %v4499_v23 = vld [vmem:[%s5029_s12 + $0x58] sm:$0xff]   ;;  %s6040_s11 = scalar_lea.hbm %s6086_s10, %s4128_s18  ;;  %s4880_s17 = smov [#allocation7]  }
  0x3f   : > { %v4500_v24 = vld [vmem:[%s5029_s12 + $0x60] sm:$0xff]   ;;  %v4501_v25 = vld [vmem:[%s5029_s12 + $0x68] sm:$0xff]   ;;  %v4502_v26 = vld [vmem:[%s5029_s12 + $0x70] sm:$0xff]   ;;  %s4808_s25 = sshll.u32 %s4880_s17, 4  ;;  %s4809_s25 = int_to_ptr.vmem [resolvable:$false] %s4808_s25 }
  0x40   : > { %889 = vmatpush1.bf16.msra.mxu1 %v4512_v14  ;;  %v4503_v27 = vld [vmem:[%s5029_s12 + $0x78] sm:$0xff]   ;;  %v4521_v29 = vld [vmem:[%s6079_s3 + $0x20] ss:$8 sps:$4 sm:$0xff]   ;;  %v4525_v32 = vld [vmem:[%s6079_s3 + $0x4] ss:$8 sps:$4 sm:$0xff]   ;;  %s3913_s12 = sshll.u32 %s383_s30, 3 }
  0x41   : > { %890 = vmatprep.subr.bf16.mxu1 %v4513_v16  ;;  %v4522_v30 = vld [vmem:[%s6079_s3 + $0x14] ss:$8 sps:$4 sm:$0xff]   ;;  %v4524_v31 = vld [vmem:[%s6079_s3 + $0x10] ss:$8 sps:$4 sm:$0xff]   ;;  %v4527_v33 = vld [vmem:[%s6079_s3] ss:$8 sps:$4 sm:$0xff]  }
  0x42   : > { %v5118_v37 = vld [vmem:[%s6078_s2] ss:$0 sm:$0xff]  ;;  %v4530_v40 = vld [vmem:[#allocation2 + $0xe4] ss:$16 sps:$4 sm:$0xff]   ;;  %s385_s20 = scalar_lea.vmem [#allocation7], %s3913_s12  ;;  %s4810_s12 = scalar_lea.vmem %s4809_s25, 256 }
  0x43   : > { %v4528_v47 = vld [vmem:[#allocation2 + $0xe0] ss:$16 sps:$4 sm:$0xff]   ;;  %v4533_v50 = vld [vmem:[#allocation2 + $0xc4] ss:$16 sps:$4 sm:$0xff]   ;;  %s3824_s21 = sshll.u32 %s385_s20, 4  ;;  %s3825_s21 = int_to_ptr.vmem [resolvable:$true] %s3824_s21 }
  0x44   : > { %891 = vmatpush1.bf16.msra.mxu1 %v4515_v18  ;;  %v4531_v53 = vld [vmem:[#allocation2 + $0xc0] ss:$16 sps:$4 sm:$0xff]   ;;  %v4536_v55 = vld [vmem:[#allocation2 + $0xa4] ss:$16 sps:$4 sm:$0xff]   ;;  %s4804_s28 = scalar_lea.vmem %s3825_s21, 128  ;;  %p4811_p11 = scmp.lt.s32.totalorder %s3825_s21, %s4809_s25 }
  0x45   : > { %4380 = vmatmul.mubr.msk.bf16.gmra.mxu0 %vm514_vm1, %v4491_v5  ;;  %892 = vmatprep.subr.bf16.mxu1 %v4516_v19  ;;  %v4534_v58 = vld [vmem:[#allocation2 + $0xa0] ss:$16 sps:$4 sm:$0xff]   ;;  %v4539_v62 = vld [vmem:[#allocation2 + $0x84] ss:$16 sps:$4 sm:$0xff]   ;;  %p4805_p10 = scmp.ne.s32.totalorder %s3825_s21, %s4804_s28  ;;  %p4812_p0 = scmp.lt.s32.totalorder %s4810_s12, %s4804_s28 }
  0x46   : > { %4383 = vmatprep.mubr.msk.bf16.mxu0 %vm514_vm1, %v4492_v6  ;;  %v4537_v0 = vld [vmem:[#allocation2 + $0x80] ss:$16 sps:$4 sm:$0xff]   ;;  %v4542_v3 = vld [vmem:[#allocation2 + $0x64] ss:$16 sps:$4 sm:$0xff]  }
  0x47   : > { %v4540_v5 = vld [vmem:[#allocation2 + $0x60] ss:$16 sps:$4 sm:$0xff]   ;;  %v4545_v9 = vld [vmem:[#allocation2 + $0x44] ss:$16 sps:$4 sm:$0xff]   ;;  %p4806_p12 = pnand %p4805_p10, %p4974_p5  ;;  %p4813_p1 = por %p4812_p0, %p4811_p11 }
  0x48   : > { %893 = vmatpush1.bf16.msra.mxu1 %v4518_v20  ;;  %v4543_v11 = vld [vmem:[#allocation2 + $0x40] ss:$16 sps:$4 sm:$0xff]   ;;  %v4548_v14 = vld [vmem:[#allocation2 + $0x24] ss:$16 sps:$4 sm:$0xff]  }
  0x49   : > { %894 = vmatprep.subr.bf16.mxu1 %v4519_v28  ;;  %v4546_v16 = vld [vmem:[#allocation2 + $0x20] ss:$16 sps:$4 sm:$0xff]   ;;  %v4551_v20 = vld [vmem:[#allocation2 + $0x4] ss:$16 sps:$4 sm:$0xff]   ;;  %p4807_p8 = pneg %p4806_p12 }
  0x4b   : > { %p4814_p3 = pnand %p4813_p1, %p4807_p8 }
  0x4c   : > { %895 = vmatpush1.bf16.msra.mxu1 %v4521_v29 }
  0x4d   : > { %4384 = vmatmul.mubr.msk.bf16.gmra.mxu0 %vm514_vm1, %v4493_v7  ;;  %896 = vmatprep.subr.bf16.mxu1 %v4522_v30 }
  0x4e   : > { %4387 = vmatprep.mubr.msk.bf16.mxu0 %vm514_vm1, %v4494_v10 }
  0x50   : > { %897 = vmatpush1.bf16.msra.mxu1 %v4524_v31  ;;  %v4557_v31 = vld [vmem:[#allocation2 + $0x1c4] ss:$16 sps:$4 sm:$0xff]  }
  0x51   : > { %898 = vmatprep.subr.bf16.mxu1 %v4525_v32 }
  0x54   : > { %899 = vmatpush1.bf16.msra.mxu1 %v4527_v33  ;;  %v4555_v33 = vld [vmem:[#allocation2 + $0x1c0] ss:$16 sps:$4 sm:$0xff]  }
  0x55   : > { %4388 = vmatmul.mubr.msk.bf16.gmra.mxu0 %vm514_vm1, %v4495_v15  ;;  %2198 = vmatprep.subr.bf16.mxu1 %v4530_v40  ;;  %v4558_v40 = vld [vmem:[#allocation2 + $0x1a0] ss:$16 sps:$4 sm:$0xff]  }
  0x56   : > { %4391 = vmatprep.mubr.msk.bf16.mxu0 %vm514_vm1, %v4496_v17 }
  0x5d   : > { %4392 = vmatmul.mubr.msk.bf16.gmra.mxu0 %vm514_vm1, %v4497_v21 }
  0x5e   : > { %4395 = vmatprep.mubr.msk.bf16.mxu0 %vm514_vm1, %v4498_v22  ;;  %v4549_v22 = vld [vmem:[#allocation2] ss:$16 sps:$4 sm:$0xff]  }
  0x65   : > { %4396 = vmatmul.mubr.msk.bf16.gmra.mxu0 %vm514_vm1, %v4499_v23 }
  0x66   : > { %4399 = vmatprep.mubr.msk.bf16.mxu0 %vm514_vm1, %v4500_v24 }
  0x6d   : > { %4400 = vmatmul.mubr.msk.bf16.gmra.mxu0 %vm514_vm1, %v4501_v25  ;;  %v4554_v25 = vld [vmem:[#allocation2 + $0x1e4] ss:$16 sps:$4 sm:$0xff]  }
  0x6e   : > { %4403 = vmatprep.mubr.msk.bf16.mxu0 %vm514_vm1, %v4502_v26 }
  0x75   : > { %4404 = vmatmul.mubr.msk.bf16.gmra.mxu0 %vm514_vm1, %v4503_v27  ;;  %v4552_v27 = vld [vmem:[#allocation2 + $0x1e0] ss:$16 sps:$4 sm:$0xff]  }
  0xfd   : > { %v4377_v35 = vpop.f32.mrf.mxu0 }
  0xfe   : > { %v610_v52 = vadd.f32 %v4377_v35, %v5118_v37 }
  0xff   : > { %v601_v36 = vpop.f32.mrf.mxu0 }
 0x100   : > { %v602_v39 = vadd.f32 %v5118_v37, %v601_v36  ;;  %v730_v57 = vmax.f32 %v610_v52, 0.0 }
 0x101   : > { %v4378_v38 = vpop.f32.mrf.mxu0 }
 0x102   : > { %v728_v44 = vmax.f32 %v602_v39, 0.0  ;;  %v613_v48 = vadd.f32 %v4378_v38, %v5118_v37  ;;  %v4560_v38 = vld [vmem:[#allocation2 + $0x1a4] ss:$16 sps:$4 sm:$0xff]  }
 0x103   : > { %v604_v41 = vpop.f32.mrf.mxu0 }
 0x104   : > { %v605_v42 = vadd.f32 %v5118_v37, %v604_v41  ;;  %v731_v54 = vmax.f32 %v613_v48, 0.0 }
 0x105   : > { %v4381_v43 = vpop.f32.mrf.mxu0 }
 0x106   : > { %v729_v45 = vmax.f32 %v605_v42, 0.0  ;;  %v761_v59 = vpack.c.bf16 %v731_v54, %v730_v57  ;;  %v626_v6 = vadd.f32 %v4381_v43, %v5118_v37 }
 0x107   : > { %v617_v46 = vpop.f32.mrf.mxu0 }
 0x108   : > { %v760_v49 = vpack.c.bf16 %v729_v45, %v728_v44  ;;  %v618_v60 = vadd.f32 %v5118_v37, %v617_v46  ;;  %v734_v12 = vmax.f32 %v626_v6, 0.0  ;;  %v4563_v44 = vld [vmem:[#allocation2 + $0x184] ss:$16 sps:$4 sm:$0xff]   ;;  %v4561_v46 = vld [vmem:[#allocation2 + $0x180] ss:$16 sps:$4 sm:$0xff]  }
 0x109   : > { %v4382_v51 = vpop.f32.mrf.mxu0 }
 0x10a   : > { %917 = vmatmul.mubr.bf16.vlgmr.msra.gmra.mxu1 %v760_v49  ;;  %v732_v1 = vmax.f32 %v618_v60, 0.0  ;;  %v629_v7 = vadd.f32 %v4382_v51, %v5118_v37  ;;  %v4566_v49 = vld [vmem:[#allocation2 + $0x164] ss:$16 sps:$4 sm:$0xff]   ;;  %v4564_v51 = vld [vmem:[#allocation2 + $0x160] ss:$16 sps:$4 sm:$0xff]  }
 0x10b   : > { %926 = vmatprep.mubr.bf16.mxu1 %v4878_v34  ;;  %2199 = vmatpush1.bf16.msra.mxu1 %v4528_v47  ;;  %v620_v56 = vpop.f32.mrf.mxu0 }
 0x10c   : > { %2200 = vmatprep.subr.bf16.mxu1 %v4533_v50  ;;  %v621_v61 = vadd.f32 %v5118_v37, %v620_v56  ;;  %v735_v13 = vmax.f32 %v629_v7, 0.0  ;;  %v4567_v7 = vld [vmem:[#allocation2 + $0x140] ss:$16 sps:$4 sm:$0xff]  }
 0x10d   : > { %v4385_v63 = vpop.f32.mrf.mxu0 }
 0x10e   : > { %v733_v2 = vmax.f32 %v621_v61, 0.0  ;;  %v763_v17 = vpack.c.bf16 %v735_v13, %v734_v12  ;;  %v642_v28 = vadd.f32 %v4385_v63, %v5118_v37  ;;  %v4570_v12 = vld [vmem:[#allocation2 + $0x120] ss:$16 sps:$4 sm:$0xff]  }
 0x10f   : > { %2201 = vmatpush1.bf16.msra.mxu1 %v4531_v53  ;;  %v633_v4 = vpop.f32.mrf.mxu0 }
 0x110   : > { %2202 = vmatprep.subr.bf16.mxu1 %v4536_v55  ;;  %v762_v8 = vpack.c.bf16 %v733_v2, %v732_v1  ;;  %v634_v18 = vadd.f32 %v5118_v37, %v633_v4  ;;  %v738_v35 = vmax.f32 %v642_v28, 0.0 }
 0x111   : > { %v4386_v10 = vpop.f32.mrf.mxu0 }
 0x112   : > { %927 = vmatmul.mubr.bf16.gmra.mxu1 %v761_v59  ;;  %v736_v23 = vmax.f32 %v634_v18, 0.0  ;;  %v645_v29 = vadd.f32 %v4386_v10, %v5118_v37  ;;  %v4572_v10 = vld [vmem:[#allocation2 + $0x124] ss:$16 sps:$4 sm:$0xff]   ;;  %v4573_v18 = vld [vmem:[#allocation2 + $0x100] ss:$16 sps:$4 sm:$0xff]  }
 0x113   : > { %936 = vmatprep.mubr.bf16.mxu1 %v4878_v34  ;;  %2203 = vmatpush1.bf16.msra.mxu1 %v4534_v58  ;;  %v636_v15 = vpop.f32.mrf.mxu0 }
 0x114   : > { %2204 = vmatprep.subr.bf16.mxu1 %v4539_v62  ;;  %v637_v19 = vadd.f32 %v5118_v37, %v636_v15  ;;  %v739_v36 = vmax.f32 %v645_v29, 0.0 }
 0x115   : > { %v4389_v21 = vpop.f32.mrf.mxu0 }
 0x116   : > { %v737_v24 = vmax.f32 %v637_v19, 0.0  ;;  %v765_v41 = vpack.c.bf16 %v739_v36, %v738_v35  ;;  %v658_v52 = vadd.f32 %v4389_v21, %v5118_v37 }
 0x117   : > { %2205 = vmatpush1.bf16.msra.mxu1 %v4537_v0  ;;  %v649_v26 = vpop.f32.mrf.mxu0 }
 0x118   : > { %2206 = vmatprep.subr.bf16.mxu1 %v4542_v3  ;;  %v764_v30 = vpack.c.bf16 %v737_v24, %v736_v23  ;;  %v650_v42 = vadd.f32 %v5118_v37, %v649_v26  ;;  %v742_v56 = vmax.f32 %v658_v52, 0.0 }
 0x119   : > { %v4390_v32 = vpop.f32.mrf.mxu0 }
 0x11a   : > { %937 = vmatmul.mubr.bf16.gmra.mxu1 %v762_v8  ;;  %v740_v47 = vmax.f32 %v650_v42, 0.0  ;;  %v661_v53 = vadd.f32 %v4390_v32, %v5118_v37 }
 0x11b   : > { %946 = vmatprep.mubr.bf16.mxu1 %v4878_v34  ;;  %2207 = vmatpush1.bf16.msra.mxu1 %v4540_v5  ;;  %v652_v39 = vpop.f32.mrf.mxu0  ;;  %v4569_v5 = vld [vmem:[#allocation2 + $0x144] ss:$16 sps:$4 sm:$0xff]  }
 0x11c   : > { %2208 = vmatprep.subr.bf16.mxu1 %v4545_v9  ;;  %v653_v43 = vadd.f32 %v5118_v37, %v652_v39  ;;  %v743_v57 = vmax.f32 %v661_v53, 0.0 }
 0x11d   : > { %v4393_v45 = vpop.f32.mrf.mxu0 }
 0x11e   : > { %v741_v48 = vmax.f32 %v653_v43, 0.0  ;;  %v767_v59 = vpack.c.bf16 %v743_v57, %v742_v56  ;;  %v674_v2 = vadd.f32 %v4393_v45, %v5118_v37  ;;  %v4578_v56 = vld [vmem:[#allocation5 + $0xe4] ss:$16 sps:$4 sm:$0xff]   ;;  %v4576_v57 = vld [vmem:[#allocation5 + $0xe0] ss:$16 sps:$4 sm:$0xff]  }
 0x11f   : > { %2209 = vmatpush1.bf16.msra.mxu1 %v4543_v11  ;;  %v665_v50 = vpop.f32.mrf.mxu0  ;;  %1700 = vmatprep.subr.bf16.mxu0 %v4578_v56 }
 0x120   : > { %2210 = vmatprep.subr.bf16.mxu1 %v4548_v14  ;;  %v766_v54 = vpack.c.bf16 %v741_v48, %v740_v47  ;;  %v666_v60 = vadd.f32 %v5118_v37, %v665_v50  ;;  %v746_v8 = vmax.f32 %v674_v2, 0.0  ;;  %1701 = vmatpush1.bf16.msra.mxu0 %v4576_v57  ;;  %v4596_v2 = vld [vmem:[#allocation5 + $0x24] ss:$16 sps:$4 sm:$0xff]  }
 0x121   : > { %v4394_v55 = vpop.f32.mrf.mxu0 }
 0x122   : > { %947 = vmatmul.mubr.bf16.gmra.mxu1 %v763_v17  ;;  %v744_v63 = vmax.f32 %v666_v60, 0.0  ;;  %v677_v3 = vadd.f32 %v4394_v55, %v5118_v37  ;;  %v4584_v60 = vld [vmem:[#allocation5 + $0xa4] ss:$16 sps:$4 sm:$0xff]  }
 0x123   : > { %956 = vmatprep.mubr.bf16.mxu1 %v4878_v34  ;;  %2211 = vmatpush1.bf16.msra.mxu1 %v4546_v16  ;;  %v668_v58 = vpop.f32.mrf.mxu0  ;;  %v4575_v16 = vld [vmem:[#allocation2 + $0x104] ss:$16 sps:$4 sm:$0xff]  }
 0x124   : > { %2212 = vmatprep.subr.bf16.mxu1 %v4551_v20  ;;  %v669_v61 = vadd.f32 %v5118_v37, %v668_v58  ;;  %v747_v9 = vmax.f32 %v677_v3, 0.0  ;;  %v4581_v58 = vld [vmem:[#allocation5 + $0xc4] ss:$16 sps:$4 sm:$0xff]   ;;  %v4594_v3 = vld [vmem:[#allocation5 + $0x20] ss:$16 sps:$4 sm:$0xff]  }
 0x125   : > { %v4397_v62 = vpop.f32.mrf.mxu0  ;;  %1702 = vmatprep.subr.bf16.mxu0 %v4581_v58 }
 0x126   : > { %v745_v0 = vmax.f32 %v669_v61, 0.0  ;;  %v769_v13 = vpack.c.bf16 %v747_v9, %v746_v8  ;;  %v4582_v61 = vld [vmem:[#allocation5 + $0xa0] ss:$16 sps:$4 sm:$0xff]  }
 0x127   : > { %2213 = vmatpush1.bf16.msra.mxu1 %v4549_v22  ;;  %v681_v1 = vpop.f32.mrf.mxu0  ;;  %v690_v22 = vadd.f32 %v4397_v62, %v5118_v37  ;;  %v4585_v62 = vld [vmem:[#allocation5 + $0x80] ss:$16 sps:$4 sm:$0xff]  }
 0x128   : > { %2214 = vmatprep.subr.bf16.mxu1 %v4554_v25  ;;  %v768_v4 = vpack.c.bf16 %v745_v0, %v744_v63  ;;  %v682_v14 = vadd.f32 %v5118_v37, %v681_v1  ;;  %v4588_v63 = vld [vmem:[#allocation5 + $0x60] ss:$16 sps:$4 sm:$0xff]   ;;  %v4593_v0 = vld [vmem:[#allocation5 + $0x44] ss:$16 sps:$4 sm:$0xff]  }
 0x129   : > { %v4398_v6 = vpop.f32.mrf.mxu0  ;;  %v750_v26 = vmax.f32 %v690_v22, 0.0  ;;  %v4591_v1 = vld [vmem:[#allocation5 + $0x40] ss:$16 sps:$4 sm:$0xff]  }
 0x12a   : > { %957 = vmatmul.mubr.bf16.gmra.mxu1 %v764_v30  ;;  %v748_v19 = vmax.f32 %v682_v14, 0.0  ;;  %v693_v23 = vadd.f32 %v4398_v6, %v5118_v37  ;;  %v794_v6 = vlaneseq  ;;  %v4600_v8 = vld [vmem:[#allocation5 + $0x1e0] ss:$16 sps:$4 sm:$0xff]  }
 0x12b   : > { %966 = vmatprep.mubr.bf16.mxu1 %v4878_v34  ;;  %2215 = vmatpush2.bf16.msra.mxu1 %v4552_v27  ;;  %v684_v11 = vpop.f32.mrf.mxu0  ;;  %v792_v14 = vld [vmem:[%s6080_s4] sm:$0x3] }
 0x12c   : > { %2216 = vmatprep.subr.bf16.mxu1 %v4557_v31  ;;  %v685_v15 = vadd.f32 %v5118_v37, %v684_v11  ;;  %v751_v27 = vmax.f32 %v693_v23, 0.0  ;;  %v5167_v9 = vshrl.u32 %v794_v6, 7  ;;  %v4603_v11 = vld [vmem:[#allocation5 + $0x1c0] ss:$16 sps:$4 sm:$0xff]  }
 0x12d   : > { %v4401_v17 = vpop.f32.mrf.mxu0 }
 0x12e   : > { %v749_v20 = vmax.f32 %v685_v15, 0.0  ;;  %v771_v29 = vpack.c.bf16 %v751_v27, %v750_v26  ;;  %6109 = vst [vmem:[#allocation11_spill] sm:$0xff] %v5167_v9  ;;  %v4606_v15 = vld [vmem:[#allocation5 + $0x1a0] ss:$16 sps:$4 sm:$0xff]   ;;  %v4614_v26 = vld [vmem:[#allocation5 + $0x164] ss:$16 sps:$4 sm:$0xff]  }
 0x12f   : > { %2217 = vmatpush2.bf16.msra.mxu1 %v4555_v33  ;;  %v697_v21 = vpop.f32.mrf.mxu0 }
 0x130   : > { %2218 = vmatprep.subr.bf16.mxu1 %v4560_v38  ;;  %v770_v24 = vpack.c.bf16 %v749_v20, %v748_v19  ;;  %v698_v30 = vadd.f32 %v5118_v37, %v697_v21  ;;  %v706_v38 = vadd.f32 %v4401_v17, %v5118_v37  ;;  %v4611_v19 = vld [vmem:[#allocation5 + $0x184] ss:$16 sps:$4 sm:$0xff]   ;;  %v4609_v21 = vld [vmem:[#allocation5 + $0x180] ss:$16 sps:$4 sm:$0xff]  }
 0x131   : > { %v4402_v25 = vpop.f32.mrf.mxu0 }
 0x132   : > { %967 = vmatmul.mubr.bf16.gmra.mxu1 %v765_v41  ;;  %v752_v33 = vmax.f32 %v698_v30, 0.0  ;;  %v709_v39 = vadd.f32 %v4402_v25, %v5118_v37  ;;  %v754_v42 = vmax.f32 %v706_v38, 0.0  ;;  %v4617_v38 = vld [vmem:[#allocation5 + $0x144] ss:$16 sps:$4 sm:$0xff]  }
 0x133   : > { %976 = vmatprep.mubr.bf16.mxu1 %v4878_v34  ;;  %2219 = vmatpush2.bf16.msra.mxu1 %v4558_v40  ;;  %v700_v28 = vpop.f32.mrf.mxu0 }
 0x134   : > { %2220 = vmatprep.subr.bf16.mxu1 %v4563_v44  ;;  %v701_v31 = vadd.f32 %v5118_v37, %v700_v28  ;;  %v755_v43 = vmax.f32 %v709_v39, 0.0  ;;  %v4612_v28 = vld [vmem:[#allocation5 + $0x160] ss:$16 sps:$4 sm:$0xff]  }
 0x135   : > { %v4405_v32 = vpop.f32.mrf.mxu0 }
 0x136   : > { %v753_v35 = vmax.f32 %v701_v31, 0.0  ;;  %v773_v45 = vpack.c.bf16 %v755_v43, %v754_v42  ;;  %v722_v50 = vadd.f32 %v4405_v32, %v5118_v37 }
 0x137   : > { %2221 = vmatpush2.bf16.msra.mxu1 %v4561_v46  ;;  %v713_v36 = vpop.f32.mrf.mxu0 }
 0x138   : > { %2222 = vmatprep.subr.bf16.mxu1 %v4566_v49  ;;  %v772_v40 = vpack.c.bf16 %v753_v35, %v752_v33  ;;  %v714_v46 = vadd.f32 %v5118_v37, %v713_v36  ;;  %v758_v53 = vmax.f32 %v722_v50, 0.0 }
 0x139   : > { %v4406_v41 = vpop.f32.mrf.mxu0 }
 0x13a   : > { %977 = vmatmul.mubr.bf16.gmra.mxu1 %v766_v54  ;;  %v756_v48 = vmax.f32 %v714_v46, 0.0 }
 0x13b   : > { %986 = vmatprep.mubr.bf16.mxu1 %v4878_v34  ;;  %2223 = vmatpush2.bf16.msra.mxu1 %v4564_v51  ;;  %v716_v44 = vpop.f32.mrf.mxu0  ;;  %v725_v51 = vadd.f32 %v4406_v41, %v5118_v37  ;;  %v4615_v41 = vld [vmem:[#allocation5 + $0x140] ss:$16 sps:$4 sm:$0xff]  }
 0x13c   : > { %2224 = vmatprep.subr.bf16.mxu1 %v4569_v5  ;;  %v717_v47 = vadd.f32 %v5118_v37, %v716_v44  ;;  %v4587_v37 = vld [vmem:[#allocation5 + $0x84] ss:$16 sps:$4 sm:$0xff]   ;;  %v4597_v5 = vld [vmem:[#allocation5] ss:$16 sps:$4 sm:$0xff]  }
 0x13d   : > { %v759_v54 = vmax.f32 %v725_v51, 0.0 }
 0x13e   : > { %v757_v49 = vmax.f32 %v717_v47, 0.0  ;;  %v4620_v47 = vld [vmem:[#allocation5 + $0x124] ss:$16 sps:$4 sm:$0xff]  }
 0x13f   : > { %2225 = vmatpush2.bf16.msra.mxu1 %v4567_v7  ;;  %v775_v55 = vpack.c.bf16 %v759_v54, %v758_v53  ;;  %v4602_v7 = vld [vmem:[#allocation5 + $0x1e4] ss:$16 sps:$4 sm:$0xff]   ;;  %v4621_v54 = vld [vmem:[#allocation5 + $0x100] ss:$16 sps:$4 sm:$0xff]  }
 0x140   : > { %2226 = vmatprep.subr.bf16.mxu1 %v4572_v10  ;;  %v774_v52 = vpack.c.bf16 %v757_v49, %v756_v48  ;;  %v4605_v10 = vld [vmem:[#allocation5 + $0x1c4] ss:$16 sps:$4 sm:$0xff]   ;;  %v4618_v49 = vld [vmem:[#allocation5 + $0x120] ss:$16 sps:$4 sm:$0xff]  }
 0x142   : > { %987 = vmatmul.mubr.bf16.gmra.mxu1 %v767_v59  ;;  %v4579_v59 = vld [vmem:[#allocation5 + $0xc0] ss:$16 sps:$4 sm:$0xff]  }
 0x143   : > { %996 = vmatprep.mubr.bf16.mxu1 %v4878_v34  ;;  %2227 = vmatpush2.bf16.msra.mxu1 %v4570_v12  ;;  %v5170_v12 = vsub.s32 0, %v5167_v9 }
 0x144   : > { %2228 = vmatprep.subr.bf16.mxu1 %v4575_v16  ;;  %1703 = vmatpush1.bf16.msra.mxu0 %v4579_v59  ;;  %v5176_v16 = vsub.s32 1, %v5167_v9 }
 0x145   : > { %1704 = vmatprep.subr.bf16.mxu0 %v4584_v60 }
 0x146   : > { %v5182_v22 = vrot.slane %v792_v14, %v5176_v16 }
 0x147   : > { %2229 = vmatpush2.bf16.msra.mxu1 %v4573_v18  ;;  %v5179_v18 = vrot.slane %v792_v14, %v5170_v12 }
 0x148   : > { %1705 = vmatpush1.bf16.msra.mxu0 %v4582_v61 }
 0x149   : > { %1706 = vmatprep.subr.bf16.mxu0 %v4587_v37 }
 0x14a   : > { %997 = vmatmul.mubr.bf16.gmra.mxu1 %v768_v4  ;;  %v4599_v4 = vld [vmem:[#allocation5 + $0x4] ss:$16 sps:$4 sm:$0xff]  }
 0x14b   : > { %1006 = vmatprep.mubr.bf16.mxu1 %v4878_v34 }
 0x14c   : > { %1707 = vmatpush1.bf16.msra.mxu0 %v4585_v62  ;;  %v4626_v62 = vld [vmem:[#allocation5 + $0xec] ss:$16 sps:$4 sm:$0xff]  }
 0x152   : > { %1007 = vmatmul.mubr.bf16.gmra.mxu1 %v769_v13  ;;  %v4608_v13 = vld [vmem:[#allocation5 + $0x1a4] ss:$16 sps:$4 sm:$0xff]  }
 0x153   : > { %1016 = vmatprep.mubr.bf16.mxu1 %v4878_v34 }
 0x15a   : > { %1017 = vmatmul.mubr.bf16.gmra.mxu1 %v770_v24 }
 0x15b   : > { %1026 = vmatprep.mubr.bf16.mxu1 %v4878_v34 }
 0x162   : > { %1027 = vmatmul.mubr.bf16.gmra.mxu1 %v771_v29 }
 0x163   : > { %1036 = vmatprep.mubr.bf16.mxu1 %v4878_v34 }
 0x16a   : > { %1037 = vmatmul.mubr.bf16.gmra.mxu1 %v772_v40 }
 0x16b   : > { %1046 = vmatprep.mubr.bf16.mxu1 %v4878_v34 }
 0x172   : > { %1047 = vmatmul.mubr.bf16.gmra.mxu1 %v773_v45 }
 0x173   : > { %1056 = vmatprep.mubr.bf16.mxu1 %v4878_v34 }
 0x17a   : > { %1057 = vmatmul.mubr.bf16.gmra.mxu1 %v774_v52  ;;  %v4623_v52 = vld [vmem:[#allocation5 + $0x104] ss:$16 sps:$4 sm:$0xff]  }
 0x17b   : > { %1066 = vmatprep.mubr.bf16.mxu1 %v4878_v34  ;;  %v4590_v34 = vld [vmem:[#allocation5 + $0x64] ss:$16 sps:$4 sm:$0xff]  }
 0x17c   : > { %1708 = vmatprep.subr.bf16.mxu0 %v4590_v34 }
 0x17d   : > { %1709 = vmatpush1.bf16.msra.mxu0 %v4588_v63 }
 0x17e   : > { %1710 = vmatprep.subr.bf16.mxu0 %v4593_v0 }
 0x181   : > { %1711 = vmatpush1.bf16.msra.mxu0 %v4591_v1 }
 0x182   : > { %1067 = vmatmul.mubr.bf16.gmra.mxu1 %v775_v55  ;;  %1712 = vmatprep.subr.bf16.mxu0 %v4596_v2 }
 0x185   : > { %1713 = vmatpush1.bf16.msra.mxu0 %v4594_v3 }
 0x186   : > { %1714 = vmatprep.subr.bf16.mxu0 %v4599_v4 }
 0x189   : > { %1715 = vmatpush1.bf16.msra.mxu0 %v4597_v5 }
 0x18a   : > { %1716 = vmatprep.subr.bf16.mxu0 %v4602_v7 }
 0x18d   : > { %1717 = vmatpush2.bf16.msra.mxu0 %v4600_v8 }
 0x18e   : > { %1718 = vmatprep.subr.bf16.mxu0 %v4605_v10 }
 0x191   : > { %1719 = vmatpush2.bf16.msra.mxu0 %v4603_v11 }
 0x192   : > { %1720 = vmatprep.subr.bf16.mxu0 %v4608_v13 }
 0x195   : > { %1721 = vmatpush2.bf16.msra.mxu0 %v4606_v15 }
 0x196   : > { %1722 = vmatprep.subr.bf16.mxu0 %v4611_v19 }
 0x199   : > { %1723 = vmatpush2.bf16.msra.mxu0 %v4609_v21 }
 0x19a   : > { %1724 = vmatprep.subr.bf16.mxu0 %v4614_v26 }
 0x19d   : > { %1725 = vmatpush2.bf16.msra.mxu0 %v4612_v28 }
 0x19e   : > { %1726 = vmatprep.subr.bf16.mxu0 %v4617_v38 }
 0x1a1   : > { %1727 = vmatpush2.bf16.msra.mxu0 %v4615_v41 }
 0x1a2   : > { %1728 = vmatprep.subr.bf16.mxu0 %v4620_v47 }
 0x1a5   : > { %1729 = vmatpush2.bf16.msra.mxu0 %v4618_v49 }
 0x1a6   : > { %1730 = vmatprep.subr.bf16.mxu0 %v4623_v52 }
 0x1a9   : > { %1731 = vmatpush2.bf16.msra.mxu0 %v4621_v54 }
 0x1aa   : > { %1741 = vmatprep.subr.bf16.mxu0 %v4626_v62 }
 0x1ca   : > { %v918_v17 = vpop.f32.mrf.mxu1 }
 0x1cb   : > { %v919_v24 = vadd.f32 %v918_v17, %v5179_v18 }
 0x1cc   : > { %v920_v20 = vpop.f32.mrf.mxu1 }
 0x1cd   : > { %v921_v29 = vadd.f32 %v920_v20, %v5182_v22 }
 0x1ce   : > { %v922_v23 = vpop.f32.mrf.mxu1 }
 0x1cf   : > { %v923_v25 = vadd.f32 %v922_v23, %v5179_v18 }
 0x1d0   : > { %v924_v27 = vpop.f32.mrf.mxu1 }
 0x1d1   : > { %v1077_v30 = vmax.f32 %v919_v24, %v923_v25  ;;  %v925_v31 = vadd.f32 %v924_v27, %v5182_v22  ;;  %v5191_v39 = vpack.c.bf16 %v923_v25, %v919_v24 }
 0x1d2   : > { %v928_v32 = vpop.f32.mrf.mxu1 }
 0x1d3   : > { %v1086_v33 = vmax.f32 %v921_v29, %v925_v31  ;;  %v5188_v35 = vpack.c.bf16 %v925_v31, %v921_v29  ;;  %v929_v36 = vadd.f32 %v928_v32, %v5179_v18 }
 0x1d4   : > { %v930_v40 = vpop.f32.mrf.mxu1 }
 0x1d5   : > { %v1078_v42 = vmax.f32 %v1077_v30, %v929_v36  ;;  %v931_v43 = vadd.f32 %v930_v40, %v5182_v22  ;;  %2230 = vmatprep.mubr.bf16.mxu1 %v5188_v35 }
 0x1d6   : > { %v932_v44 = vpop.f32.mrf.mxu1  ;;  %2231 = vmatmul.mubr.bf16.vlgmr.msra.gmra.mxu1 %v5191_v39 }
 0x1d7   : > { %v1087_v45 = vmax.f32 %v1086_v33, %v931_v43  ;;  %v933_v46 = vadd.f32 %v932_v44, %v5179_v18 }
 0x1d8   : > { %v934_v48 = vpop.f32.mrf.mxu1 }
 0x1d9   : > { %v1079_v50 = vmax.f32 %v1078_v42, %v933_v46  ;;  %v935_v51 = vadd.f32 %v934_v48, %v5182_v22  ;;  %v5200_v58 = vpack.c.bf16 %v933_v46, %v929_v36 }
 0x1da   : > { %v938_v53 = vpop.f32.mrf.mxu1 }
 0x1db   : > { %v1088_v55 = vmax.f32 %v1087_v45, %v935_v51  ;;  %v5198_v56 = vpack.c.bf16 %v935_v51, %v931_v43  ;;  %v1080_v57 = vrot.slane %v1079_v50, 4  ;;  %v939_v61 = vadd.f32 %v938_v53, %v5179_v18 }
 0x1dc   : > { %v940_v59 = vpop.f32.mrf.mxu1 }
 0x1dd   : > { %2240 = vmatprep.mubr.bf16.mxu1 %v5198_v56  ;;  %v1081_v34 = vmax.f32 %v1079_v50, %v1080_v57  ;;  %v1089_v63 = vrot.slane %v1088_v55, 4  ;;  %v941_v2 = vadd.f32 %v940_v59, %v5182_v22 }
 0x1de   : > { %v942_v60 = vpop.f32.mrf.mxu1  ;;  %2241 = vmatmul.mubr.bf16.gmra.mxu1 %v5200_v58 }
 0x1df   : > { %v943_v37 = vadd.f32 %v942_v60, %v5179_v18  ;;  %v1082_v6 = vrot.slane %v1081_v34, 2  ;;  %v1090_v7 = vmax.f32 %v1088_v55, %v1089_v63 }
 0x1e0   : > { %v944_v0 = vpop.f32.mrf.mxu1 }
 0x1e1   : > { %v1095_v1 = vmax.f32 %v939_v61, %v943_v37  ;;  %v945_v3 = vadd.f32 %v944_v0, %v5182_v22  ;;  %v5211_v13 = vpack.c.bf16 %v943_v37, %v939_v61  ;;  %v1083_v21 = vmax.f32 %v1081_v34, %v1082_v6 }
 0x1e2   : > { %v948_v4 = vpop.f32.mrf.mxu1  ;;  %v1091_v23 = vrot.slane %v1090_v7, 2 }
 0x1e3   : > { %v949_v5 = vadd.f32 %v948_v4, %v5179_v18  ;;  %v1104_v8 = vmax.f32 %v941_v2, %v945_v3  ;;  %v5209_v10 = vpack.c.bf16 %v945_v3, %v941_v2  ;;  %v1084_v29 = vrot.slane %v1083_v21, 1 }
 0x1e4   : > { %v950_v11 = vpop.f32.mrf.mxu1  ;;  %v1092_v30 = vmax.f32 %v1090_v7, %v1091_v23 }
 0x1e5   : > { %v1096_v14 = vmax.f32 %v1095_v1, %v949_v5  ;;  %v951_v15 = vadd.f32 %v950_v11, %v5182_v22  ;;  %2250 = vmatprep.mubr.bf16.mxu1 %v5209_v10  ;;  %v1085_v45 = vmax.f32 %v1083_v21, %v1084_v29 }
 0x1e6   : > { %v952_v17 = vpop.f32.mrf.mxu1  ;;  %2251 = vmatmul.mubr.bf16.gmra.mxu1 %v5211_v13  ;;  %v1093_v46 = vrot.slane %v1092_v30, 1 }
 0x1e7   : > { %v1105_v19 = vmax.f32 %v1104_v8, %v951_v15  ;;  %v953_v20 = vadd.f32 %v952_v17, %v5179_v18  ;;  %v1221_v61 = vpack.c.bf16 %v1085_v45, %v1085_v45 }
 0x1e8   : > { %v954_v24 = vpop.f32.mrf.mxu1  ;;  %v1094_v37 = vmax.f32 %v1092_v30, %v1093_v46 }
 0x1e9   : > { %v1097_v25 = vmax.f32 %v1096_v14, %v953_v20  ;;  %v955_v26 = vadd.f32 %v954_v24, %v5182_v22  ;;  %v5220_v38 = vpack.c.bf16 %v953_v20, %v949_v5 }
 0x1ea   : > { %v958_v27 = vpop.f32.mrf.mxu1  ;;  %v1222_v8 = vpack.c.bf16 %v1094_v37, %v1094_v37 }
 0x1eb   : > { %v1098_v28 = vrot.slane %v1097_v25, 4  ;;  %v1106_v31 = vmax.f32 %v1105_v19, %v955_v26  ;;  %v5218_v32 = vpack.c.bf16 %v955_v26, %v951_v15  ;;  %v959_v43 = vadd.f32 %v958_v27, %v5179_v18 }
 0x1ec   : > { %v960_v33 = vpop.f32.mrf.mxu1  ;;  %v1339_v15 = vunpack.c.l.b16 %v1221_v61 }
 0x1ed   : > { %v1099_v36 = vmax.f32 %v1097_v25, %v1098_v28  ;;  %v1107_v40 = vrot.slane %v1106_v31, 4  ;;  %2260 = vmatprep.mubr.bf16.mxu1 %v5218_v32  ;;  %v961_v50 = vadd.f32 %v960_v33, %v5182_v22  ;;  %v1340_v28 = vunpack.c.l.b16 %v1222_v8 }
 0x1ee   : > { %v962_v41 = vpop.f32.mrf.mxu1  ;;  %2261 = vmatmul.mubr.bf16.gmra.mxu1 %v5220_v38 }
 0x1ef   : > { %v1100_v42 = vrot.slane %v1099_v36, 2  ;;  %v963_v44 = vadd.f32 %v962_v41, %v5179_v18  ;;  %v1108_v47 = vmax.f32 %v1106_v31, %v1107_v40 }
 0x1f0   : > { %v964_v48 = vpop.f32.mrf.mxu1 }
 0x1f1   : > { %v1101_v49 = vmax.f32 %v1099_v36, %v1100_v42  ;;  %v1113_v51 = vmax.f32 %v959_v43, %v963_v44  ;;  %v965_v52 = vadd.f32 %v964_v48, %v5182_v22  ;;  %v1109_v53 = vrot.slane %v1108_v47, 2 }
 0x1f2   : > { %v968_v54 = vpop.f32.mrf.mxu1  ;;  %v5231_v0 = vpack.c.bf16 %v963_v44, %v959_v43 }
 0x1f3   : > { %v1102_v55 = vrot.slane %v1101_v49, 1  ;;  %v1122_v57 = vmax.f32 %v961_v50, %v965_v52  ;;  %v5228_v59 = vpack.c.bf16 %v965_v52, %v961_v50  ;;  %v969_v60 = vadd.f32 %v968_v54, %v5179_v18 }
 0x1f4   : > { %v1110_v62 = vmax.f32 %v1108_v47, %v1109_v53  ;;  %v970_v34 = vpop.f32.mrf.mxu1 }
 0x1f5   : > { %v1103_v63 = vmax.f32 %v1101_v49, %v1102_v55  ;;  %v1114_v1 = vmax.f32 %v1113_v51, %v969_v60  ;;  %v971_v2 = vadd.f32 %v970_v34, %v5182_v22  ;;  %2270 = vmatprep.mubr.bf16.mxu1 %v5228_v59 }
 0x1f6   : > { %v1111_v3 = vrot.slane %v1110_v62, 1  ;;  %v972_v4 = vpop.f32.mrf.mxu1  ;;  %2271 = vmatmul.mubr.bf16.gmra.mxu1 %v5231_v0 }
 0x1f7   : > { %v1223_v5 = vpack.c.bf16 %v1103_v63, %v1103_v63  ;;  %v1123_v6 = vmax.f32 %v1122_v57, %v971_v2  ;;  %v973_v7 = vadd.f32 %v972_v4, %v5179_v18 }
 0x1f8   : > { %v1112_v11 = vmax.f32 %v1110_v62, %v1111_v3  ;;  %v974_v14 = vpop.f32.mrf.mxu1 }
 0x1f9   : > { %v1341_v17 = vunpack.c.l.b16 %v1223_v5  ;;  %v1115_v19 = vmax.f32 %v1114_v1, %v973_v7  ;;  %v975_v20 = vadd.f32 %v974_v14, %v5182_v22  ;;  %v5241_v33 = vpack.c.bf16 %v973_v7, %v969_v60 }
 0x1fa   : > { %v1224_v21 = vpack.c.bf16 %v1112_v11, %v1112_v11  ;;  %v978_v23 = vpop.f32.mrf.mxu1 }
 0x1fb   : > { %v1356_v24 = vsel %vm1355_vm2, %v1341_v17, %v1339_v15  ;;  %v1116_v25 = vrot.slane %v1115_v19, 4  ;;  %v1124_v26 = vmax.f32 %v1123_v6, %v975_v20  ;;  %v5239_v27 = vpack.c.bf16 %v975_v20, %v971_v2 }
 0x1fc   : > { %v1342_v29 = vunpack.c.l.b16 %v1224_v21  ;;  %v980_v30 = vpop.f32.mrf.mxu1  ;;  %v979_v44 = vadd.f32 %v978_v23, %v5179_v18 }
 0x1fd   : > { %v1117_v31 = vmax.f32 %v1115_v19, %v1116_v25  ;;  %v1125_v36 = vrot.slane %v1124_v26, 4  ;;  %2280 = vmatprep.mubr.bf16.mxu1 %v5239_v27  ;;  %v981_v50 = vadd.f32 %v980_v30, %v5182_v22 }
 0x1fe   : > { %v1369_v40 = vsel %vm1355_vm2, %v1342_v29, %v1340_v28  ;;  %v982_v41 = vpop.f32.mrf.mxu1  ;;  %2281 = vmatmul.mubr.bf16.gmra.mxu1 %v5241_v33 }
 0x1ff   : > { %v1118_v42 = vrot.slane %v1117_v31, 2  ;;  %v1126_v43 = vmax.f32 %v1124_v26, %v1125_v36  ;;  %v983_v45 = vadd.f32 %v982_v41, %v5179_v18 }
 0x200   : > { %v984_v46 = vpop.f32.mrf.mxu1 }
 0x201   : > { %v1119_v47 = vmax.f32 %v1117_v31, %v1118_v42  ;;  %v1127_v48 = vrot.slane %v1126_v43, 2  ;;  %v1131_v49 = vmax.f32 %v979_v44, %v983_v45  ;;  %v985_v51 = vadd.f32 %v984_v46, %v5182_v22 }
 0x202   : > { %v988_v52 = vpop.f32.mrf.mxu1  ;;  %v5253_v34 = vpack.c.bf16 %v983_v45, %v979_v44 }
 0x203   : > { %v1120_v53 = vrot.slane %v1119_v47, 1  ;;  %v1128_v54 = vmax.f32 %v1126_v43, %v1127_v48  ;;  %v989_v55 = vadd.f32 %v988_v52, %v5179_v18  ;;  %v1140_v57 = vmax.f32 %v981_v50, %v985_v51 }
 0x204   : > { %v5251_v60 = vpack.c.bf16 %v985_v51, %v981_v50  ;;  %v990_v61 = vpop.f32.mrf.mxu1 }
 0x205   : > { %v1121_v37 = vmax.f32 %v1119_v47, %v1120_v53  ;;  %v1129_v62 = vrot.slane %v1128_v54, 1  ;;  %v991_v63 = vadd.f32 %v990_v61, %v5182_v22  ;;  %v1132_v4 = vmax.f32 %v1131_v49, %v989_v55 }
 0x206   : > { %2290 = vmatprep.mubr.bf16.mxu1 %v5251_v60  ;;  %v992_v1 = vpop.f32.mrf.mxu1 }
 0x207   : > { %v1225_v2 = vpack.c.bf16 %v1121_v37, %v1121_v37  ;;  %v1130_v3 = vmax.f32 %v1128_v54, %v1129_v62  ;;  %v993_v5 = vadd.f32 %v992_v1, %v5179_v18  ;;  %2291 = vmatmul.mubr.bf16.gmra.mxu1 %v5253_v34  ;;  %v1141_v14 = vmax.f32 %v1140_v57, %v991_v63 }
 0x208   : > { %v994_v6 = vpop.f32.mrf.mxu1 }
 0x209   : > { %v1343_v7 = vunpack.c.l.b16 %v1225_v2  ;;  %v1226_v8 = vpack.c.bf16 %v1130_v3, %v1130_v3  ;;  %v1133_v11 = vmax.f32 %v1132_v4, %v993_v5  ;;  %v995_v15 = vadd.f32 %v994_v6, %v5182_v22 }
 0x20a   : > { %v998_v17 = vpop.f32.mrf.mxu1  ;;  %v5264_v30 = vpack.c.bf16 %v993_v5, %v989_v55 }
 0x20b   : > { %v1358_v19 = vsel %vm1357_vm3, %v1343_v7, %v1356_v24  ;;  %v1344_v20 = vunpack.c.l.b16 %v1226_v8  ;;  %v1134_v21 = vrot.slane %v1133_v11, 4  ;;  %v1142_v23 = vmax.f32 %v1141_v14, %v995_v15 }
 0x20c   : > { %v5261_v25 = vpack.c.bf16 %v995_v15, %v991_v63  ;;  %v1000_v26 = vpop.f32.mrf.mxu1  ;;  %v5278_v49 = vadd.f32 %v998_v17, %v5179_v18 }
 0x20d   : > { %v1370_v28 = vsel %vm1357_vm3, %v1344_v20, %v1369_v40  ;;  %v1135_v29 = vmax.f32 %v1133_v11, %v1134_v21  ;;  %v1143_v31 = vrot.slane %v1142_v23, 4  ;;  %v5269_v44 = vadd.f32 %v1000_v26, %v5182_v22 }
 0x20e   : > { %2300 = vmatprep.mubr.bf16.mxu1 %v5261_v25  ;;  %v1002_v36 = vpop.f32.mrf.mxu1 }
 0x20f   : > { %v1136_v41 = vrot.slane %v1135_v29, 2  ;;  %2301 = vmatmul.mubr.bf16.gmra.mxu1 %v5264_v30  ;;  %v1144_v42 = vmax.f32 %v1142_v23, %v1143_v31  ;;  %v5272_v45 = vadd.f32 %v1002_v36, %v5179_v18 }
 0x210   : > { %v1004_v24 = vpop.f32.mrf.mxu1 }
 0x211   : > { %v1137_v43 = vmax.f32 %v1135_v29, %v1136_v41  ;;  %v5275_v40 = vadd.f32 %v1004_v24, %v5182_v22  ;;  %v1145_v46 = vrot.slane %v1144_v42, 2  ;;  %v5286_v54 = vpack.c.bf16 %v5272_v45, %v5278_v49 }
 0x212   : > { %v1008_v47 = vpop.f32.mrf.mxu1 }
 0x213   : > { %v1138_v48 = vrot.slane %v1137_v43, 1  ;;  %v5282_v50 = vpack.c.bf16 %v5275_v40, %v5269_v44  ;;  %v1146_v51 = vmax.f32 %v1144_v42, %v1145_v46  ;;  %v1009_v7 = vadd.f32 %v1008_v47, %v5179_v18 }
 0x214   : > { %v1010_v52 = vpop.f32.mrf.mxu1 }
 0x215   : > { %v1139_v53 = vmax.f32 %v1137_v43, %v1138_v48  ;;  %2310 = vmatprep.mubr.bf16.mxu1 %v5282_v50  ;;  %v1147_v55 = vrot.slane %v1146_v51, 1  ;;  %v1011_v1 = vadd.f32 %v1010_v52, %v5182_v22 }
 0x216   : > { %v1012_v57 = vpop.f32.mrf.mxu1 }
 0x217   : > { %v1227_v61 = vpack.c.bf16 %v1139_v53, %v1139_v53  ;;  %2311 = vmatmul.mubr.bf16.gmra.mxu1 %v5286_v54  ;;  %v1148_v37 = vmax.f32 %v1146_v51, %v1147_v55  ;;  %v1013_v2 = vadd.f32 %v1012_v57, %v5179_v18 }
 0x218   : > { %v1014_v62 = vpop.f32.mrf.mxu1 }
 0x219   : > { %v1345_v63 = vunpack.c.l.b16 %v1227_v61  ;;  %v1015_v3 = vadd.f32 %v1014_v62, %v5182_v22  ;;  %v1228_v4 = vpack.c.bf16 %v1148_v37, %v1148_v37  ;;  %v5299_v15 = vpack.c.bf16 %v1013_v2, %v1009_v7 }
 0x21a   : > { %v1018_v5 = vpop.f32.mrf.mxu1 }
 0x21b   : > { %v5294_v6 = vsel %vm1359_vm4, %v1345_v63, %v1358_v19  ;;  %v5297_v8 = vpack.c.bf16 %v1015_v3, %v1011_v1  ;;  %v1346_v11 = vunpack.c.l.b16 %v1228_v4  ;;  %v1019_v31 = vadd.f32 %v1018_v5, %v5179_v18 }
 0x21c   : > { %v1020_v14 = vpop.f32.mrf.mxu1  ;;  %v1149_v4 = vmax.f32 %v5278_v49, %v5272_v45  ;;  %v1158_v5 = vmax.f32 %v5269_v44, %v5275_v40 }
 0x21d   : > { %2320 = vmatprep.mubr.bf16.mxu1 %v5297_v8  ;;  %v5303_v20 = vsel %vm1359_vm4, %v1346_v11, %v1370_v28  ;;  %v1021_v23 = vadd.f32 %v1020_v14, %v5182_v22 }
 0x21e   : > { %v1022_v17 = vpop.f32.mrf.mxu1 }
 0x21f   : > { %2321 = vmatmul.mubr.bf16.gmra.mxu1 %v5299_v15  ;;  %v1023_v19 = vadd.f32 %v1022_v17, %v5179_v18 }
 0x220   : > { %v1024_v21 = vpop.f32.mrf.mxu1 }
 0x221   : > { %v1025_v26 = vadd.f32 %v1024_v21, %v5182_v22  ;;  %v5312_v42 = vpack.c.bf16 %v1023_v19, %v1019_v31  ;;  %v1167_v14 = vmax.f32 %v1019_v31, %v1023_v19 }
 0x222   : > { %v1028_v29 = vpop.f32.mrf.mxu1 }
 0x223   : > { %v5310_v36 = vpack.c.bf16 %v1025_v26, %v1021_v23  ;;  %v1029_v51 = vadd.f32 %v1028_v29, %v5179_v18 }
 0x224   : > { %v1030_v41 = vpop.f32.mrf.mxu1 }
 0x225   : > { %2330 = vmatprep.mubr.bf16.mxu1 %v5310_v36  ;;  %v1031_v46 = vadd.f32 %v1030_v41, %v5182_v22  ;;  %v1150_v41 = vmax.f32 %v1149_v4, %v1009_v7 }
 0x226   : > { %v1032_v28 = vpop.f32.mrf.mxu1 }
 0x227   : > { %2331 = vmatmul.mubr.bf16.gmra.mxu1 %v5312_v42  ;;  %v1033_v43 = vadd.f32 %v1032_v28, %v5179_v18  ;;  %v1159_v28 = vmax.f32 %v1158_v5, %v1011_v1  ;;  %v1151_v44 = vmax.f32 %v1150_v41, %v1013_v2 }
 0x228   : > { %v1034_v24 = vpop.f32.mrf.mxu1 }
 0x229   : > { %v1035_v47 = vadd.f32 %v1034_v24, %v5182_v22  ;;  %v5322_v55 = vpack.c.bf16 %v1033_v43, %v1029_v51  ;;  %v1176_v24 = vmax.f32 %v1021_v23, %v1025_v26  ;;  %v1160_v40 = vmax.f32 %v1159_v28, %v1015_v3 }
 0x22a   : > { %v1038_v48 = vpop.f32.mrf.mxu1  ;;  %v1152_v4 = vrot.slane %v1151_v44, 4 }
 0x22b   : > { %v5320_v52 = vpack.c.bf16 %v1035_v47, %v1031_v46  ;;  %6110 = vst [vmem:[#allocation12_spill] sm:$0xff] %v5322_v55  ;;  %v1039_v17 = vadd.f32 %v1038_v48, %v5179_v18  ;;  %v1177_v49 = vmax.f32 %v1176_v24, %v1031_v46 }
 0x22c   : > { %v1040_v53 = vpop.f32.mrf.mxu1 }
 0x22d   : > { %2340 = vmatprep.mubr.bf16.mxu1 %v5320_v52  ;;  %v1041_v37 = vadd.f32 %v1040_v53, %v5182_v22  ;;  %v1178_v1 = vmax.f32 %v1177_v49, %v1035_v47  ;;  %v1153_v47 = vmax.f32 %v1151_v44, %v1152_v4 }
 0x22e   : > { %v1042_v57 = vpop.f32.mrf.mxu1 }
 0x22f   : > { %2341 = vmatmul.mubr.bf16.gmra.mxu1 %v5322_v55  ;;  %v1043_v62 = vadd.f32 %v1042_v57, %v5179_v18  ;;  %v1168_v57 = vmax.f32 %v1167_v14, %v1029_v51  ;;  %v1154_v49 = vrot.slane %v1153_v47, 2 }
 0x230   : > { %v1044_v61 = vpop.f32.mrf.mxu1 }
 0x231   : > { %v1045_v63 = vadd.f32 %v1044_v61, %v5182_v22  ;;  %v1185_v61 = vmax.f32 %v1039_v17, %v1043_v62  ;;  %v5337_v9 = vpack.c.bf16 %v1043_v62, %v1039_v17  ;;  %v1169_v31 = vmax.f32 %v1168_v57, %v1033_v43 }
 0x232   : > { %v1048_v11 = vpop.f32.mrf.mxu1  ;;  %v1179_v43 = vrot.slane %v1178_v1, 4 }
 0x233   : > { %v5334_v21 = vpack.c.bf16 %v1045_v63, %v1041_v37  ;;  %v1049_v29 = vadd.f32 %v1048_v11, %v5179_v18  ;;  %6111 = vst [vmem:[#allocation13_spill] sm:$0xff] %v5337_v9  ;;  %v1194_v48 = vmax.f32 %v1041_v37, %v1045_v63  ;;  %v1161_v11 = vrot.slane %v1160_v40, 4 }
 0x234   : > { %v1050_v53 = vpop.f32.mrf.mxu1  ;;  %v1170_v2 = vrot.slane %v1169_v31, 4  ;;  %v1180_v24 = vmax.f32 %v1178_v1, %v1179_v43 }
 0x235   : > { %v1051_v45 = vadd.f32 %v1050_v53, %v5182_v22  ;;  %2350 = vmatprep.mubr.bf16.mxu1 %v5334_v21  ;;  %v1186_v55 = vmax.f32 %v1185_v61, %v1049_v29 }
 0x236   : > { %v1052_v19 = vpop.f32.mrf.mxu1  ;;  %v1171_v28 = vmax.f32 %v1169_v31, %v1170_v2  ;;  %v1181_v31 = vrot.slane %v1180_v24, 2  ;;  %v1155_v2 = vmax.f32 %v1153_v47, %v1154_v49 }
 0x237   : > { %v1053_v7 = vadd.f32 %v1052_v19, %v5179_v18  ;;  %2351 = vmatmul.mubr.bf16.gmra.mxu1 %v5337_v9  ;;  %v1195_v26 = vmax.f32 %v1194_v48, %v1051_v45 }
 0x238   : > { %v1054_v23 = vpop.f32.mrf.mxu1 }
 0x239   : > { %v1187_v51 = vmax.f32 %v1186_v55, %v1053_v7  ;;  %v1055_v62 = vadd.f32 %v1054_v23, %v5182_v22  ;;  %v5346_v14 = vpack.c.bf16 %v1053_v7, %v1049_v29  ;;  %v1162_v55 = vmax.f32 %v1160_v40, %v1161_v11 }
 0x23a   : > { %v1058_v5 = vpop.f32.mrf.mxu1  ;;  %v1172_v23 = vrot.slane %v1171_v28, 2 }
 0x23b   : > { %v1196_v3 = vmax.f32 %v1195_v26, %v1055_v62  ;;  %v5344_v46 = vpack.c.bf16 %v1055_v62, %v1051_v45  ;;  %v1188_v37 = vrot.slane %v1187_v51, 4  ;;  %6113 = vst [vmem:[#allocation15_spill] sm:$0xff] %v5346_v14  ;;  %v1163_v7 = vrot.slane %v1162_v55, 2 }
 0x23c   : > { %v1060_v63 = vpop.f32.mrf.mxu1  ;;  %v1059_v44 = vadd.f32 %v1058_v5, %v5179_v18 }
 0x23d   : > { %6112 = vst [vmem:[#allocation14_spill] sm:$0xff] %v5344_v46  ;;  %v1197_v17 = vrot.slane %v1196_v3, 4  ;;  %2360 = vmatprep.mubr.bf16.mxu1 %v5344_v46  ;;  %v1189_v53 = vmax.f32 %v1187_v51, %v1188_v37  ;;  %v1061_v19 = vadd.f32 %v1060_v63, %v5182_v22  ;;  %v1164_v37 = vmax.f32 %v1162_v55, %v1163_v7 }
 0x23e   : > { %v1062_v41 = vpop.f32.mrf.mxu1  ;;  %v1173_v63 = vmax.f32 %v1171_v28, %v1172_v23 }
 0x23f   : > { %2361 = vmatmul.mubr.bf16.gmra.mxu1 %v5346_v14  ;;  %v1198_v61 = vmax.f32 %v1196_v3, %v1197_v17  ;;  %v1063_v45 = vadd.f32 %v1062_v41, %v5179_v18  ;;  %v1190_v26 = vrot.slane %v1189_v53, 2  ;;  %v1182_v41 = vmax.f32 %v1180_v24, %v1181_v31 }
 0x240   : > { %v1064_v57 = vpop.f32.mrf.mxu1 }
 0x241   : > { %v1065_v29 = vadd.f32 %v1064_v57, %v5182_v22  ;;  %v1199_v62 = vrot.slane %v1198_v61, 2  ;;  %v1203_v4 = vmax.f32 %v1059_v44, %v1063_v45  ;;  %v5357_v11 = vpack.c.bf16 %v1063_v45, %v1059_v44 }
 0x242   : > { %v1068_v48 = vpop.f32.mrf.mxu1  ;;  %v1191_v57 = vmax.f32 %v1189_v53, %v1190_v26  ;;  %v1156_v44 = vrot.slane %v1155_v2, 1  ;;  %v1183_v55 = vrot.slane %v1182_v41, 1 }
 0x243   : > { %v1069_v40 = vadd.f32 %v1068_v48, %v5179_v18  ;;  %v5355_v1 = vpack.c.bf16 %v1065_v29, %v1061_v19  ;;  %v1212_v48 = vmax.f32 %v1061_v19, %v1065_v29  ;;  %v1200_v46 = vmax.f32 %v1198_v61, %v1199_v62 }
 0x244   : > { %v1070_v51 = vpop.f32.mrf.mxu1  ;;  %v1192_v28 = vrot.slane %v1191_v57, 1  ;;  %v1157_v53 = vmax.f32 %v1155_v2, %v1156_v44 }
 0x245   : > { %6114 = vst [vmem:[#allocation16_spill] sm:$0xff] %v5355_v1  ;;  %v1071_v3 = vadd.f32 %v1070_v51, %v5182_v22  ;;  %2370 = vmatprep.mubr.bf16.mxu1 %v5355_v1  ;;  %v1204_v5 = vmax.f32 %v1203_v4, %v1069_v40  ;;  %v1165_v51 = vrot.slane %v1164_v37, 1  ;;  %v1174_v1 = vrot.slane %v1173_v63, 1 }
 0x246   : > { %v1072_v43 = vpop.f32.mrf.mxu1 }
 0x247   : > { %v1073_v17 = vadd.f32 %v1072_v43, %v5179_v18  ;;  %2371 = vmatmul.mubr.bf16.gmra.mxu1 %v5357_v11  ;;  %v1213_v47 = vmax.f32 %v1212_v48, %v1071_v3  ;;  %v1201_v18 = vrot.slane %v1200_v46, 1  ;;  %v1166_v61 = vmax.f32 %v1164_v37, %v1165_v51 }
 0x248   : > { %v1074_v14 = vpop.f32.mrf.mxu1  ;;  %v1175_v29 = vmax.f32 %v1173_v63, %v1174_v1 }
 0x249   : > { %v1205_v45 = vmax.f32 %v1204_v5, %v1073_v17  ;;  %v1075_v49 = vadd.f32 %v1074_v14, %v5182_v22  ;;  %v5366_v24 = vpack.c.bf16 %v1073_v17, %v1069_v40  ;;  %v1184_v22 = vmax.f32 %v1182_v41, %v1183_v55 }
 0x24a   : > { %v1193_v14 = vmax.f32 %v1191_v57, %v1192_v28  ;;  %v1202_v62 = vmax.f32 %v1200_v46, %v1201_v18  ;;  %v1230_v48 = vpack.c.bf16 %v1166_v61, %v1166_v61 }
 0x24b   : > { %v1206_v9 = vrot.slane %v1205_v45, 4  ;;  %v1214_v7 = vmax.f32 %v1213_v47, %v1075_v49  ;;  %v5364_v23 = vpack.c.bf16 %v1075_v49, %v1071_v3  ;;  %v1229_v3 = vpack.c.bf16 %v1157_v53, %v1157_v53 }
 0x24c   : > { %v1232_v17 = vpack.c.bf16 %v1184_v22, %v1184_v22  ;;  %v1233_v2 = vpack.c.bf16 %v1193_v14, %v1193_v14  ;;  %v1234_v44 = vpack.c.bf16 %v1202_v62, %v1202_v62  ;;  %v1348_v63 = vunpack.c.l.b16 %v1230_v48  ;;  %v4624_v62 = vld [vmem:[#allocation5 + $0xe8] ss:$16 sps:$4 sm:$0xff]   ;;  %v4635_v48 = vld [vmem:[#allocation5 + $0x8c] ss:$16 sps:$4 sm:$0xff]  }
 0x24d   : > { %v1207_v4 = vmax.f32 %v1205_v45, %v1206_v9  ;;  %v1215_v19 = vrot.slane %v1214_v7, 4  ;;  %2380 = vmatprep.mubr.bf16.mxu1 %v5364_v23  ;;  %v1231_v9 = vpack.c.bf16 %v1175_v29, %v1175_v29  ;;  %v1347_v37 = vunpack.c.l.b16 %v1229_v3  ;;  %v4632_v3 = vld [vmem:[#allocation5 + $0xac] ss:$16 sps:$4 sm:$0xff]  }
 0x24e   : > { %v1350_v41 = vunpack.c.l.b16 %v1232_v17  ;;  %v1351_v57 = vunpack.c.l.b16 %v1233_v2  ;;  %v1352_v55 = vunpack.c.l.b16 %v1234_v44  ;;  %v1372_v53 = vsel %vm1361_vm5, %v1348_v63, %v5303_v20  ;;  %v4627_v20 = vld [vmem:[#allocation5 + $0xc8] ss:$16 sps:$4 sm:$0xff]   ;;  %v4641_v2 = vld [vmem:[#allocation5 + $0x4c] ss:$16 sps:$4 sm:$0xff]  }
 0x24f   : > { %v1208_v31 = vrot.slane %v1207_v4, 2  ;;  %2381 = vmatmul.mubr.bf16.gmra.mxu1 %v5366_v24  ;;  %v1216_v26 = vmax.f32 %v1214_v7, %v1215_v19  ;;  %v1349_v49 = vunpack.c.l.b16 %v1231_v9  ;;  %v1362_v18 = vsel %vm1361_vm5, %v1347_v37, %v5294_v6  ;;  %v4633_v9 = vld [vmem:[#allocation5 + $0x88] ss:$16 sps:$4 sm:$0xff]   ;;  %v4644_v44 = vld [vmem:[#allocation5 + $0x2c] ss:$16 sps:$4 sm:$0xff]  }
 0x250   : > { %v1373_v29 = vsel %vm1363_vm6, %v1350_v41, %v1372_v53  ;;  %v4636_v17 = vld [vmem:[#allocation5 + $0x68] ss:$16 sps:$4 sm:$0xff]   ;;  %v4647_v37 = vld [vmem:[#allocation5 + $0xc] ss:$16 sps:$4 sm:$0xff]  }
 0x251   : > { %v1209_v43 = vmax.f32 %v1207_v4, %v1208_v31  ;;  %v1217_v5 = vrot.slane %v1216_v26, 2  ;;  %v1364_v4 = vsel %vm1363_vm6, %v1349_v49, %v1362_v18  ;;  %v1374_v22 = vsel %vm1365_vm7, %v1352_v55, %v1373_v29  ;;  %v4650_v63 = vld [vmem:[#allocation5 + $0x1ec] ss:$16 sps:$4 sm:$0xff]   ;;  %v4648_v49 = vld [vmem:[#allocation5 + $0x1e8] ss:$16 sps:$4 sm:$0xff]  }
 0x252   : > { %v1366_v61 = vsel %vm1365_vm7, %v1351_v57, %v1364_v4  ;;  %v4651_v41 = vld [vmem:[#allocation5 + $0x1c8] ss:$16 sps:$4 sm:$0xff]   ;;  %v4656_v57 = vld [vmem:[#allocation5 + $0x1ac] ss:$16 sps:$4 sm:$0xff]  }
 0x253   : > { %v1210_v40 = vrot.slane %v1209_v43, 1  ;;  %v1218_v45 = vmax.f32 %v1216_v26, %v1217_v5  ;;  %v4630_v5 = vld [vmem:[#allocation5 + $0xa8] ss:$16 sps:$4 sm:$0xff]   ;;  %v4659_v55 = vld [vmem:[#allocation5 + $0x18c] ss:$16 sps:$4 sm:$0xff]  }
 0x254   : > { %v4660_v18 = vld [vmem:[#allocation5 + $0x168] ss:$16 sps:$4 sm:$0xff]   ;;  %v4665_v4 = vld [vmem:[#allocation5 + $0x14c] ss:$16 sps:$4 sm:$0xff]  }
 0x255   : > { %v1211_v47 = vmax.f32 %v1209_v43, %v1210_v40  ;;  %v1219_v1 = vrot.slane %v1218_v45, 1  ;;  %v4629_v43 = vld [vmem:[#allocation5 + $0xcc] ss:$16 sps:$4 sm:$0xff]   ;;  %v4663_v53 = vld [vmem:[#allocation5 + $0x148] ss:$16 sps:$4 sm:$0xff]  }
 0x256   : > { %v4638_v40 = vld [vmem:[#allocation5 + $0x6c] ss:$16 sps:$4 sm:$0xff]  }
 0x257   : > { %v1235_v51 = vpack.c.bf16 %v1211_v47, %v1211_v47  ;;  %v1220_v46 = vmax.f32 %v1218_v45, %v1219_v1  ;;  %v4639_v45 = vld [vmem:[#allocation5 + $0x48] ss:$16 sps:$4 sm:$0xff]   ;;  %v4671_v29 = vld [vmem:[#allocation5 + $0x10c] ss:$16 sps:$4 sm:$0xff]  }
 0x258   : > { %v4642_v47 = vld [vmem:[#allocation5 + $0x28] ss:$16 sps:$4 sm:$0xff]  }
 0x259   : > { %v1353_v28 = vunpack.c.l.b16 %v1235_v51  ;;  %v1236_v7 = vpack.c.bf16 %v1220_v46, %v1220_v46  ;;  %v4645_v1 = vld [vmem:[#allocation5 + $0x8] ss:$16 sps:$4 sm:$0xff]   ;;  %v4653_v51 = vld [vmem:[#allocation5 + $0x1cc] ss:$16 sps:$4 sm:$0xff]  }
 0x25a   : > { %v4654_v46 = vld [vmem:[#allocation5 + $0x1a8] ss:$16 sps:$4 sm:$0xff]  }
 0x25b   : > { %v1354_v19 = vunpack.c.l.b16 %v1236_v7  ;;  %v1368_v31 = vsel %vm1367_vm8, %v1353_v28, %v1366_v61  ;;  %v4657_v28 = vld [vmem:[#allocation5 + $0x188] ss:$16 sps:$4 sm:$0xff]   ;;  %v4662_v7 = vld [vmem:[#allocation5 + $0x16c] ss:$16 sps:$4 sm:$0xff]  }
 0x25c   : > { %v5380_v6 = vpack.c.b16 %v1368_v31, %v1368_v31  ;;  %v4666_v61 = vld [vmem:[#allocation5 + $0x128] ss:$16 sps:$4 sm:$0xff]  }
 0x25d   : > { %v1375_v14 = vsel %vm1367_vm8, %v1354_v19, %v1374_v22  ;;  %v4668_v19 = vld [vmem:[#allocation5 + $0x12c] ss:$16 sps:$4 sm:$0xff]   ;;  %v4669_v31 = vld [vmem:[#allocation5 + $0x108] ss:$16 sps:$4 sm:$0xff]  }
 0x25e   : > { %v1377_v26 = vpack.c.b16 %v1375_v14, %v1375_v14  ;;  %v4720_v22 = vld [vmem:[%s6084_s8 + $0x78] sm:$0xff]  }
 0x25f   : > { %v4721_v14 = vld [vmem:[%s6084_s8 + $0x38] sm:$0xff]   ;;  %4149 = vmatprep.subr.bf16.mxu1 %v4720_v22 }
 0x260   : > { %1732 = vmatprep.mubr.bf16.mxu0 %v1377_v26  ;;  %4150 = vmatpush3.bf16.msra.mxu1 %v4721_v14  ;;  %v4716_v22 = vld [vmem:[#allocation2 + $0x12c] ss:$16 sps:$4 sm:$0xff]   ;;  %v4714_v14 = vld [vmem:[#allocation2 + $0x128] ss:$16 sps:$4 sm:$0xff]  }
 0x261   : > { %1733 = vmatmul.mubr.bf16.vlgmr.msra.gmra.mxu0 %v5380_v6 }
 0x262   : > { %1742 = vmatpush1.bf16.msra.mxu0 %v4624_v62  ;;  %1773 = vmatprep.mubr.bf16.mxu0 %v1377_v26  ;;  %v4674_v26 = vld [vmem:[#allocation2 + $0xec] ss:$16 sps:$4 sm:$0xff]   ;;  %v4672_v62 = vld [vmem:[#allocation2 + $0xe8] ss:$16 sps:$4 sm:$0xff]  }
 0x263   : > { %1743 = vmatprep.subr.bf16.mxu0 %v4629_v43  ;;  %v4677_v43 = vld [vmem:[#allocation2 + $0xcc] ss:$16 sps:$4 sm:$0xff]  }
 0x266   : > { %1744 = vmatpush1.bf16.msra.mxu0 %v4627_v20  ;;  %v4675_v20 = vld [vmem:[#allocation2 + $0xc8] ss:$16 sps:$4 sm:$0xff]  }
 0x267   : > { %1745 = vmatprep.subr.bf16.mxu0 %v4632_v3  ;;  %v4680_v3 = vld [vmem:[#allocation2 + $0xac] ss:$16 sps:$4 sm:$0xff]  }
 0x26a   : > { %1746 = vmatpush1.bf16.msra.mxu0 %v4630_v5  ;;  %v4678_v5 = vld [vmem:[#allocation2 + $0xa8] ss:$16 sps:$4 sm:$0xff]  }
 0x26b   : > { %1747 = vmatprep.subr.bf16.mxu0 %v4635_v48  ;;  %v4683_v48 = vld [vmem:[#allocation2 + $0x8c] ss:$16 sps:$4 sm:$0xff]  }
 0x26e   : > { %1748 = vmatpush1.bf16.msra.mxu0 %v4633_v9  ;;  %v4681_v9 = vld [vmem:[#allocation2 + $0x88] ss:$16 sps:$4 sm:$0xff]  }
 0x26f   : > { %1749 = vmatprep.subr.bf16.mxu0 %v4638_v40  ;;  %v4722_v40 = vld [vmem:[%s6084_s8 + $0x70] sm:$0xff]  }
 0x270   : > { %4151 = vmatprep.subr.bf16.mxu1 %v4722_v40  ;;  %v5436_v40 = vld [vmem:[%s6084_s8 + $0xb0] sm:$0xff]  }
 0x272   : > { %1750 = vmatpush1.bf16.msra.mxu0 %v4636_v17  ;;  %v4686_v17 = vld [vmem:[#allocation2 + $0x6c] ss:$16 sps:$4 sm:$0xff]  }
 0x273   : > { %1751 = vmatprep.subr.bf16.mxu0 %v4641_v2  ;;  %v4689_v2 = vld [vmem:[#allocation2 + $0x4c] ss:$16 sps:$4 sm:$0xff]  }
 0x276   : > { %1752 = vmatpush1.bf16.msra.mxu0 %v4639_v45  ;;  %v4687_v45 = vld [vmem:[#allocation2 + $0x48] ss:$16 sps:$4 sm:$0xff]  }
 0x277   : > { %1753 = vmatprep.subr.bf16.mxu0 %v4644_v44  ;;  %v4692_v44 = vld [vmem:[#allocation2 + $0x2c] ss:$16 sps:$4 sm:$0xff]  }
 0x27a   : > { %1754 = vmatpush1.bf16.msra.mxu0 %v4642_v47  ;;  %v4690_v47 = vld [vmem:[#allocation2 + $0x28] ss:$16 sps:$4 sm:$0xff]  }
 0x27b   : > { %1755 = vmatprep.subr.bf16.mxu0 %v4647_v37  ;;  %v4695_v37 = vld [vmem:[#allocation2 + $0xc] ss:$16 sps:$4 sm:$0xff]  }
 0x27e   : > { %1756 = vmatpush1.bf16.msra.mxu0 %v4645_v1  ;;  %v4693_v1 = vld [vmem:[#allocation2 + $0x8] ss:$16 sps:$4 sm:$0xff]  }
 0x27f   : > { %1757 = vmatprep.subr.bf16.mxu0 %v4650_v63  ;;  %v4725_v63 = vld [vmem:[%s6084_s8 + $0x68] sm:$0xff]  }
 0x282   : > { %1758 = vmatpush2.bf16.msra.mxu0 %v4648_v49  ;;  %v4698_v49 = vld [vmem:[#allocation2 + $0x1ec] ss:$16 sps:$4 sm:$0xff]  }
 0x283   : > { %1759 = vmatprep.subr.bf16.mxu0 %v4653_v51  ;;  %v4727_v51 = vld [vmem:[%s6084_s8 + $0x28] sm:$0xff]  }
 0x286   : > { %1760 = vmatpush2.bf16.msra.mxu0 %v4651_v41  ;;  %v4696_v41 = vld [vmem:[#allocation2 + $0x1e8] ss:$16 sps:$4 sm:$0xff]  }
 0x287   : > { %1761 = vmatprep.subr.bf16.mxu0 %v4656_v57  ;;  %v4701_v57 = vld [vmem:[#allocation2 + $0x1cc] ss:$16 sps:$4 sm:$0xff]  }
 0x28a   : > { %1762 = vmatpush2.bf16.msra.mxu0 %v4654_v46  ;;  %v4699_v46 = vld [vmem:[#allocation2 + $0x1c8] ss:$16 sps:$4 sm:$0xff]  }
 0x28b   : > { %1763 = vmatprep.subr.bf16.mxu0 %v4659_v55  ;;  %v4704_v55 = vld [vmem:[#allocation2 + $0x1ac] ss:$16 sps:$4 sm:$0xff]  }
 0x28e   : > { %1764 = vmatpush2.bf16.msra.mxu0 %v4657_v28  ;;  %v4702_v28 = vld [vmem:[#allocation2 + $0x1a8] ss:$16 sps:$4 sm:$0xff]  }
 0x28f   : > { %1765 = vmatprep.subr.bf16.mxu0 %v4662_v7  ;;  %v4707_v7 = vld [vmem:[#allocation2 + $0x18c] ss:$16 sps:$4 sm:$0xff]  }
 0x292   : > { %1766 = vmatpush2.bf16.msra.mxu0 %v4660_v18  ;;  %v4705_v18 = vld [vmem:[#allocation2 + $0x188] ss:$16 sps:$4 sm:$0xff]  }
 0x293   : > { %1767 = vmatprep.subr.bf16.mxu0 %v4665_v4  ;;  %v4729_v4 = vld [vmem:[%s6084_s8 + $0x60] sm:$0xff]  }
 0x296   : > { %1768 = vmatpush2.bf16.msra.mxu0 %v4663_v53  ;;  %v4710_v53 = vld [vmem:[#allocation2 + $0x16c] ss:$16 sps:$4 sm:$0xff]  }
 0x297   : > { %1769 = vmatprep.subr.bf16.mxu0 %v4668_v19  ;;  %v4731_v19 = vld [vmem:[%s6084_s8 + $0x20] sm:$0xff]  }
 0x29a   : > { %1770 = vmatpush2.bf16.msra.mxu0 %v4666_v61  ;;  %v4708_v61 = vld [vmem:[#allocation2 + $0x168] ss:$16 sps:$4 sm:$0xff]  }
 0x29b   : > { %1771 = vmatprep.subr.bf16.mxu0 %v4671_v29  ;;  %v4713_v29 = vld [vmem:[#allocation2 + $0x14c] ss:$16 sps:$4 sm:$0xff]  }
 0x29e   : > { %1772 = vmatpush2.bf16.msra.mxu0 %v4669_v31  ;;  %v4711_v31 = vld [vmem:[#allocation2 + $0x148] ss:$16 sps:$4 sm:$0xff]  }
 0x29f   : > { %2391 = vmatprep.subr.bf16.mxu0 %v4674_v26  ;;  %v4719_v26 = vld [vmem:[#allocation2 + $0x10c] ss:$16 sps:$4 sm:$0xff]  }
 0x2a1   : > { %1774 = vmatmul.mubr.bf16.vlgmr.msra.gmra.mxu0 %v5380_v6  ;;  %v4723_v6 = vld [vmem:[%s6084_s8 + $0x30] sm:$0xff]  }
 0x2a2   : > { %2392 = vmatpush1.bf16.msra.mxu0 %v4672_v62  ;;  %2423 = vmatprep.mubr.bf16.mxu0 %v5188_v35  ;;  %v4684_v35 = vld [vmem:[#allocation2 + $0x68] ss:$16 sps:$4 sm:$0xff]  }
 0x2a3   : > { %2393 = vmatprep.subr.bf16.mxu0 %v4677_v43  ;;  %4152 = vmatpush3.bf16.msra.mxu1 %v4723_v6  ;;  %v4733_v62 = vld [vmem:[%s6084_s8 + $0x58] sm:$0xff]   ;;  %v5442_v6 = vld [vmem:[%s6084_s8 + $0xe8] sm:$0xff]  }
 0x2a4   : > { %4153 = vmatprep.subr.bf16.mxu1 %v4725_v63  ;;  %v4717_v43 = vld [vmem:[#allocation2 + $0x108] ss:$16 sps:$4 sm:$0xff]   ;;  %v4743_v63 = vld [vmem:[%s6084_s8] sm:$0xff]  }
 0x2a6   : > { %2394 = vmatpush1.bf16.msra.mxu0 %v4675_v20  ;;  %v4735_v20 = vld [vmem:[%s6084_s8 + $0x18] sm:$0xff]  }
 0x2a7   : > { %2395 = vmatprep.subr.bf16.mxu0 %v4680_v3  ;;  %4154 = vmatpush3.bf16.msra.mxu1 %v4727_v51  ;;  %v4724_v3 = vld [vmem:[%s6084_s8 + $0xf8] sm:$0xff]  }
 0x2a8   : > { %4155 = vmatprep.subr.bf16.mxu1 %v4729_v4 }
 0x2aa   : > { %2396 = vmatpush1.bf16.msra.mxu0 %v4678_v5  ;;  %v5421_v5 = vld [vmem:[%s6084_s8 + $0xb8] sm:$0xff]  }
 0x2ab   : > { %2397 = vmatprep.subr.bf16.mxu0 %v4683_v48  ;;  %4156 = vmatpush3.bf16.msra.mxu1 %v4731_v19  ;;  %v5426_v48 = vld [vmem:[%s6084_s8 + $0xf0] sm:$0xff]  }
 0x2ac   : > { %4157 = vmatprep.subr.bf16.mxu1 %v4733_v62  ;;  %v5590_v62 = vld [vmem:[%s6084_s8 + $0xc0] sm:$0xff]  }
 0x2ae   : > { %2398 = vmatpush1.bf16.msra.mxu0 %v4681_v9  ;;  %v5429_v9 = vpop.f32.mrf.mxu1 }
 0x2af   : > { %2399 = vmatprep.subr.bf16.mxu0 %v4686_v17  ;;  %4158 = vmatpush3.bf16.msra.mxu1 %v4735_v20  ;;  %v6117_v20 = vld [vmem:[#allocation12_spill] sm:$0xff] }
 0x2b0   : > { %v5444_v17 = vpop.f32.mrf.mxu1 }
 0x2b2   : > { %2400 = vmatpush1.bf16.msra.mxu0 %v4684_v35  ;;  %v4736_v35 = vld [vmem:[%s6084_s8 + $0x50] sm:$0xff]  }
 0x2b3   : > { %2401 = vmatprep.subr.bf16.mxu0 %v4689_v2  ;;  %v4737_v2 = vld [vmem:[%s6084_s8 + $0x10] sm:$0xff]   ;;  %4159 = vmatprep.subr.bf16.mxu1 %v4736_v35 }
 0x2b4   : > { %4160 = vmatpush3.bf16.msra.mxu1 %v4737_v2  ;;  %v6118_v2 = vld [vmem:[#allocation13_spill] sm:$0xff] }
 0x2b6   : > { %2402 = vmatpush1.bf16.msra.mxu0 %v4687_v45 }
 0x2b7   : > { %2403 = vmatprep.subr.bf16.mxu0 %v4692_v44  ;;  %v5477_v44 = vld [vmem:[%s6084_s8 + $0xa0] sm:$0xff]  }
 0x2ba   : > { %2404 = vmatpush1.bf16.msra.mxu0 %v4690_v47  ;;  %v4741_v47 = vld [vmem:[%s6084_s8 + $0x8] sm:$0xff]  }
 0x2bb   : > { %2405 = vmatprep.subr.bf16.mxu0 %v4695_v37  ;;  %v4742_v37 = vld [vmem:[%s6084_s8 + $0x40] sm:$0xff]  }
 0x2be   : > { %2406 = vmatpush1.bf16.msra.mxu0 %v4693_v1 }
 0x2bf   : > { %2407 = vmatprep.subr.bf16.mxu0 %v4698_v49 }
 0x2c2   : > { %2408 = vmatpush2.bf16.msra.mxu0 %v4696_v41 }
 0x2c3   : > { %2409 = vmatprep.subr.bf16.mxu0 %v4701_v57 }
 0x2c6   : > { %2410 = vmatpush2.bf16.msra.mxu0 %v4699_v46  ;;  %v5529_v46 = vld [vmem:[%s6084_s8 + $0x90] sm:$0xff]  }
 0x2c7   : > { %2411 = vmatprep.subr.bf16.mxu0 %v4704_v55 }
 0x2ca   : > { %2412 = vmatpush2.bf16.msra.mxu0 %v4702_v28  ;;  %v5553_v28 = vld [vmem:[%s6084_s8 + $0x88] sm:$0xff]  }
 0x2cb   : > { %2413 = vmatprep.subr.bf16.mxu0 %v4707_v7 }
 0x2ce   : > { %2414 = vmatpush2.bf16.msra.mxu0 %v4705_v18 }
 0x2cf   : > { %2415 = vmatprep.subr.bf16.mxu0 %v4710_v53 }
 0x2d2   : > { %2416 = vmatpush2.bf16.msra.mxu0 %v4708_v61 }
 0x2d3   : > { %2417 = vmatprep.subr.bf16.mxu0 %v4713_v29 }
 0x2d6   : > { %2418 = vmatpush2.bf16.msra.mxu0 %v4711_v31 }
 0x2d7   : > { %2419 = vmatprep.subr.bf16.mxu0 %v4716_v22 }
 0x2da   : > { %2420 = vmatpush2.bf16.msra.mxu0 %v4714_v14 }
 0x2db   : > { %2421 = vmatprep.subr.bf16.mxu0 %v4719_v26 }
 0x2de   : > { %2422 = vmatpush2.bf16.msra.mxu0 %v4717_v43  ;;  %v5595_v43 = vld [vmem:[%s6084_s8 + $0x80] sm:$0xff]  }
 0x2df   : > { %4261 = vmatprep.subr.bf16.mxu0 %v4724_v3 }
 0x2e1   : > { %2424 = vmatmul.mubr.bf16.vlgmr.msra.gmra.mxu0 %v5191_v39  ;;  %v5450_v39 = vld [vmem:[%s6084_s8 + $0xa8] sm:$0xff]  }
 0x2e2   : > { %2433 = vmatprep.mubr.bf16.mxu0 %v5198_v56  ;;  %4262 = vmatpush3.bf16.msra.mxu0 %v5421_v5  ;;  %v5454_v56 = vpop.f32.mrf.mxu1 }
 0x2e3   : > { %4263 = vmatprep.subr.bf16.mxu0 %v5426_v48 }
 0x2e4   : > { %v5464_v45 = vpop.f32.mrf.mxu1 }
 0x2e6   : > { %4264 = vmatpush3.bf16.msra.mxu0 %v5436_v40  ;;  %v5487_v1 = vpop.f32.mrf.mxu1 }
 0x2e7   : > { %4265 = vmatprep.subr.bf16.mxu0 %v5442_v6 }
 0x2e8   : > { %v5494_v49 = vpop.f32.mrf.mxu1 }
 0x2e9   : > { %2434 = vmatmul.mubr.bf16.gmra.mxu0 %v5200_v58  ;;  %v4740_v58 = vld [vmem:[%s6084_s8 + $0x48] sm:$0xff]  }
 0x2ea   : > { %2443 = vmatprep.mubr.bf16.mxu0 %v5209_v10  ;;  %4266 = vmatpush3.bf16.msra.mxu0 %v5450_v39  ;;  %v5472_v10 = vld [vmem:[%s6084_s8 + $0xe0] sm:$0xff]   ;;  %v5507_v51 = vpop.f32.mrf.mxu1 }
 0x2eb   : > { %4161 = vmatprep.subr.bf16.mxu1 %v4740_v58  ;;  %4267 = vmatprep.subr.bf16.mxu0 %v5472_v10 }
 0x2ec   : > { %4162 = vmatpush3.bf16.msra.mxu1 %v4741_v47  ;;  %v5512_v41 = vpop.f32.mrf.mxu1 }
 0x2ed   : > { %4163 = vmatprep.subr.bf16.mxu1 %v4742_v37 }
 0x2ee   : > { %4268 = vmatpush3.bf16.msra.mxu0 %v5477_v44 }
 0x2f0   : > { %4164 = vmatpush3.bf16.msra.mxu1 %v4743_v63  ;;  %v6123_v63 = vld [vmem:[#allocation16_spill] sm:$0xff] }
 0x2f1   : > { %2444 = vmatmul.mubr.bf16.gmra.mxu0 %v5211_v13  ;;  %4407 = vmatprep.subr.bf16.mxu1 %v4724_v3  ;;  %v5500_v13 = vld [vmem:[%s6084_s8 + $0xd8] sm:$0xff]  }
 0x2f2   : > { %2453 = vmatprep.mubr.bf16.mxu0 %v5218_v32  ;;  %v5505_v32 = vld [vmem:[%s6084_s8 + $0x98] sm:$0xff]   ;;  %4269 = vmatprep.subr.bf16.mxu0 %v5500_v13 }
 0x2f3   : > { %4270 = vmatpush3.bf16.msra.mxu0 %v5505_v32 }
 0x2f9   : > { %2454 = vmatmul.mubr.bf16.gmra.mxu0 %v5220_v38  ;;  %v5515_v38 = vpop.f32.mrf.mxu1 }
 0x2fa   : > { %2463 = vmatprep.mubr.bf16.mxu0 %v5228_v59  ;;  %v5524_v59 = vld [vmem:[%s6084_s8 + $0xd0] sm:$0xff]  }
 0x2fb   : > { %v5518_v57 = vpop.f32.mrf.mxu1  ;;  %4271 = vmatprep.subr.bf16.mxu0 %v5524_v59 }
 0x2fc   : > { %4272 = vmatpush3.bf16.msra.mxu0 %v5529_v46 }
 0x2fd   : > { %v5531_v55 = vpop.f32.mrf.mxu1 }
 0x301   : > { %2464 = vmatmul.mubr.bf16.gmra.mxu0 %v5231_v0  ;;  %v5536_v0 = vpop.f32.mrf.mxu1 }
 0x302   : > { %2473 = vmatprep.mubr.bf16.mxu0 %v5239_v27 }
 0x303   : > { %v5539_v27 = vpop.f32.mrf.mxu1 }
 0x309   : > { %2474 = vmatmul.mubr.bf16.gmra.mxu0 %v5241_v33  ;;  %v5542_v33 = vpop.f32.mrf.mxu1 }
 0x30a   : > { %2483 = vmatprep.mubr.bf16.mxu0 %v5251_v60  ;;  %v5548_v60 = vld [vmem:[%s6084_s8 + $0xc8] sm:$0xff]  }
 0x30b   : > { %v5555_v7 = vpop.f32.mrf.mxu1  ;;  %4273 = vmatprep.subr.bf16.mxu0 %v5548_v60 }
 0x30c   : > { %4274 = vmatpush3.bf16.msra.mxu0 %v5553_v28 }
 0x30d   : > { %4275 = vmatprep.subr.bf16.mxu0 %v5590_v62 }
 0x310   : > { %4276 = vmatpush3.bf16.msra.mxu0 %v5595_v43 }
 0x311   : > { %2484 = vmatmul.mubr.bf16.gmra.mxu0 %v5253_v34  ;;  %v1301_v34 = vld [vmem:[%s6083_s7] sm:$0xf] }
 0x312   : > { %2493 = vmatprep.mubr.bf16.mxu0 %v5261_v25  ;;  %v5563_v25 = vpop.f32.mrf.mxu1  ;;  %v1310_v18 = vrot.slane %v1301_v34, %v5176_v16 }
 0x314   : > { %v5568_v53 = vpop.f32.mrf.mxu1 }
 0x316   : > { %v5575_v31 = vpop.f32.mrf.mxu1 }
 0x318   : > { %v5582_v26 = vpop.f32.mrf.mxu1 }
 0x319   : > { %2494 = vmatmul.mubr.bf16.gmra.mxu0 %v5264_v30  ;;  %v1306_v30 = vrot.slane %v1301_v34, %v5170_v12 }
 0x31a   : > { %2503 = vmatprep.mubr.bf16.mxu0 %v5282_v50 }
 0x321   : > { %2504 = vmatmul.mubr.bf16.gmra.mxu0 %v5286_v54  ;;  %v1734_v4 = vpop.f32.mrf.mxu0 }
 0x322   : > { %2513 = vmatprep.mubr.bf16.mxu0 %v5297_v8  ;;  %v5571_v19 = vadd.f32 %v1734_v4, %v1306_v30  ;;  %v5585_v8 = vpop.f32.mrf.mxu1 }
 0x323   : > { %v1736_v50 = vpop.f32.mrf.mxu0 }
 0x324   : > { %6115 = vst [vmem:[#allocation17_spill] sm:$0xff] %v5571_v19  ;;  %v5573_v61 = vadd.f32 %v1736_v50, %v1310_v18  ;;  %v4879_v50 = vmov 1966171168  }
 0x325   : > { %v1738_v29 = vpop.f32.mrf.mxu0 }
 0x326   : > { %6116 = vst [vmem:[#allocation18_spill] sm:$0xff] %v5573_v61  ;;  %v2588_v22 = vcombine.low %v5571_v19, %v5573_v61  ;;  %v2593_v29 = vunpack.c.l.s4 %v4879_v50 }
 0x327   : > { %v1739_v54 = vpop.f32.mrf.mxu0 }
 0x328   : > { %v6127_v54 = vld [vmem:[#allocation11_spill] sm:$0xff] }
 0x329   : > { %2514 = vmatmul.mubr.bf16.gmra.mxu0 %v5299_v15  ;;  %v5599_v15 = vpop.f32.mrf.mxu1 }
 0x32a   : > { %2523 = vmatprep.mubr.bf16.mxu0 %v5310_v36 }
 0x32b   : > { %v5603_v36 = vpop.f32.mrf.mxu1 }
 0x32d   : > { %v5606_v3 = vpop.f32.mrf.mxu1 }
 0x32f   : > { %v5609_v35 = vpop.f32.mrf.mxu1 }
 0x331   : > { %2524 = vmatmul.mubr.bf16.gmra.mxu0 %v5312_v42  ;;  %v5612_v58 = vpop.f32.mrf.mxu1  ;;  %v6120_v42 = vld [vmem:[#allocation14_spill] sm:$0xff] }
 0x332   : > { %2533 = vmatprep.mubr.bf16.mxu0 %v5320_v52  ;;  %6119 = vst [vmem:[#allocation12_spill] sm:$0xff] %v5612_v58  ;;  %v6121_v52 = vld [vmem:[#allocation15_spill] sm:$0xff] }
 0x333   : > { %v5615_v47 = vpop.f32.mrf.mxu1 }
 0x335   : > { %v5618_v37 = vpop.f32.mrf.mxu1 }
 0x336   : > { %6122 = vst [vmem:[#allocation13_spill] sm:$0xff] %v5618_v37 }
 0x337   : > { %v5621_v30 = vpop.f32.mrf.mxu1 }
 0x339   : > { %2534 = vmatmul.mubr.bf16.gmra.mxu0 %v6117_v20  ;;  %v5633_v20 = vsub.s32 2, %v6127_v54 }
 0x33a   : > { %2543 = vmatprep.mubr.bf16.mxu0 %v5334_v21  ;;  %v5624_v21 = vpop.f32.mrf.mxu1 }
 0x33b   : > { %6124 = vst [vmem:[#allocation14_spill] sm:$0xff] %v5624_v21  ;;  %6128 = vst [vmem:[#allocation11_spill] sm:$0xff] %v5633_v20 }
 0x33c   : > { %v5627_v18 = vpop.f32.mrf.mxu1 }
 0x33d   : > { %6125 = vst [vmem:[#allocation15_spill] sm:$0xff] %v5627_v18 }
 0x33e   : > { %v5630_v4 = vpop.f32.mrf.mxu1 }
 0x33f   : > { %6126 = vst [vmem:[#allocation16_spill] sm:$0xff] %v5630_v4 }
 0x341   : > { %2544 = vmatmul.mubr.bf16.gmra.mxu0 %v6118_v2  ;;  %v5636_v2 = vsub.s32 3, %v6127_v54 }
 0x342   : > { %2553 = vmatprep.mubr.bf16.mxu0 %v6120_v42  ;;  %v5638_v42 = vpop.f32.mrf.mxu1 }
 0x343   : > { %6129 = vst [vmem:[#allocation19_spill] sm:$0xff] %v5636_v2  ;;  %6130 = vst [vmem:[#allocation20_spill] sm:$0xff] %v5638_v42 }
 0x344   : > { %v5642_v14 = vpop.f32.mrf.mxu1 }
 0x345   : > { %6131 = vst [vmem:[#allocation21_spill] sm:$0xff] %v5642_v14 }
 0x346   : > { %v5651_v37 = vpop.f32.mrf.mxu1 }
 0x347   : > { %6132 = vst [vmem:[#allocation22_spill] sm:$0xff] %v5651_v37 }
 0x348   : > { %v5657_v14 = vpop.f32.mrf.mxu1 }
 0x349   : > { %2554 = vmatmul.mubr.bf16.gmra.mxu0 %v6121_v52  ;;  %v1314_v52 = vrot.slane %v1301_v34, %v5633_v20  ;;  %6133 = vst [vmem:[#allocation23_spill] sm:$0xff] %v5657_v14 }
 0x34a   : > { %2563 = vmatprep.mubr.bf16.mxu0 %v6123_v63 }
 0x351   : > { %2564 = vmatmul.mubr.bf16.gmra.mxu0 %v5357_v11  ;;  %v2594_v11 = vunpack.c.0.s8 %v2593_v29 }
 0x352   : > { %2573 = vmatprep.mubr.bf16.mxu0 %v5364_v23  ;;  %v1318_v23 = vrot.slane %v1301_v34, %v5636_v2 }
 0x353   : > { %v5645_v4 = vsub.s32 %v2594_v11, %v6127_v54 }
 0x355   : > { %v2598_v34 = vrot.slane %v2588_v22, %v5645_v4 }
 0x359   : > { %2574 = vmatmul.mubr.bf16.gmra.mxu0 %v5366_v24 }
 0x361   : > { %v1775_v63 = vpop.f32.mrf.mxu0 }
 0x362   : > { %v5647_v50 = vadd.f32 %v1775_v63, %v1314_v52  ;;  %v5662_v52 = vpop.f32.mrf.mxu1 }
 0x363   : > { %v1777_v24 = vpop.f32.mrf.mxu0  ;;  %6134 = vst [vmem:[#allocation24_spill] sm:$0xff] %v5662_v52 }
 0x364   : > { %v5649_v21 = vadd.f32 %v1777_v24, %v1318_v23  ;;  %v5675_v24 = vpop.f32.mrf.mxu1 }
 0x365   : > { %v1779_v18 = vpop.f32.mrf.mxu0  ;;  %6135 = vst [vmem:[#allocation25_spill] sm:$0xff] %v5675_v24 }
 0x366   : > { %v2590_v29 = vcombine.low %v5647_v50, %v5649_v21 }
 0x367   : > { %v1780_v20 = vpop.f32.mrf.mxu0 }
 0x368   : > { %v2612_v2 = vrot.slane %v2590_v29, %v5645_v4 }
 0x36a   : > { %v2620_v42 = vcombine.low %v2598_v34, %v2612_v2  ;;  %v2621_v54 = vcombine.high %v2598_v34, %v2612_v2 }
 0x36c   : > { %v5660_v11 = vrot.slane %v2620_v42, %v5645_v4  ;;  %v5665_v18 = vrot.slane %v2621_v54, %v5645_v4 }
 0x36e   : > { %v2659_v23 = vrot.slane %v5660_v11, %v5170_v12  ;;  %v2663_v22 = vrot.slane %v5660_v11, %v5176_v16  ;;  %v2679_v54 = vrot.slane %v5665_v18, %v5176_v16 }
 0x370   : > { %v2817_v20 = vadd.f32 %v2663_v22, %v5444_v17  ;;  %v2821_v63 = vadd.f32 %v2663_v22, %v5464_v45  ;;  %v2816_v2 = vadd.f32 %v2659_v23, %v5429_v9  ;;  %v2820_v42 = vadd.f32 %v2659_v23, %v5454_v56  ;;  %v5681_v9 = vpop.f32.mrf.mxu1 }
 0x371   : > { %v2825_v29 = vadd.f32 %v2663_v22, %v5494_v49  ;;  %v2829_v34 = vadd.f32 %v2663_v22, %v5512_v41  ;;  %v2824_v56 = vadd.f32 %v2659_v23, %v5487_v1  ;;  %v2828_v24 = vadd.f32 %v2659_v23, %v5507_v51 }
 0x372   : > { %v2945_v14 = vmax.f32 %v2817_v20, 0.0  ;;  %v2949_v52 = vmax.f32 %v2821_v63, 0.0  ;;  %v2944_v37 = vmax.f32 %v2816_v2, 0.0  ;;  %v2948_v58 = vmax.f32 %v2820_v42, 0.0  ;;  %v5688_v20 = vpop.f32.mrf.mxu1 }
 0x373   : > { %v2953_v17 = vmax.f32 %v2825_v29, 0.0  ;;  %v2957_v61 = vmax.f32 %v2829_v34, 0.0  ;;  %v2833_v41 = vadd.f32 %v2679_v54, %v5518_v57  ;;  %v2837_v22 = vadd.f32 %v2679_v54, %v5536_v0 }
 0x374   : > { %v3073_v45 = vpack.c.bf16 %v2949_v52, %v2945_v14  ;;  %v3072_v19 = vpack.c.bf16 %v2948_v58, %v2944_v37  ;;  %v2952_v14 = vmax.f32 %v2824_v56, 0.0  ;;  %v2956_v58 = vmax.f32 %v2828_v24, 0.0  ;;  %v5694_v57 = vpop.f32.mrf.mxu1 }
 0x375   : > { %v3077_v49 = vpack.c.bf16 %v2957_v61, %v2953_v17  ;;  %v2675_v37 = vrot.slane %v5665_v18, %v5170_v12  ;;  %v2961_v1 = vmax.f32 %v2833_v41, 0.0  ;;  %v2965_v51 = vmax.f32 %v2837_v22, 0.0 }
 0x376   : > { %3431 = vmatprep.mubr.bf16.mxu1 %v3073_v45  ;;  %v3076_v0 = vpack.c.bf16 %v2956_v58, %v2952_v14  ;;  %v5701_v61 = vcombine.high %v5660_v11, %v5660_v11  ;;  %v2845_v23 = vadd.f32 %v2679_v54, %v5563_v25  ;;  %v5733_v45 = vcombine.high %v5665_v18, %v5665_v18 }
 0x377   : > { %3432 = vmatmul.mubr.bf16.vlgmr.msra.gmra.mxu1 %v3072_v19  ;;  %v2832_v19 = vadd.f32 %v2675_v37, %v5515_v38  ;;  %v3081_v52 = vpack.c.bf16 %v2965_v51, %v2961_v1  ;;  %v2840_v42 = vadd.f32 %v2675_v37, %v5539_v27  ;;  %v6137_v51 = vld [vmem:[#allocation18_spill] sm:$0xff] }
 0x378   : > { %3439 = vmatprep.mubr.bf16.mxu1 %v3077_v49  ;;  %4415 = vmatpush3.bf16.msra.mxu1 %v5421_v5  ;;  %v2836_v5 = vadd.f32 %v2675_v37, %v5531_v55  ;;  %v2973_v55 = vmax.f32 %v2845_v23, 0.0  ;;  %v2695_v2 = vrot.slane %v5701_v61, %v5176_v16  ;;  %v2691_v27 = vrot.slane %v5701_v61, %v5170_v12 }
 0x379   : > { %4408 = vmatprep.subr.bf16.mxu1 %v5426_v48  ;;  %v2841_v48 = vadd.f32 %v2679_v54, %v5542_v33  ;;  %v2960_v38 = vmax.f32 %v2832_v19, 0.0  ;;  %v2711_v14 = vrot.slane %v5733_v45, %v5176_v16 }
 0x37a   : > { %v2964_v63 = vmax.f32 %v2836_v5, 0.0  ;;  %v2849_v29 = vadd.f32 %v2695_v2, %v5575_v31  ;;  %v2848_v17 = vadd.f32 %v2691_v27, %v5568_v53  ;;  %v2861_v49 = vadd.f32 %v2695_v2, %v5609_v35 }
 0x37b   : > { %v2856_v58 = vadd.f32 %v2691_v27, %v5599_v15  ;;  %v2869_v1 = vadd.f32 %v2711_v14, %v5621_v30 }
 0x37c   : > { %4416 = vmatpush3.bf16.msra.mxu1 %v5436_v40  ;;  %v5706_v40 = vpop.f32.mrf.mxu1  ;;  %v3080_v25 = vpack.c.bf16 %v2964_v63, %v2960_v38  ;;  %v2976_v41 = vmax.f32 %v2848_v17, 0.0  ;;  %v6139_v38 = vld [vmem:[#allocation12_spill] sm:$0xff] }
 0x37d   : > { %4409 = vmatprep.subr.bf16.mxu1 %v5442_v6  ;;  %v2969_v6 = vmax.f32 %v2841_v48, 0.0 }
 0x37e   : > { %v5712_v33 = vpop.f32.mrf.mxu1 }
 0x37f   : > { %3440 = vmatmul.mubr.bf16.gmra.mxu1 %v3076_v0  ;;  %v3085_v24 = vpack.c.bf16 %v2973_v55, %v2969_v6  ;;  %v6140_v6 = vld [vmem:[#allocation13_spill] sm:$0xff] }
 0x380   : > { %3447 = vmatprep.mubr.bf16.mxu1 %v3081_v52  ;;  %4417 = vmatpush3.bf16.msra.mxu1 %v5450_v39  ;;  %v2844_v39 = vadd.f32 %v2675_v37, %v5555_v7  ;;  %v5720_v34 = vpop.f32.mrf.mxu1  ;;  %v2977_v7 = vmax.f32 %v2849_v29, 0.0  ;;  %v2860_v37 = vadd.f32 %v2691_v27, %v5606_v3  ;;  %v2984_v3 = vmax.f32 %v2856_v58, 0.0 }
 0x381   : > { %4410 = vmatprep.subr.bf16.mxu1 %v5472_v10  ;;  %v2853_v10 = vadd.f32 %v2695_v2, %v5585_v8 }
 0x382   : > { %v2972_v54 = vmax.f32 %v2844_v39, 0.0  ;;  %v5726_v31 = vpop.f32.mrf.mxu1  ;;  %v2988_v5 = vmax.f32 %v2860_v37, 0.0 }
 0x384   : > { %4418 = vmatpush3.bf16.msra.mxu1 %v5477_v44  ;;  %v2968_v44 = vmax.f32 %v2840_v42, 0.0  ;;  %v3092_v30 = vpack.c.bf16 %v2988_v5, %v2984_v3  ;;  %v6141_v42 = vld [vmem:[#allocation15_spill] sm:$0xff] }
 0x385   : > { %4411 = vmatprep.subr.bf16.mxu1 %v5500_v13  ;;  %v2981_v13 = vmax.f32 %v2853_v10, 0.0  ;;  %v2873_v39 = vadd.f32 %v2711_v14, %v6141_v42 }
 0x386   : > { %v3084_v8 = vpack.c.bf16 %v2972_v54, %v2968_v44 }
 0x387   : > { %3448 = vmatmul.mubr.bf16.gmra.mxu1 %v3080_v25  ;;  %v3089_v56 = vpack.c.bf16 %v2981_v13, %v2977_v7  ;;  %v3001_v13 = vmax.f32 %v2873_v39, 0.0 }
 0x388   : > { %3455 = vmatprep.mubr.bf16.mxu1 %v3085_v24  ;;  %4419 = vmatpush3.bf16.msra.mxu1 %v5505_v32  ;;  %v2852_v32 = vadd.f32 %v2691_v27, %v5582_v26  ;;  %v2989_v26 = vmax.f32 %v2861_v49, 0.0  ;;  %v6142_v24 = vld [vmem:[#allocation20_spill] sm:$0xff] }
 0x389   : > { %4412 = vmatprep.subr.bf16.mxu1 %v5524_v59  ;;  %v2857_v59 = vadd.f32 %v2695_v2, %v5603_v36  ;;  %v2877_v29 = vadd.f32 %v2711_v14, %v6142_v24 }
 0x38a   : > { %v2980_v22 = vmax.f32 %v2852_v32, 0.0  ;;  %v6143_v32 = vld [vmem:[#allocation11_spill] sm:$0xff] }
 0x38b   : > { %v2985_v53 = vmax.f32 %v2857_v59, 0.0  ;;  %v6144_v59 = vld [vmem:[#allocation19_spill] sm:$0xff] }
 0x38c   : > { %4420 = vmatpush3.bf16.msra.mxu1 %v5529_v46  ;;  %v5737_v46 = vpop.f32.mrf.mxu1  ;;  %v3088_v35 = vpack.c.bf16 %v2980_v22, %v2976_v41  ;;  %v2671_v49 = vrot.slane %v5660_v11, %v6144_v59  ;;  %v6145_v22 = vld [vmem:[#allocation14_spill] sm:$0xff] }
 0x38d   : > { %4413 = vmatprep.subr.bf16.mxu1 %v5548_v60  ;;  %v2591_v60 = vcombine.high %v5647_v50, %v5649_v21  ;;  %v3093_v21 = vpack.c.bf16 %v2989_v26, %v2985_v53  ;;  %v2865_v50 = vadd.f32 %v2711_v14, %v5615_v47  ;;  %v2997_v47 = vmax.f32 %v2869_v1, 0.0  ;;  %v6146_v53 = vld [vmem:[#allocation16_spill] sm:$0xff] }
 0x38e   : > { %v5745_v36 = vpop.f32.mrf.mxu1 }
 0x38f   : > { %3456 = vmatmul.mubr.bf16.gmra.mxu1 %v3084_v8  ;;  %v2993_v48 = vmax.f32 %v2865_v50, 0.0  ;;  %v3005_v8 = vmax.f32 %v2877_v29, 0.0 }
 0x390   : > { %3463 = vmatprep.mubr.bf16.mxu1 %v3089_v56  ;;  %4421 = vmatpush3.bf16.msra.mxu1 %v5553_v28  ;;  %v5751_v28 = vrot.slane %v2591_v60, %v5645_v4  ;;  %v5759_v15 = vpop.f32.mrf.mxu1  ;;  %v2667_v56 = vrot.slane %v5660_v11, %v6143_v32 }
 0x391   : > { %4414 = vmatprep.subr.bf16.mxu1 %v5590_v62  ;;  %v6136_v62 = vld [vmem:[#allocation17_spill] sm:$0xff]  ;;  %v3097_v25 = vpack.c.bf16 %v2997_v47, %v2993_v48  ;;  %v3101_v1 = vpack.c.bf16 %v3005_v8, %v3001_v13 }
 0x392   : > { %v6138_v0 = vcombine.high %v6136_v62, %v6137_v51  ;;  %v5764_v23 = vpop.f32.mrf.mxu1  ;;  %v6147_v62 = vld [vmem:[#allocation22_spill] sm:$0xff]  ;;  %v6149_v13 = vld [vmem:[#allocation21_spill] sm:$0xff] }
 0x394   : > { %4422 = vmatpush3.bf16.msra.mxu1 %v5595_v43  ;;  %v2605_v19 = vrot.slane %v6138_v0, %v5645_v4  ;;  %v2707_v43 = vrot.slane %v5733_v45, %v5170_v12  ;;  %v5773_v44 = vpop.f32.mrf.mxu1  ;;  %v6148_v0 = vld [vmem:[#allocation24_spill] sm:$0xff] }
 0x396   : > { %v2622_v52 = vcombine.low %v2605_v19, %v5751_v28  ;;  %v2864_v63 = vadd.f32 %v2707_v43, %v6139_v38  ;;  %v2868_v55 = vadd.f32 %v2707_v43, %v6140_v6  ;;  %v2872_v60 = vadd.f32 %v2707_v43, %v6145_v22  ;;  %v5783_v14 = vpop.f32.mrf.mxu1 }
 0x397   : > { %3464 = vmatmul.mubr.bf16.gmra.mxu1 %v3088_v35  ;;  %v2876_v26 = vadd.f32 %v2707_v43, %v6146_v53  ;;  %v2623_v11 = vcombine.high %v2605_v19, %v5751_v28 }
 0x398   : > { %3471 = vmatprep.mubr.bf16.mxu1 %v3093_v21  ;;  %v5769_v2 = vrot.slane %v2622_v52, %v5645_v4  ;;  %v2992_v54 = vmax.f32 %v2864_v63, 0.0  ;;  %v2996_v27 = vmax.f32 %v2868_v55, 0.0  ;;  %v3000_v43 = vmax.f32 %v2872_v60, 0.0 }
 0x399   : > { %v3004_v47 = vmax.f32 %v2876_v26, 0.0  ;;  %v5793_v29 = vrot.slane %v2623_v11, %v5645_v4 }
 0x39a   : > { %v2727_v17 = vrot.slane %v5769_v2, %v5176_v16  ;;  %v3096_v37 = vpack.c.bf16 %v2996_v27, %v2992_v54  ;;  %v2723_v6 = vrot.slane %v5769_v2, %v5170_v12 }
 0x39c   : > { %v2881_v51 = vadd.f32 %v2727_v17, %v6147_v62  ;;  %v2885_v3 = vadd.f32 %v2727_v17, %v6148_v0  ;;  %v2880_v8 = vadd.f32 %v2723_v6, %v6149_v13  ;;  %v2893_v4 = vadd.f32 %v2727_v17, %v5694_v57 }
 0x39d   : > { %v2683_v57 = vrot.slane %v5665_v18, %v6143_v32 }
 0x39e   : > { %v3009_v42 = vmax.f32 %v2881_v51, 0.0  ;;  %v3013_v39 = vmax.f32 %v2885_v3, 0.0  ;;  %v3008_v51 = vmax.f32 %v2880_v8, 0.0  ;;  %v3021_v11 = vmax.f32 %v2893_v4, 0.0 }
 0x39f   : > { %3472 = vmatmul.mubr.bf16.gmra.mxu1 %v3092_v30  ;;  %v5788_v30 = vpop.f32.mrf.mxu1 }
 0x3a0   : > { %3479 = vmatprep.mubr.bf16.mxu1 %v3097_v25  ;;  %v3105_v26 = vpack.c.bf16 %v3013_v39, %v3009_v42 }
 0x3a1   : > { %v2425_v10 = vpop.f32.mrf.mxu0  ;;  %v5795_v54 = vpop.f32.mrf.mxu1 }
 0x3a2   : > { %v2818_v21 = vadd.f32 %v2667_v56, %v2425_v10  ;;  %v3100_v10 = vpack.c.bf16 %v3004_v47, %v3000_v43  ;;  %v6151_v43 = vld [vmem:[#allocation25_spill] sm:$0xff] }
 0x3a3   : > { %v2427_v7 = vpop.f32.mrf.mxu0  ;;  %v2888_v47 = vadd.f32 %v2723_v6, %v6151_v43 }
 0x3a4   : > { %v2819_v35 = vadd.f32 %v2671_v49, %v2427_v7  ;;  %v2946_v55 = vmax.f32 %v2818_v21, 0.0 }
 0x3a5   : > { %v2429_v41 = vpop.f32.mrf.mxu0 }
 0x3a6   : > { %v2822_v58 = vadd.f32 %v2667_v56, %v2429_v41  ;;  %v2947_v38 = vmax.f32 %v2819_v35, 0.0  ;;  %v6150_v41 = vld [vmem:[#allocation23_spill] sm:$0xff]  ;;  %v2889_v35 = vadd.f32 %v2727_v17, %v5681_v9  ;;  %v2743_v9 = vrot.slane %v5793_v29, %v5176_v16 }
 0x3a7   : > { %v2431_v50 = vpop.f32.mrf.mxu0  ;;  %3480 = vmatmul.mubr.bf16.gmra.mxu1 %v3096_v37  ;;  %v2884_v22 = vadd.f32 %v2723_v6, %v6150_v41  ;;  %v2687_v17 = vrot.slane %v5665_v18, %v6144_v59 }
 0x3a8   : > { %v2823_v5 = vadd.f32 %v2671_v49, %v2431_v50  ;;  %v2950_v52 = vmax.f32 %v2822_v58, 0.0  ;;  %3487 = vmatprep.mubr.bf16.mxu1 %v3101_v1  ;;  %v5801_v50 = vpop.f32.mrf.mxu1  ;;  %v2901_v18 = vadd.f32 %v2743_v9, %v5726_v31  ;;  %v5821_v31 = vcombine.high %v5769_v2, %v5769_v2 }
 0x3a9   : > { %v2435_v48 = vpop.f32.mrf.mxu0  ;;  %v3012_v0 = vmax.f32 %v2884_v22, 0.0  ;;  %v2739_v22 = vrot.slane %v5793_v29, %v5170_v12 }
 0x3aa   : > { %v2951_v63 = vmax.f32 %v2823_v5, 0.0  ;;  %v3074_v28 = vpack.c.bf16 %v2950_v52, %v2946_v55  ;;  %v2826_v60 = vadd.f32 %v2667_v56, %v2435_v48  ;;  %v3017_v5 = vmax.f32 %v2889_v35, 0.0 }
 0x3ab   : > { %v2437_v25 = vpop.f32.mrf.mxu0  ;;  %v3104_v42 = vpack.c.bf16 %v3012_v0, %v3008_v51  ;;  %v2896_v51 = vadd.f32 %v2739_v22, %v5706_v40  ;;  %v2900_v0 = vadd.f32 %v2739_v22, %v5720_v34 }
 0x3ac   : > { %v3075_v24 = vpack.c.bf16 %v2951_v63, %v2947_v38  ;;  %v2827_v27 = vadd.f32 %v2671_v49, %v2437_v25  ;;  %v2954_v3 = vmax.f32 %v2826_v60, 0.0  ;;  %v2892_v38 = vadd.f32 %v2723_v6, %v5688_v20  ;;  %v5811_v63 = vpop.f32.mrf.mxu1 }
 0x3ad   : > { %v2439_v19 = vpop.f32.mrf.mxu0  ;;  %v3016_v20 = vmax.f32 %v2888_v47, 0.0  ;;  %v3024_v40 = vmax.f32 %v2896_v51, 0.0 }
 0x3ae   : > { %v2830_v7 = vadd.f32 %v2667_v56, %v2439_v19  ;;  %3592 = vmatprep.mubr.bf16.mxu0 %v3075_v24  ;;  %v2955_v1 = vmax.f32 %v2827_v27, 0.0  ;;  %v2897_v19 = vadd.f32 %v2743_v9, %v5712_v33  ;;  %v3020_v6 = vmax.f32 %v2892_v38, 0.0  ;;  %v5815_v13 = vpop.f32.mrf.mxu1 }
 0x3af   : > { %v2441_v53 = vpop.f32.mrf.mxu0  ;;  %3593 = vmatmul.mubr.bf16.vlgmr.msra.gmra.mxu0 %v3074_v28  ;;  %3488 = vmatmul.mubr.bf16.gmra.mxu1 %v3100_v10  ;;  %v3109_v28 = vpack.c.bf16 %v3021_v11, %v3017_v5  ;;  %v3029_v33 = vmax.f32 %v2901_v18, 0.0  ;;  %v2905_v11 = vadd.f32 %v2743_v9, %v5745_v36  ;;  %v2759_v36 = vrot.slane %v5821_v31, %v5176_v16 }
 0x3b0   : > { %v2831_v58 = vadd.f32 %v2671_v49, %v2441_v53  ;;  %v2958_v37 = vmax.f32 %v2830_v7, 0.0  ;;  %3495 = vmatprep.mubr.bf16.mxu1 %v3105_v26  ;;  %v3025_v26 = vmax.f32 %v2897_v19, 0.0  ;;  %v2904_v19 = vadd.f32 %v2739_v22, %v5737_v46 }
 0x3b1   : > { %v2445_v21 = vpop.f32.mrf.mxu0  ;;  %v2908_v18 = vadd.f32 %v2739_v22, %v5759_v15 }
 0x3b2   : > { %v2959_v62 = vmax.f32 %v2831_v58, 0.0  ;;  %v3078_v52 = vpack.c.bf16 %v2958_v37, %v2954_v3  ;;  %v2834_v39 = vadd.f32 %v2683_v57, %v2445_v21  ;;  %v3108_v37 = vpack.c.bf16 %v3020_v6, %v3016_v20  ;;  %v5823_v21 = vpop.f32.mrf.mxu1 }
 0x3b3   : > { %v2447_v56 = vpop.f32.mrf.mxu0  ;;  %v3113_v5 = vpack.c.bf16 %v3029_v33, %v3025_v26  ;;  %v3032_v15 = vmax.f32 %v2904_v19, 0.0  ;;  %v3036_v22 = vmax.f32 %v2908_v18, 0.0 }
 0x3b4   : > { %v3079_v49 = vpack.c.bf16 %v2959_v62, %v2955_v1  ;;  %v2835_v55 = vadd.f32 %v2687_v17, %v2447_v56  ;;  %v2962_v60 = vmax.f32 %v2834_v39, 0.0  ;;  %v5829_v47 = vpop.f32.mrf.mxu1 }
 0x3b5   : > { %v2449_v48 = vpop.f32.mrf.mxu0 }
 0x3b6   : > { %v2838_v25 = vadd.f32 %v2683_v57, %v2449_v48  ;;  %3600 = vmatprep.mubr.bf16.mxu0 %v3079_v49  ;;  %v2963_v8 = vmax.f32 %v2835_v55, 0.0  ;;  %v2909_v49 = vadd.f32 %v2743_v9, %v5764_v23  ;;  %v2699_v23 = vrot.slane %v5701_v61, %v6143_v32 }
 0x3b7   : > { %v2451_v24 = vpop.f32.mrf.mxu0  ;;  %3601 = vmatmul.mubr.bf16.gmra.mxu0 %v3078_v52  ;;  %3496 = vmatmul.mubr.bf16.gmra.mxu1 %v3104_v42  ;;  %v3033_v42 = vmax.f32 %v2905_v11, 0.0  ;;  %v2703_v9 = vrot.slane %v5701_v61, %v6144_v59  ;;  %v2917_v61 = vadd.f32 %v2759_v36, %v5795_v54  ;;  %v5849_v54 = vcombine.high %v5793_v29, %v5793_v29 }
 0x3b8   : > { %v2839_v10 = vadd.f32 %v2687_v17, %v2451_v24  ;;  %v2966_v27 = vmax.f32 %v2838_v25, 0.0  ;;  %3503 = vmatprep.mubr.bf16.mxu1 %v3109_v28  ;;  %v3028_v25 = vmax.f32 %v2900_v0, 0.0  ;;  %v3037_v39 = vmax.f32 %v2909_v49, 0.0 }
 0x3b9   : > { %v2455_v7 = vpop.f32.mrf.mxu0 }
 0x3ba   : > { %v2967_v41 = vmax.f32 %v2839_v10, 0.0  ;;  %v3082_v4 = vpack.c.bf16 %v2966_v27, %v2962_v60  ;;  %v2842_v3 = vadd.f32 %v2683_v57, %v2455_v7  ;;  %v5839_v10 = vpop.f32.mrf.mxu1  ;;  %v3112_v20 = vpack.c.bf16 %v3028_v25, %v3024_v40 }
 0x3bb   : > { %v2457_v53 = vpop.f32.mrf.mxu0  ;;  %v2913_v60 = vadd.f32 %v2759_v36, %v5783_v14  ;;  %v3045_v14 = vmax.f32 %v2917_v61, 0.0  ;;  %v2921_v40 = vadd.f32 %v2759_v36, %v5811_v63  ;;  %v2925_v25 = vadd.f32 %v2759_v36, %v5823_v21 }
 0x3bc   : > { %v3083_v35 = vpack.c.bf16 %v2967_v41, %v2963_v8  ;;  %v2843_v1 = vadd.f32 %v2687_v17, %v2457_v53  ;;  %v2970_v34 = vmax.f32 %v2842_v3, 0.0  ;;  %v3117_v41 = vpack.c.bf16 %v3037_v39, %v3033_v42  ;;  %v5843_v33 = vpop.f32.mrf.mxu1 }
 0x3bd   : > { %v2459_v58 = vpop.f32.mrf.mxu0  ;;  %v3049_v19 = vmax.f32 %v2921_v40, 0.0  ;;  %v3053_v18 = vmax.f32 %v2925_v25, 0.0  ;;  %v2775_v63 = vrot.slane %v5849_v54, %v5176_v16  ;;  %v2715_v21 = vrot.slane %v5733_v45, %v6143_v32 }
 0x3be   : > { %v2846_v62 = vadd.f32 %v2683_v57, %v2459_v58  ;;  %3608 = vmatprep.mubr.bf16.mxu0 %v3083_v35  ;;  %v2971_v38 = vmax.f32 %v2843_v1, 0.0  ;;  %v2755_v58 = vrot.slane %v5821_v31, %v5170_v12  ;;  %v2719_v36 = vrot.slane %v5733_v45, %v6144_v59 }
 0x3bf   : > { %v2461_v56 = vpop.f32.mrf.mxu0  ;;  %3609 = vmatmul.mubr.bf16.gmra.mxu0 %v3082_v4  ;;  %3504 = vmatmul.mubr.bf16.gmra.mxu1 %v3108_v37 }
 0x3c0   : > { %v2847_v52 = vadd.f32 %v2687_v17, %v2461_v56  ;;  %v2974_v48 = vmax.f32 %v2846_v62, 0.0  ;;  %3511 = vmatprep.mubr.bf16.mxu1 %v3113_v5  ;;  %v3041_v62 = vmax.f32 %v2913_v60, 0.0  ;;  %v3116_v56 = vpack.c.bf16 %v3036_v22, %v3032_v15  ;;  %v2378_v5 = vpop.f32.mrf.mxu1 }
 0x3c1   : > { %v2465_v43 = vpop.f32.mrf.mxu0  ;;  %v2933_v15 = vadd.f32 %v2775_v63, %v2378_v5 }
 0x3c2   : > { %v2975_v55 = vmax.f32 %v2847_v52, 0.0  ;;  %v3086_v17 = vpack.c.bf16 %v2974_v48, %v2970_v34  ;;  %v2850_v6 = vadd.f32 %v2699_v23, %v2465_v43  ;;  %v2912_v52 = vadd.f32 %v2755_v58, %v5773_v44  ;;  %v5855_v39 = vpop.f32.mrf.mxu1 }
 0x3c3   : > { %v2467_v57 = vpop.f32.mrf.mxu0  ;;  %v2916_v48 = vadd.f32 %v2755_v58, %v5788_v30 }
 0x3c4   : > { %v3087_v24 = vpack.c.bf16 %v2975_v55, %v2971_v38  ;;  %v2851_v27 = vadd.f32 %v2703_v9, %v2467_v57  ;;  %v2978_v37 = vmax.f32 %v2850_v6, 0.0  ;;  %v3121_v55 = vpack.c.bf16 %v3045_v14, %v3041_v62 }
 0x3c5   : > { %v2469_v28 = vpop.f32.mrf.mxu0  ;;  %v3040_v44 = vmax.f32 %v2912_v52, 0.0  ;;  %v2924_v6 = vadd.f32 %v2755_v58, %v5815_v13 }
 0x3c6   : > { %v2854_v7 = vadd.f32 %v2699_v23, %v2469_v28  ;;  %3616 = vmatprep.mubr.bf16.mxu0 %v3087_v24  ;;  %v2979_v35 = vmax.f32 %v2851_v27, 0.0  ;;  %v3044_v28 = vmax.f32 %v2916_v48, 0.0 }
 0x3c7   : > { %v2471_v8 = vpop.f32.mrf.mxu0  ;;  %3617 = vmatmul.mubr.bf16.gmra.mxu0 %v3086_v17  ;;  %3512 = vmatmul.mubr.bf16.gmra.mxu1 %v3112_v20  ;;  %v2920_v20 = vadd.f32 %v2755_v58, %v5801_v50 }
 0x3c8   : > { %v2855_v53 = vadd.f32 %v2703_v9, %v2471_v8  ;;  %v2982_v26 = vmax.f32 %v2854_v7, 0.0  ;;  %3519 = vmatprep.mubr.bf16.mxu1 %v3117_v41  ;;  %v2384_v8 = vpop.f32.mrf.mxu1  ;;  %v3120_v61 = vpack.c.bf16 %v3044_v28, %v3040_v44 }
 0x3c9   : > { %v2475_v46 = vpop.f32.mrf.mxu0  ;;  %v3048_v50 = vmax.f32 %v2920_v20, 0.0  ;;  %v2937_v40 = vadd.f32 %v2775_v63, %v2384_v8 }
 0x3ca   : > { %v2983_v4 = vmax.f32 %v2855_v53, 0.0  ;;  %v3090_v0 = vpack.c.bf16 %v2982_v26, %v2978_v37  ;;  %v2858_v43 = vadd.f32 %v2699_v23, %v2475_v46  ;;  %v3125_v26 = vpack.c.bf16 %v3053_v18, %v3049_v19  ;;  %v2386_v13 = vpop.f32.mrf.mxu1 }
 0x3cb   : > { %v2477_v1 = vpop.f32.mrf.mxu0  ;;  %v2929_v46 = vadd.f32 %v2775_v63, %v5839_v10  ;;  %v2731_v18 = vrot.slane %v5769_v2, %v6143_v32 }
 0x3cc   : > { %v3091_v51 = vpack.c.bf16 %v2983_v4, %v2979_v35  ;;  %v2859_v11 = vadd.f32 %v2703_v9, %v2477_v1  ;;  %v2986_v30 = vmax.f32 %v2858_v43, 0.0  ;;  %v3052_v4 = vmax.f32 %v2924_v6, 0.0 }
 0x3cd   : > { %v2479_v3 = vpop.f32.mrf.mxu0  ;;  %v2771_v1 = vrot.slane %v5849_v54, %v5170_v12 }
 0x3ce   : > { %v2862_v49 = vadd.f32 %v2699_v23, %v2479_v3  ;;  %3624 = vmatprep.mubr.bf16.mxu0 %v3091_v51  ;;  %v2987_v24 = vmax.f32 %v2859_v11, 0.0  ;;  %v3057_v51 = vmax.f32 %v2929_v46, 0.0  ;;  %v3124_v5 = vpack.c.bf16 %v3052_v4, %v3048_v50  ;;  %v2388_v11 = vpop.f32.mrf.mxu1 }
 0x3cf   : > { %v2481_v38 = vpop.f32.mrf.mxu0  ;;  %3625 = vmatmul.mubr.bf16.gmra.mxu0 %v3090_v0  ;;  %3520 = vmatmul.mubr.bf16.gmra.mxu1 %v3116_v56  ;;  %v3061_v0 = vmax.f32 %v2933_v15, 0.0  ;;  %v2928_v48 = vadd.f32 %v2771_v1, %v5829_v47  ;;  %v2932_v43 = vadd.f32 %v2771_v1, %v5843_v33  ;;  %v2941_v25 = vadd.f32 %v2775_v63, %v2388_v11 }
 0x3d0   : > { %v2863_v34 = vadd.f32 %v2703_v9, %v2481_v38  ;;  %v2990_v57 = vmax.f32 %v2862_v49, 0.0  ;;  %3527 = vmatprep.mubr.bf16.mxu1 %v3121_v55  ;;  %v3065_v47 = vmax.f32 %v2937_v40, 0.0  ;;  %v2735_v63 = vrot.slane %v5769_v2, %v6144_v59 }
 0x3d1   : > { %v2485_v42 = vpop.f32.mrf.mxu0  ;;  %v3129_v12 = vpack.c.bf16 %v3061_v0, %v3057_v51  ;;  %v3056_v44 = vmax.f32 %v2928_v48, 0.0  ;;  %v3060_v28 = vmax.f32 %v2932_v43, 0.0  ;;  %v3069_v19 = vmax.f32 %v2941_v25, 0.0 }
 0x3d2   : > { %v2991_v17 = vmax.f32 %v2863_v34, 0.0  ;;  %v3094_v9 = vpack.c.bf16 %v2990_v57, %v2986_v30  ;;  %v2866_v53 = vadd.f32 %v2715_v21, %v2485_v42  ;;  %v2940_v6 = vadd.f32 %v2771_v1, %v2386_v13 }
 0x3d3   : > { %v2487_v23 = vpop.f32.mrf.mxu0  ;;  %v3128_v20 = vpack.c.bf16 %v3060_v28, %v3056_v44  ;;  %v2747_v11 = vrot.slane %v5793_v29, %v6143_v32 }
 0x3d4   : > { %v3095_v27 = vpack.c.bf16 %v2991_v17, %v2987_v24  ;;  %v2867_v41 = vadd.f32 %v2719_v36, %v2487_v23  ;;  %v2994_v62 = vmax.f32 %v2866_v53, 0.0  ;;  %v3068_v15 = vmax.f32 %v2940_v6, 0.0 }
 0x3d5   : > { %v2489_v7 = vpop.f32.mrf.mxu0  ;;  %v2767_v6 = vrot.slane %v5821_v31, %v6144_v59 }
 0x3d6   : > { %v2870_v60 = vadd.f32 %v2715_v21, %v2489_v7  ;;  %3632 = vmatprep.mubr.bf16.mxu0 %v3095_v27  ;;  %v2995_v58 = vmax.f32 %v2867_v41, 0.0 }
 0x3d7   : > { %v2491_v16 = vpop.f32.mrf.mxu0  ;;  %3633 = vmatmul.mubr.bf16.gmra.mxu0 %v3094_v9  ;;  %3528 = vmatmul.mubr.bf16.gmra.mxu1 %v3120_v61 }
 0x3d8   : > { %v2871_v22 = vadd.f32 %v2719_v36, %v2491_v16  ;;  %v2998_v45 = vmax.f32 %v2870_v60, 0.0  ;;  %3535 = vmatprep.mubr.bf16.mxu1 %v3125_v26  ;;  %v3133_v60 = vpack.c.bf16 %v3069_v19, %v3065_v47 }
 0x3d9   : > { %v2495_v35 = vpop.f32.mrf.mxu0 }
 0x3da   : > { %v2999_v37 = vmax.f32 %v2871_v22, 0.0  ;;  %v3098_v10 = vpack.c.bf16 %v2998_v45, %v2994_v62  ;;  %v2874_v38 = vadd.f32 %v2715_v21, %v2495_v35 }
 0x3db   : > { %v2497_v14 = vpop.f32.mrf.mxu0 }
 0x3dc   : > { %v3099_v3 = vpack.c.bf16 %v2999_v37, %v2995_v58  ;;  %v2875_v49 = vadd.f32 %v2719_v36, %v2497_v14  ;;  %v3002_v30 = vmax.f32 %v2874_v38, 0.0 }
 0x3dd   : > { %v2499_v56 = vpop.f32.mrf.mxu0 }
 0x3de   : > { %v2878_v52 = vadd.f32 %v2715_v21, %v2499_v56  ;;  %3640 = vmatprep.mubr.bf16.mxu0 %v3099_v3  ;;  %v3003_v24 = vmax.f32 %v2875_v49, 0.0  ;;  %v2751_v49 = vrot.slane %v5793_v29, %v6144_v59 }
 0x3df   : > { %v2501_v55 = vpop.f32.mrf.mxu0  ;;  %3641 = vmatmul.mubr.bf16.gmra.mxu0 %v3098_v10  ;;  %3536 = vmatmul.mubr.bf16.gmra.mxu1 %v3124_v5 }
 0x3e0   : > { %v2879_v34 = vadd.f32 %v2719_v36, %v2501_v55  ;;  %v3006_v57 = vmax.f32 %v2878_v52, 0.0  ;;  %3543 = vmatprep.mubr.bf16.mxu1 %v3129_v12  ;;  %v2936_v36 = vadd.f32 %v2771_v1, %v5855_v39 }
 0x3e1   : > { %v2505_v42 = vpop.f32.mrf.mxu0 }
 0x3e2   : > { %v3007_v17 = vmax.f32 %v2879_v34, 0.0  ;;  %v3102_v27 = vpack.c.bf16 %v3006_v57, %v3002_v30  ;;  %v2882_v8 = vadd.f32 %v2731_v18, %v2505_v42  ;;  %v3064_v46 = vmax.f32 %v2936_v36, 0.0 }
 0x3e3   : > { %v2507_v23 = vpop.f32.mrf.mxu0 }
 0x3e4   : > { %v3103_v33 = vpack.c.bf16 %v3007_v17, %v3003_v24  ;;  %v2883_v9 = vadd.f32 %v2735_v63, %v2507_v23  ;;  %v3010_v22 = vmax.f32 %v2882_v8, 0.0  ;;  %v3132_v58 = vpack.c.bf16 %v3068_v15, %v3064_v46 }
 0x3e5   : > { %v2509_v21 = vpop.f32.mrf.mxu0 }
 0x3e6   : > { %v2886_v7 = vadd.f32 %v2731_v18, %v2509_v21  ;;  %3648 = vmatprep.mubr.bf16.mxu0 %v3103_v33  ;;  %v3011_v26 = vmax.f32 %v2883_v9, 0.0 }
 0x3e7   : > { %v2511_v41 = vpop.f32.mrf.mxu0  ;;  %3649 = vmatmul.mubr.bf16.gmra.mxu0 %v3102_v27  ;;  %3544 = vmatmul.mubr.bf16.gmra.mxu1 %v3128_v20  ;;  %v2763_v20 = vrot.slane %v5821_v31, %v6143_v32 }
 0x3e8   : > { %v2887_v61 = vadd.f32 %v2735_v63, %v2511_v41  ;;  %v3014_v53 = vmax.f32 %v2886_v7, 0.0  ;;  %3551 = vmatprep.mubr.bf16.mxu1 %v3133_v60 }
 0x3e9   : > { %v2515_v16 = vpop.f32.mrf.mxu0 }
 0x3ea   : > { %v3015_v2 = vmax.f32 %v2887_v61, 0.0  ;;  %v3106_v35 = vpack.c.bf16 %v3014_v53, %v3010_v22  ;;  %v2890_v37 = vadd.f32 %v2731_v18, %v2515_v16 }
 0x3eb   : > { %v2517_v39 = vpop.f32.mrf.mxu0 }
 0x3ec   : > { %v3107_v45 = vpack.c.bf16 %v3015_v2, %v3011_v26  ;;  %v2891_v4 = vadd.f32 %v2735_v63, %v2517_v39  ;;  %v3018_v10 = vmax.f32 %v2890_v37, 0.0 }
 0x3ed   : > { %v2519_v50 = vpop.f32.mrf.mxu0 }
 0x3ee   : > { %v2894_v13 = vadd.f32 %v2731_v18, %v2519_v50  ;;  %3656 = vmatprep.mubr.bf16.mxu0 %v3107_v45  ;;  %v3019_v0 = vmax.f32 %v2891_v4, 0.0 }
 0x3ef   : > { %v2521_v1 = vpop.f32.mrf.mxu0  ;;  %3657 = vmatmul.mubr.bf16.gmra.mxu0 %v3106_v35  ;;  %3552 = vmatmul.mubr.bf16.gmra.mxu1 %v3132_v58 }
 0x3f0   : > { %v2895_v62 = vadd.f32 %v2735_v63, %v2521_v1  ;;  %v3022_v14 = vmax.f32 %v2894_v13, 0.0 }
 0x3f1   : > { %v2525_v51 = vpop.f32.mrf.mxu0 }
 0x3f2   : > { %v3023_v3 = vmax.f32 %v2895_v62, 0.0  ;;  %v3110_v52 = vpack.c.bf16 %v3022_v14, %v3018_v10  ;;  %v2898_v55 = vadd.f32 %v2747_v11, %v2525_v51 }
 0x3f3   : > { %v2527_v56 = vpop.f32.mrf.mxu0 }
 0x3f4   : > { %v3111_v5 = vpack.c.bf16 %v3023_v3, %v3019_v0  ;;  %v2899_v43 = vadd.f32 %v2751_v49, %v2527_v56  ;;  %v3026_v24 = vmax.f32 %v2898_v55, 0.0 }
 0x3f5   : > { %v2529_v48 = vpop.f32.mrf.mxu0 }
 0x3f6   : > { %v2902_v38 = vadd.f32 %v2747_v11, %v2529_v48  ;;  %3664 = vmatprep.mubr.bf16.mxu0 %v3111_v5  ;;  %v3027_v57 = vmax.f32 %v2899_v43, 0.0  ;;  %v2779_v5 = vrot.slane %v5849_v54, %v6143_v32 }
 0x3f7   : > { %v2531_v12 = vpop.f32.mrf.mxu0  ;;  %3665 = vmatmul.mubr.bf16.gmra.mxu0 %v3110_v52 }
 0x3f8   : > { %v2903_v40 = vadd.f32 %v2751_v49, %v2531_v12  ;;  %v3030_v25 = vmax.f32 %v2902_v38, 0.0 }
 0x3f9   : > { %v2535_v34 = vpop.f32.mrf.mxu0 }
 0x3fa   : > { %v3031_v42 = vmax.f32 %v2903_v40, 0.0  ;;  %v3114_v28 = vpack.c.bf16 %v3030_v25, %v3026_v24  ;;  %v2906_v47 = vadd.f32 %v2747_v11, %v2535_v34 }
 0x3fb   : > { %v2537_v17 = vpop.f32.mrf.mxu0 }
 0x3fc   : > { %v3115_v44 = vpack.c.bf16 %v3031_v42, %v3027_v57  ;;  %v2907_v23 = vadd.f32 %v2751_v49, %v2537_v17  ;;  %v3034_v36 = vmax.f32 %v2906_v47, 0.0 }
 0x3fd   : > { %v2539_v30 = vpop.f32.mrf.mxu0 }
 0x3fe   : > { %v2910_v29 = vadd.f32 %v2747_v11, %v2539_v30  ;;  %3672 = vmatprep.mubr.bf16.mxu0 %v3115_v44  ;;  %v3035_v27 = vmax.f32 %v2907_v23, 0.0  ;;  %v2783_v11 = vrot.slane %v5849_v54, %v6144_v59 }
 0x3ff   : > { %v2541_v19 = vpop.f32.mrf.mxu0  ;;  %3673 = vmatmul.mubr.bf16.gmra.mxu0 %v3114_v28 }
 0x400   : > { %v2911_v33 = vadd.f32 %v2751_v49, %v2541_v19  ;;  %v3038_v18 = vmax.f32 %v2910_v29, 0.0 }
 0x401   : > { %v2545_v63 = vpop.f32.mrf.mxu0 }
 0x402   : > { %v3039_v21 = vmax.f32 %v2911_v33, 0.0  ;;  %v3118_v8 = vpack.c.bf16 %v3038_v18, %v3034_v36  ;;  %v2914_v53 = vadd.f32 %v2763_v20, %v2545_v63 }
 0x403   : > { %v2547_v9 = vpop.f32.mrf.mxu0 }
 0x404   : > { %v3119_v7 = vpack.c.bf16 %v3039_v21, %v3035_v27  ;;  %v2915_v60 = vadd.f32 %v2767_v6, %v2547_v9  ;;  %v3042_v39 = vmax.f32 %v2914_v53, 0.0 }
 0x405   : > { %v2549_v41 = vpop.f32.mrf.mxu0 }
 0x406   : > { %v2918_v61 = vadd.f32 %v2763_v20, %v2549_v41  ;;  %3680 = vmatprep.mubr.bf16.mxu0 %v3119_v7  ;;  %v3043_v15 = vmax.f32 %v2915_v60, 0.0 }
 0x407   : > { %v2551_v16 = vpop.f32.mrf.mxu0  ;;  %3681 = vmatmul.mubr.bf16.gmra.mxu0 %v3118_v8 }
 0x408   : > { %v2919_v26 = vadd.f32 %v2767_v6, %v2551_v16  ;;  %v3046_v2 = vmax.f32 %v2918_v61, 0.0 }
 0x409   : > { %v2555_v46 = vpop.f32.mrf.mxu0 }
 0x40a   : > { %v3047_v22 = vmax.f32 %v2919_v26, 0.0  ;;  %v3122_v50 = vpack.c.bf16 %v3046_v2, %v3042_v39  ;;  %v2922_v58 = vadd.f32 %v2763_v20, %v2555_v46 }
 0x40b   : > { %v2557_v45 = vpop.f32.mrf.mxu0 }
 0x40c   : > { %v3123_v35 = vpack.c.bf16 %v3047_v22, %v3043_v15  ;;  %v2923_v13 = vadd.f32 %v2767_v6, %v2557_v45  ;;  %v3050_v3 = vmax.f32 %v2922_v58, 0.0 }
 0x40d   : > { %v2559_v4 = vpop.f32.mrf.mxu0 }
 0x40e   : > { %v2926_v31 = vadd.f32 %v2763_v20, %v2559_v4  ;;  %3688 = vmatprep.mubr.bf16.mxu0 %v3123_v35  ;;  %v3051_v51 = vmax.f32 %v2923_v13, 0.0 }
 0x40f   : > { %v2561_v37 = vpop.f32.mrf.mxu0  ;;  %3689 = vmatmul.mubr.bf16.gmra.mxu0 %v3122_v50 }
 0x410   : > { %v2927_v1 = vadd.f32 %v2767_v6, %v2561_v37  ;;  %v3054_v62 = vmax.f32 %v2926_v31, 0.0 }
 0x411   : > { %v2565_v14 = vpop.f32.mrf.mxu0 }
 0x412   : > { %v3055_v0 = vmax.f32 %v2927_v1, 0.0  ;;  %v3126_v49 = vpack.c.bf16 %v3054_v62, %v3050_v3  ;;  %v2930_v38 = vadd.f32 %v2779_v5, %v2565_v14 }
 0x413   : > { %v2567_v10 = vpop.f32.mrf.mxu0 }
 0x414   : > { %v3127_v56 = vpack.c.bf16 %v3055_v0, %v3051_v51  ;;  %v2931_v48 = vadd.f32 %v2783_v11, %v2567_v10  ;;  %v3058_v42 = vmax.f32 %v2930_v38, 0.0  ;;  %v5908_v38 = vld [vmem:[%s6085_s9] ss:$0 sm:$0xff] }
 0x415   : > { %v2569_v52 = vpop.f32.mrf.mxu0 }
 0x416   : > { %v2934_v43 = vadd.f32 %v2779_v5, %v2569_v52  ;;  %3696 = vmatprep.mubr.bf16.mxu0 %v3127_v56  ;;  %v3059_v34 = vmax.f32 %v2931_v48, 0.0 }
 0x417   : > { %v2571_v55 = vpop.f32.mrf.mxu0  ;;  %3697 = vmatmul.mubr.bf16.gmra.mxu0 %v3126_v49 }
 0x418   : > { %v2935_v12 = vadd.f32 %v2783_v11, %v2571_v55  ;;  %v3062_v40 = vmax.f32 %v2934_v43, 0.0 }
 0x419   : > { %v2575_v25 = vpop.f32.mrf.mxu0 }
 0x41a   : > { %v3063_v57 = vmax.f32 %v2935_v12, 0.0  ;;  %v3130_v32 = vpack.c.bf16 %v3062_v40, %v3058_v42  ;;  %v2938_v54 = vadd.f32 %v2779_v5, %v2575_v25 }
 0x41b   : > { %v2577_v24 = vpop.f32.mrf.mxu0 }
 0x41c   : > { %v3131_v17 = vpack.c.bf16 %v3063_v57, %v3059_v34  ;;  %v2939_v28 = vadd.f32 %v2783_v11, %v2577_v24  ;;  %v3066_v33 = vmax.f32 %v2938_v54, 0.0 }
 0x41d   : > { %v2579_v44 = vpop.f32.mrf.mxu0 }
 0x41e   : > { %v2942_v59 = vadd.f32 %v2779_v5, %v2579_v44  ;;  %3704 = vmatprep.mubr.bf16.mxu1 %v3131_v17  ;;  %v3067_v47 = vmax.f32 %v2939_v28, 0.0 }
 0x41f   : > { %v2581_v30 = vpop.f32.mrf.mxu0  ;;  %3705 = vmatmul.mubr.bf16.vlgmr.msra.gmra.mxu1 %v3130_v32 }
 0x420   : > { %v2943_v23 = vadd.f32 %v2783_v11, %v2581_v30  ;;  %v3070_v29 = vmax.f32 %v2942_v59, 0.0 }
 0x422   : > { %v3071_v19 = vmax.f32 %v2943_v23, 0.0  ;;  %v3134_v63 = vpack.c.bf16 %v3070_v29, %v3066_v33 }
 0x424   : > { %v3135_v18 = vpack.c.bf16 %v3071_v19, %v3067_v47 }
 0x426   : > { %3712 = vmatprep.mubr.bf16.mxu1 %v3135_v18 }
 0x427   : > { %3713 = vmatmul.mubr.bf16.gmra.mxu1 %v3134_v63 }
 0x437   : > { %v4165_v27 = vpop.f32.mrf.mxu1 }
 0x439   : > { %v4166_v21 = vpop.f32.mrf.mxu1 }
 0x43a   : > { %v4167_v36 = vadd.f32 %v4166_v21, %v4165_v27 }
 0x43b   : > { %v4168_v9 = vpop.f32.mrf.mxu1 }
 0x43c   : > { %v3434_v34 = vadd.f32 %v4167_v36, %v5908_v38 }
 0x43d   : > { %v4169_v7 = vpop.f32.mrf.mxu1 }
 0x43e   : > { %v4170_v20 = vadd.f32 %v4169_v7, %v4168_v9 }
 0x43f   : > { %v4171_v6 = vpop.f32.mrf.mxu1 }
 0x440   : > { %v3437_v59 = vadd.f32 %v4170_v20, %v5908_v38 }
 0x441   : > { %v4172_v8 = vpop.f32.mrf.mxu1 }
 0x442   : > { %v4173_v41 = vadd.f32 %v4172_v8, %v4171_v6 }
 0x443   : > { %v4174_v60 = vpop.f32.mrf.mxu1 }
 0x444   : > { %v3442_v18 = vadd.f32 %v4173_v41, %v5908_v38 }
 0x445   : > { %v4175_v61 = vpop.f32.mrf.mxu1 }
 0x446   : > { %v4176_v53 = vadd.f32 %v4175_v61, %v4174_v60 }
 0x447   : > { %v4177_v16 = vpop.f32.mrf.mxu1 }
 0x448   : > { %v3445_v8 = vadd.f32 %v4176_v53, %v5908_v38 }
 0x449   : > { %v4178_v26 = vpop.f32.mrf.mxu1 }
 0x44a   : > { %v5887_v2 = vadd.f32 %v4178_v26, %v4177_v16 }
 0x44b   : > { %v4180_v46 = vpop.f32.mrf.mxu1 }
 0x44d   : > { %v4181_v15 = vpop.f32.mrf.mxu1 }
 0x44e   : > { %v5889_v22 = vadd.f32 %v4181_v15, %v4180_v46 }
 0x44f   : > { %v4183_v39 = vpop.f32.mrf.mxu1 }
 0x451   : > { %v4184_v45 = vpop.f32.mrf.mxu1 }
 0x452   : > { %v5891_v35 = vadd.f32 %v4184_v45, %v4183_v39  ;;  %v3450_v39 = vadd.f32 %v5887_v2, %v5908_v38 }
 0x453   : > { %v4186_v50 = vpop.f32.mrf.mxu1 }
 0x455   : > { %v4187_v4 = vpop.f32.mrf.mxu1 }
 0x456   : > { %v5893_v13 = vadd.f32 %v4187_v4, %v4186_v50 }
 0x457   : > { %v4189_v31 = vpop.f32.mrf.mxu1 }
 0x459   : > { %v4190_v58 = vpop.f32.mrf.mxu1 }
 0x45a   : > { %v5895_v37 = vadd.f32 %v4190_v58, %v4189_v31 }
 0x45b   : > { %v4192_v1 = vpop.f32.mrf.mxu1 }
 0x45d   : > { %v4193_v62 = vpop.f32.mrf.mxu1 }
 0x45e   : > { %v5897_v14 = vadd.f32 %v4193_v62, %v4192_v1  ;;  %v3453_v62 = vadd.f32 %v5889_v22, %v5908_v38 }
 0x45f   : > { %v4195_v51 = vpop.f32.mrf.mxu1 }
 0x461   : > { %v4196_v0 = vpop.f32.mrf.mxu1 }
 0x462   : > { %v5899_v3 = vadd.f32 %v4196_v0, %v4195_v51 }
 0x463   : > { %v4198_v10 = vpop.f32.mrf.mxu1 }
 0x465   : > { %v4199_v56 = vpop.f32.mrf.mxu1 }
 0x466   : > { %v5901_v5 = vadd.f32 %v4199_v56, %v4198_v10 }
 0x467   : > { %v4201_v11 = vpop.f32.mrf.mxu1 }
 0x469   : > { %v4202_v49 = vpop.f32.mrf.mxu1 }
 0x46a   : > { %v5903_v52 = vadd.f32 %v4202_v49, %v4201_v11  ;;  %v3458_v49 = vadd.f32 %v5891_v35, %v5908_v38 }
 0x46b   : > { %v4204_v48 = vpop.f32.mrf.mxu1 }
 0x46d   : > { %v4205_v43 = vpop.f32.mrf.mxu1 }
 0x46e   : > { %v5910_v55 = vadd.f32 %v4205_v43, %v4204_v48 }
 0x46f   : > { %v4277_v12 = vpop.f32.mrf.mxu0  ;;  %v4207_v40 = vpop.f32.mrf.mxu1 }
 0x471   : > { %v4278_v25 = vpop.f32.mrf.mxu0  ;;  %v4208_v57 = vpop.f32.mrf.mxu1 }
 0x472   : > { %v4279_v42 = vadd.f32 %v4278_v25, %v4277_v12  ;;  %v5913_v24 = vadd.f32 %v4208_v57, %v4207_v40 }
 0x473   : > { %v4280_v17 = vpop.f32.mrf.mxu0  ;;  %v4210_v44 = vpop.f32.mrf.mxu1 }
 0x474   : > { %v3595_v32 = vadd.f32 %v4279_v42, %v3434_v34  ;;  %v3461_v42 = vadd.f32 %v5893_v13, %v5908_v38 }
 0x475   : > { %v4281_v28 = vpop.f32.mrf.mxu0  ;;  %v4211_v54 = vpop.f32.mrf.mxu1 }
 0x476   : > { %v4282_v30 = vadd.f32 %v4281_v28, %v4280_v17  ;;  %v5916_v23 = vadd.f32 %v4211_v54, %v4210_v44 }
 0x477   : > { %v4283_v29 = vpop.f32.mrf.mxu0  ;;  %v4213_v19 = vpop.f32.mrf.mxu1 }
 0x478   : > { %v3598_v47 = vadd.f32 %v4282_v30, %v3437_v59 }
 0x479   : > { %v4284_v33 = vpop.f32.mrf.mxu0  ;;  %v4214_v27 = vpop.f32.mrf.mxu1 }
 0x47a   : > { %v3721_v63 = vmax.f32 %v3595_v32, %v3598_v47  ;;  %v4285_v21 = vadd.f32 %v4284_v33, %v4283_v29  ;;  %v5919_v36 = vadd.f32 %v4214_v27, %v4213_v19  ;;  %v3466_v29 = vadd.f32 %v5895_v37, %v5908_v38 }
 0x47b   : > { %v4286_v9 = vpop.f32.mrf.mxu0  ;;  %v5921_v6 = vpop.f32.mrf.mxu1  ;;  %v3474_v37 = vadd.f32 %v5899_v3, %v5908_v38 }
 0x47c   : > { %v3603_v7 = vadd.f32 %v4285_v21, %v3442_v18 }
 0x47d   : > { %v4287_v20 = vpop.f32.mrf.mxu0  ;;  %v5924_v61 = vpop.f32.mrf.mxu1 }
 0x47e   : > { %v3722_v60 = vmax.f32 %v3721_v63, %v3603_v7  ;;  %v4288_v16 = vadd.f32 %v4287_v20, %v4286_v9  ;;  %v3469_v9 = vadd.f32 %v5897_v14, %v5908_v38  ;;  %v3477_v14 = vadd.f32 %v5901_v5, %v5908_v38 }
 0x47f   : > { %v4289_v26 = vpop.f32.mrf.mxu0  ;;  %v5926_v15 = vpop.f32.mrf.mxu1 }
 0x480   : > { %v3606_v46 = vadd.f32 %v4288_v16, %v3445_v8 }
 0x481   : > { %v4290_v41 = vpop.f32.mrf.mxu0  ;;  %v5930_v50 = vpop.f32.mrf.mxu1 }
 0x482   : > { %v3723_v45 = vmax.f32 %v3722_v60, %v3606_v46  ;;  %v4291_v4 = vadd.f32 %v4290_v41, %v4289_v26 }
 0x483   : > { %v4292_v31 = vpop.f32.mrf.mxu0  ;;  %v5932_v1 = vpop.f32.mrf.mxu1 }
 0x484   : > { %v3611_v58 = vadd.f32 %v4291_v4, %v3450_v39  ;;  %v3724_v48 = vrot.slane %v3723_v45, 4 }
 0x485   : > { %v4293_v53 = vpop.f32.mrf.mxu0  ;;  %v5936_v51 = vpop.f32.mrf.mxu1 }
 0x486   : > { %v4294_v0 = vadd.f32 %v4293_v53, %v4292_v31  ;;  %v3725_v17 = vmax.f32 %v3723_v45, %v3724_v48 }
 0x487   : > { %v4295_v10 = vpop.f32.mrf.mxu0  ;;  %v5938_v11 = vpop.f32.mrf.mxu1 }
 0x488   : > { %v3614_v56 = vadd.f32 %v4294_v0, %v3453_v62  ;;  %v3726_v47 = vrot.slane %v3725_v17, 2 }
 0x489   : > { %v4296_v2 = vpop.f32.mrf.mxu0  ;;  %v5942_v12 = vpop.f32.mrf.mxu1 }
 0x48a   : > { %v3730_v43 = vmax.f32 %v3611_v58, %v3614_v56  ;;  %v4297_v40 = vadd.f32 %v4296_v2, %v4295_v10  ;;  %v3727_v7 = vmax.f32 %v3725_v17, %v3726_v47 }
 0x48b   : > { %v4298_v25 = vpop.f32.mrf.mxu0  ;;  %v5944_v57 = vpop.f32.mrf.mxu1 }
 0x48c   : > { %v3619_v34 = vadd.f32 %v4297_v40, %v3458_v49  ;;  %v3728_v39 = vrot.slane %v3727_v7, 1 }
 0x48d   : > { %v4299_v22 = vpop.f32.mrf.mxu0  ;;  %v5948_v44 = vpop.f32.mrf.mxu1 }
 0x48e   : > { %v3731_v32 = vmax.f32 %v3730_v43, %v3619_v34  ;;  %v4300_v28 = vadd.f32 %v4299_v22, %v4298_v25  ;;  %v3729_v56 = vmax.f32 %v3727_v7, %v3728_v39 }
 0x48f   : > { %v4301_v59 = vpop.f32.mrf.mxu0  ;;  %v5950_v54 = vpop.f32.mrf.mxu1 }
 0x490   : > { %v3622_v35 = vadd.f32 %v4300_v28, %v3461_v42 }
 0x491   : > { %v4302_v30 = vpop.f32.mrf.mxu0  ;;  %v5954_v13 = vpop.f32.mrf.mxu1 }
 0x492   : > { %v3732_v19 = vmax.f32 %v3731_v32, %v3622_v35  ;;  %v4303_v33 = vadd.f32 %v4302_v30, %v4301_v59  ;;  %v3482_v59 = vadd.f32 %v5903_v52, %v5908_v38  ;;  %v3485_v35 = vadd.f32 %v5910_v55, %v5908_v38 }
 0x493   : > { %v4304_v18 = vpop.f32.mrf.mxu0  ;;  %v5960_v46 = vpop.f32.mrf.mxu1 }
 0x494   : > { %v3733_v63 = vrot.slane %v3732_v19, 4  ;;  %v3627_v27 = vadd.f32 %v4303_v33, %v3466_v29 }
 0x495   : > { %v4305_v21 = vpop.f32.mrf.mxu0  ;;  %v5964_v0 = vpop.f32.mrf.mxu1 }
 0x496   : > { %v3734_v20 = vmax.f32 %v3732_v19, %v3733_v63  ;;  %v4306_v8 = vadd.f32 %v4305_v21, %v4304_v18  ;;  %v3490_v21 = vadd.f32 %v5913_v24, %v5908_v38 }
 0x497   : > { %v4307_v60 = vpop.f32.mrf.mxu0  ;;  %v5967_v25 = vpop.f32.mrf.mxu1 }
 0x498   : > { %v3735_v16 = vrot.slane %v3734_v20, 2  ;;  %v3630_v26 = vadd.f32 %v4306_v8, %v3469_v9 }
 0x499   : > { %v4308_v41 = vpop.f32.mrf.mxu0  ;;  %v5969_v28 = vpop.f32.mrf.mxu1 }
 0x49a   : > { %v3736_v45 = vmax.f32 %v3734_v20, %v3735_v16  ;;  %v3739_v4 = vmax.f32 %v3627_v27, %v3630_v26  ;;  %v4309_v31 = vadd.f32 %v4308_v41, %v4307_v60  ;;  %v3493_v26 = vadd.f32 %v5916_v23, %v5908_v38 }
 0x49b   : > { %v4310_v58 = vpop.f32.mrf.mxu0  ;;  %v5975_v63 = vpop.f32.mrf.mxu1  ;;  %v4221_v23 = vadd.f32 %v5930_v50, %v5926_v15  ;;  %v4224_v15 = vadd.f32 %v5936_v51, %v5932_v1 }
 0x49c   : > { %v3737_v53 = vrot.slane %v3736_v45, 1  ;;  %v3635_v62 = vadd.f32 %v4309_v31, %v3474_v37 }
 0x49d   : > { %v4311_v10 = vpop.f32.mrf.mxu0  ;;  %v5979_v16 = vpop.f32.mrf.mxu1 }
 0x49e   : > { %v3738_v2 = vmax.f32 %v3736_v45, %v3737_v53  ;;  %v3740_v49 = vmax.f32 %v3739_v4, %v3635_v62  ;;  %v4312_v3 = vadd.f32 %v4311_v10, %v4310_v58  ;;  %v4218_v53 = vadd.f32 %v5924_v61, %v5921_v6 }
 0x49f   : > { %v4313_v48 = vpop.f32.mrf.mxu0  ;;  %v5984_v24 = vpop.f32.mrf.mxu1  ;;  %v3506_v61 = vadd.f32 %v4221_v23, %v5908_v38 }
 0x4a0   : > { %v3801_v43 = vsel %vm1355_vm2, %v3738_v2, %v3729_v56  ;;  %v3638_v40 = vadd.f32 %v4312_v3, %v3477_v14  ;;  %v3498_v3 = vadd.f32 %v5919_v36, %v5908_v38 }
 0x4a1   : > { %v4314_v34 = vpop.f32.mrf.mxu0  ;;  %v4244_v2 = vpop.f32.mrf.mxu1 }
 0x4a2   : > { %v3741_v22 = vmax.f32 %v3740_v49, %v3638_v40  ;;  %v4315_v32 = vadd.f32 %v4314_v34, %v4313_v48  ;;  %v3501_v48 = vadd.f32 %v4218_v53, %v5908_v38 }
 0x4a3   : > { %v4316_v42 = vpop.f32.mrf.mxu0 }
 0x4a4   : > { %v3742_v17 = vrot.slane %v3741_v22, 4  ;;  %v3643_v33 = vadd.f32 %v4315_v32, %v3482_v59 }
 0x4a5   : > { %v4317_v5 = vpop.f32.mrf.mxu0 }
 0x4a6   : > { %v3743_v30 = vmax.f32 %v3741_v22, %v3742_v17  ;;  %v4318_v29 = vadd.f32 %v4317_v5, %v4316_v42  ;;  %v4246_v17 = vpop.f32.mrf.mxu1 }
 0x4a7   : > { %v4319_v47 = vpop.f32.mrf.mxu0 }
 0x4a8   : > { %v3744_v19 = vrot.slane %v3743_v30, 2  ;;  %v3646_v18 = vadd.f32 %v4318_v29, %v3485_v35  ;;  %v4247_v29 = vpop.f32.mrf.mxu1 }
 0x4a9   : > { %v4320_v27 = vpop.f32.mrf.mxu0 }
 0x4aa   : > { %v3745_v9 = vmax.f32 %v3743_v30, %v3744_v19  ;;  %v3748_v7 = vmax.f32 %v3643_v33, %v3646_v18  ;;  %v4321_v20 = vadd.f32 %v4320_v27, %v4319_v47  ;;  %v3509_v19 = vadd.f32 %v4224_v15, %v5908_v38 }
 0x4ab   : > { %v4322_v8 = vpop.f32.mrf.mxu0 }
 0x4ac   : > { %v3746_v52 = vrot.slane %v3745_v9, 1  ;;  %v3651_v60 = vadd.f32 %v4321_v20, %v3490_v21  ;;  %v5998_v20 = vpop.f32.mrf.mxu1 }
 0x4ad   : > { %v4323_v55 = vpop.f32.mrf.mxu0 }
 0x4ae   : > { %v3747_v37 = vmax.f32 %v3745_v9, %v3746_v52  ;;  %v3749_v41 = vmax.f32 %v3748_v7, %v3651_v60  ;;  %v4324_v39 = vadd.f32 %v4323_v55, %v4322_v8  ;;  %v6000_v60 = vpop.f32.mrf.mxu1 }
 0x4af   : > { %v4325_v45 = vpop.f32.mrf.mxu0 }
 0x4b0   : > { %v3802_v4 = vsel %vm1357_vm3, %v3747_v37, %v3801_v43  ;;  %v3654_v31 = vadd.f32 %v4324_v39, %v3493_v26  ;;  %v4252_v39 = vpop.f32.mrf.mxu1 }
 0x4b1   : > { %v4326_v58 = vpop.f32.mrf.mxu0 }
 0x4b2   : > { %v3750_v62 = vmax.f32 %v3749_v41, %v3654_v31  ;;  %v4327_v56 = vadd.f32 %v4326_v58, %v4325_v45 }
 0x4b3   : > { %v4328_v14 = vpop.f32.mrf.mxu0 }
 0x4b4   : > { %v3751_v10 = vrot.slane %v3750_v62, 4  ;;  %v3659_v42 = vadd.f32 %v4327_v56, %v3498_v3 }
 0x4b5   : > { %v4329_v49 = vpop.f32.mrf.mxu0 }
 0x4b6   : > { %v3752_v43 = vmax.f32 %v3750_v62, %v3751_v10  ;;  %v4330_v40 = vadd.f32 %v4329_v49, %v4328_v14 }
 0x4b7   : > { %v4331_v34 = vpop.f32.mrf.mxu0 }
 0x4b8   : > { %v3753_v22 = vrot.slane %v3752_v43, 2  ;;  %v3662_v6 = vadd.f32 %v4330_v40, %v3501_v48  ;;  %v4230_v48 = vadd.f32 %v5948_v44, %v5944_v57  ;;  %v4233_v40 = vadd.f32 %v5954_v13, %v5950_v54 }
 0x4b9   : > { %v4332_v32 = vpop.f32.mrf.mxu0 }
 0x4ba   : > { %v3754_v50 = vmax.f32 %v3752_v43, %v3753_v22  ;;  %v3757_v5 = vmax.f32 %v3659_v42, %v3662_v6  ;;  %v4333_v59 = vadd.f32 %v4332_v32, %v4331_v34  ;;  %v4227_v43 = vadd.f32 %v5942_v12, %v5938_v11 }
 0x4bb   : > { %v4334_v35 = vpop.f32.mrf.mxu0  ;;  %v4242_v34 = vadd.f32 %v5979_v16, %v5975_v63  ;;  %v4245_v32 = vadd.f32 %v4244_v2, %v5984_v24  ;;  %v3517_v57 = vadd.f32 %v4230_v48, %v5908_v38  ;;  %v4236_v11 = vadd.f32 %v5964_v0, %v5960_v46 }
 0x4bc   : > { %v3755_v36 = vrot.slane %v3754_v50, 1  ;;  %v3667_v30 = vadd.f32 %v4333_v59, %v3506_v61  ;;  %v4239_v61 = vadd.f32 %v5969_v28, %v5967_v25  ;;  %v3514_v54 = vadd.f32 %v4227_v43, %v5908_v38 }
 0x4bd   : > { %v4335_v47 = vpop.f32.mrf.mxu0  ;;  %v3522_v13 = vadd.f32 %v4233_v40, %v5908_v38  ;;  %v3533_v63 = vadd.f32 %v4242_v34, %v5908_v38  ;;  %v4248_v28 = vadd.f32 %v4247_v29, %v4246_v17 }
 0x4be   : > { %v3756_v33 = vmax.f32 %v3754_v50, %v3755_v36  ;;  %v4336_v18 = vadd.f32 %v4335_v47, %v4334_v35  ;;  %v3758_v9 = vmax.f32 %v3757_v5, %v3667_v30  ;;  %v3530_v35 = vadd.f32 %v4239_v61, %v5908_v38 }
 0x4bf   : > { %v4337_v27 = vpop.f32.mrf.mxu0  ;;  %v3538_v36 = vadd.f32 %v4245_v32, %v5908_v38  ;;  %v3525_v30 = vadd.f32 %v4236_v11, %v5908_v38 }
 0x4c0   : > { %v3803_v21 = vsel %vm1359_vm4, %v3756_v33, %v3802_v4  ;;  %v3670_v7 = vadd.f32 %v4336_v18, %v3509_v19  ;;  %v4253_v4 = vpop.f32.mrf.mxu1 }
 0x4c1   : > { %v4338_v1 = vpop.f32.mrf.mxu0 }
 0x4c2   : > { %v3759_v51 = vmax.f32 %v3758_v9, %v3670_v7  ;;  %v4255_v23 = vpop.f32.mrf.mxu1  ;;  %v4339_v12 = vadd.f32 %v4338_v1, %v4337_v27  ;;  %v3541_v9 = vadd.f32 %v4248_v28, %v5908_v38 }
 0x4c3   : > { %v4340_v8 = vpop.f32.mrf.mxu0 }
 0x4c4   : > { %v3760_v52 = vrot.slane %v3759_v51, 4  ;;  %v4256_v22 = vpop.f32.mrf.mxu1  ;;  %v3675_v47 = vadd.f32 %v4339_v12, %v3514_v54 }
 0x4c5   : > { %v4341_v55 = vpop.f32.mrf.mxu0 }
 0x4c6   : > { %v3761_v26 = vmax.f32 %v3759_v51, %v3760_v52  ;;  %v4342_v6 = vadd.f32 %v4341_v55, %v4340_v8  ;;  %v4258_v16 = vpop.f32.mrf.mxu1 }
 0x4c7   : > { %v4343_v37 = vpop.f32.mrf.mxu0 }
 0x4c8   : > { %v3762_v41 = vrot.slane %v3761_v26, 2  ;;  %v3678_v24 = vadd.f32 %v4342_v6, %v3517_v57  ;;  %v4259_v33 = vpop.f32.mrf.mxu1 }
 0x4c9   : > { %v4344_v45 = vpop.f32.mrf.mxu0  ;;  %v4260_v6 = vadd.f32 %v4259_v33, %v4258_v16 }
 0x4ca   : > { %v3763_v31 = vmax.f32 %v3761_v26, %v3762_v41  ;;  %v4345_v44 = vadd.f32 %v4344_v45, %v4343_v37  ;;  %v3766_v17 = vmax.f32 %v3675_v47, %v3678_v24 }
 0x4cb   : > { %v4346_v58 = vpop.f32.mrf.mxu0 }
 0x4cc   : > { %v3764_v53 = vrot.slane %v3763_v31, 1  ;;  %v3683_v19 = vadd.f32 %v4345_v44, %v3522_v13 }
 0x4cd   : > { %v4347_v62 = vpop.f32.mrf.mxu0 }
 0x4ce   : > { %v3765_v14 = vmax.f32 %v3763_v31, %v3764_v53  ;;  %v4348_v2 = vadd.f32 %v4347_v62, %v4346_v58  ;;  %v3767_v8 = vmax.f32 %v3766_v17, %v3683_v19  ;;  %v4254_v31 = vadd.f32 %v4253_v4, %v4252_v39 }
 0x4cf   : > { %v4349_v10 = vpop.f32.mrf.mxu0  ;;  %v4251_v58 = vadd.f32 %v6000_v60, %v5998_v20  ;;  %v4257_v53 = vadd.f32 %v4256_v22, %v4255_v23 }
 0x4d0   : > { %v6003_v56 = vsel %vm1361_vm5, %v3765_v14, %v3803_v21  ;;  %v3686_v29 = vadd.f32 %v4348_v2, %v3525_v30  ;;  %v3549_v48 = vadd.f32 %v4254_v31, %v5908_v38 }
 0x4d1   : > { %v4350_v49 = vpop.f32.mrf.mxu0  ;;  %v3546_v40 = vadd.f32 %v4251_v58, %v5908_v38  ;;  %v3554_v34 = vadd.f32 %v4257_v53, %v5908_v38 }
 0x4d2   : > { %v4351_v5 = vadd.f32 %v4350_v49, %v4349_v10  ;;  %v3768_v37 = vmax.f32 %v3767_v8, %v3686_v29 }
 0x4d3   : > { %v4352_v3 = vpop.f32.mrf.mxu0 }
 0x4d4   : > { %v3691_v18 = vadd.f32 %v4351_v5, %v3530_v35  ;;  %v3769_v14 = vrot.slane %v3768_v37, 4 }
 0x4d5   : > { %v4353_v42 = vpop.f32.mrf.mxu0 }
 0x4d6   : > { %v4354_v15 = vadd.f32 %v4353_v42, %v4352_v3  ;;  %v3770_v61 = vmax.f32 %v3768_v37, %v3769_v14 }
 0x4d7   : > { %v4355_v50 = vpop.f32.mrf.mxu0 }
 0x4d8   : > { %v3694_v46 = vadd.f32 %v4354_v15, %v3533_v63  ;;  %v3557_v15 = vadd.f32 %v4260_v6, %v5908_v38 }
 0x4d9   : > { %v4356_v25 = vpop.f32.mrf.mxu0 }
 0x4da   : > { %v4357_v59 = vadd.f32 %v4356_v25, %v4355_v50  ;;  %v3775_v1 = vmax.f32 %v3691_v18, %v3694_v46  ;;  %v3771_v50 = vrot.slane %v3770_v61, 2 }
 0x4db   : > { %v4358_v0 = vpop.f32.mrf.mxu0 }
 0x4dc   : > { %v3699_v27 = vadd.f32 %v4357_v59, %v3538_v36  ;;  %v3772_v13 = vmax.f32 %v3770_v61, %v3771_v50 }
 0x4dd   : > { %v4359_v21 = vpop.f32.mrf.mxu0 }
 0x4de   : > { %v4360_v7 = vadd.f32 %v4359_v21, %v4358_v0  ;;  %v3776_v55 = vmax.f32 %v3775_v1, %v3699_v27  ;;  %v3773_v25 = vrot.slane %v3772_v13, 1 }
 0x4df   : > { %v4361_v51 = vpop.f32.mrf.mxu1 }
 0x4e0   : > { %v3702_v52 = vadd.f32 %v4360_v7, %v3541_v9  ;;  %v3774_v59 = vmax.f32 %v3772_v13, %v3773_v25 }
 0x4e1   : > { %v4362_v26 = vpop.f32.mrf.mxu1 }
 0x4e2   : > { %v3777_v41 = vmax.f32 %v3776_v55, %v3702_v52  ;;  %v4363_v43 = vadd.f32 %v4362_v26, %v4361_v51  ;;  %v3805_v0 = vsel %vm1363_vm6, %v3774_v59, %v6003_v56 }
 0x4e3   : > { %v4364_v45 = vpop.f32.mrf.mxu1 }
 0x4e4   : > { %v3778_v49 = vrot.slane %v3777_v41, 4  ;;  %v3707_v23 = vadd.f32 %v4363_v43, %v3546_v40 }
 0x4e5   : > { %v4365_v62 = vpop.f32.mrf.mxu1 }
 0x4e6   : > { %v4366_v10 = vadd.f32 %v4365_v62, %v4364_v45  ;;  %v3779_v20 = vmax.f32 %v3777_v41, %v3778_v49 }
 0x4e7   : > { %v4367_v3 = vpop.f32.mrf.mxu1 }
 0x4e8   : > { %v3710_v39 = vadd.f32 %v4366_v10, %v3549_v48  ;;  %v3780_v12 = vrot.slane %v3779_v20, 2 }
 0x4e9   : > { %v4368_v42 = vpop.f32.mrf.mxu1 }
 0x4ea   : > { %v4369_v4 = vadd.f32 %v4368_v42, %v4367_v3  ;;  %v3784_v57 = vmax.f32 %v3707_v23, %v3710_v39  ;;  %v3781_v16 = vmax.f32 %v3779_v20, %v3780_v12 }
 0x4eb   : > { %v4370_v60 = vpop.f32.mrf.mxu1 }
 0x4ec   : > { %v3715_v22 = vadd.f32 %v4369_v4, %v3554_v34  ;;  %v3782_v24 = vrot.slane %v3781_v16, 1 }
 0x4ed   : > { %v4371_v32 = vpop.f32.mrf.mxu1 }
 0x4ee   : > { %v4372_v11 = vadd.f32 %v4371_v32, %v4370_v60  ;;  %v3785_v44 = vmax.f32 %v3784_v57, %v3715_v22  ;;  %v3783_v38 = vmax.f32 %v3781_v16, %v3782_v24 }
 0x4f0   : > { %v3718_v54 = vadd.f32 %v4372_v11, %v3557_v15  ;;  %v3806_v30 = vsel %vm1365_vm7, %v3783_v38, %v3805_v0 }
 0x4f2   : > { %v3786_v63 = vmax.f32 %v3785_v44, %v3718_v54 }
 0x4f4   : > { %v3787_v5 = vrot.slane %v3786_v63, 4 }
 0x4f6   : > { %v3788_v28 = vmax.f32 %v3786_v63, %v3787_v5 }
 0x4f8   : > { %v3789_v2 = vrot.slane %v3788_v28, 2 }
 0x4fa   : > { %v3790_v35 = vmax.f32 %v3788_v28, %v3789_v2 }
 0x4fc   : > { %v3791_v36 = vrot.slane %v3790_v35, 1 }
 0x4fe   : > { %v3792_v46 = vmax.f32 %v3790_v35, %v3791_v36 }
 0x500   : > { %v3807_v47 = vsel %vm1367_vm8, %v3792_v46, %v3806_v30 }
 0x501   : > { %3809 = vst [vmem:[%s385_s20] sm:$0xff] %v3807_v47 }
 0x502   : > { %4817 = shalt.err (!%p4814_p3)
}
 0x503   : > { %s4818_s18 = scalar_lea.hbm %s6040_s11, 128  ;;  %s4822_s26 = scalar_lea.hbm %s6086_s10, 384 }
 0x504   : > { %p4819_p2 = scmp.ne.s32.totalorder %s6040_s11, %s4818_s18  ;;  %p4823_p7 = scmp.lt.s32.totalorder %s6040_s11, %s6086_s10 }
 0x505   : > { %p4824_p6 = scmp.lt.s32.totalorder %s4822_s26, %s4818_s18 }
 0x506   : > { %p4820_p4 = pnand %p4819_p2, %p4974_p5 }
 0x507   : > { %p4825_p9 = por %p4824_p6, %p4823_p7 }
 0x508   : > { %p4821_p13 = pneg %p4820_p4 }
 0x50a   : > { %p4826_p10 = pnand %p4825_p9, %p4821_p13 }
 0x50c   : > { %4829 = shalt.err (!%p4826_p10)
}
 0x50d   : > { %4432 = dma.vmem_to_hbm [thread:$0]  (%p4974_p5), %s3825_s21, 128, %s6040_s11, %s3811_s27  }
 0x50e PF: > { %p4449_p12 = scmp.ge.s32.totalorder %s4872_s16, 2  ;;  %s3836_s28 = sand.u32 1, %s4860_s13  }
 0x50f   : > { %p6152_p8 = scmp.ne.s32.totalorder %s6102_s24, 0  ;;  %s3837_s25 = scalar_lea.sflag [#allocation4], %s3836_s28 }
 0x511   : > { %p4442_p11 = pnand %p4449_p12, %p6152_p8 }
 0x513   : > { %p4443_p0 = pneg %p4442_p11 }
 0x515   : > { %4855 = dma.done.wait (%p4443_p0), %s3837_s25, 128  }
 0x516   : > { %4857 = vsyncadd (%p4443_p0), %s3837_s25, 4294967168  ;;  %p22_p1 = scmp.ge.s32.totalorder %s4961_s19, 5   ;;  %s6153_s13 = smov %s4864_s14 }
 0x517   : > { %s6154_s14 = smov %s4868_s15  ;;  %s6155_s15 = smov %s4972_s22 }
 0x518   : > { %s6156_s16 = smov %s4961_s19  ;;  %24 = sbr.rel (!%p22_p1) target bundleno = 5 (0x5), region = 104 }
 0x51d   :  { %3842 = vsyncpa [#allocation3], 1 }
 0x51e   :  { %3844 = vsyncpa [#allocation3 + $0x1], 1 }
 0x51f   :  { %3845 = vsyncpa [#allocation6], 1 }
 0x520   :  { %3846 = vsyncpa [#allocation4], 1 }
 0x521   :  { %3848 = vsyncpa [#allocation4 + $0x1], 1 }

</bundles_post_ra>
